<compile_context>
chip_gen: v6e
topology: v6e:2x2x1
jax: 0.10.0
libtpu: 0.0.40
codegen_flags: <defaults>
</compile_context>

<pallas_src>
import jax
import jax.numpy as jnp
from jax.experimental import pallas as pl
from jax.experimental.pallas import tpu as pltpu

KH = KW = 3  # 3x3 convs, stride 1, padding 1 ("SAME")


def _basic_block_kernel(xp_ref, w1_ref, b1_ref, w2_ref, b2_ref, o_ref, hpad_ref):
    """Per-batch-element ResNet basic block.

    xp_ref : (1, H+2, W+2, C)  zero-padded input (conv1 input + residual interior)
    w1_ref : (9*C, C)          conv1 weight, im2col layout (dy, dx, cin) x cout, bf16
    b1_ref : (1, 1, C)         conv1 bias (f32)
    w2_ref : (9*C, C)          conv2 weight, bf16
    b2_ref : (1, 1, C)         conv2 bias (f32)
    o_ref  : (1, H, W, C)      output
    hpad_ref: VMEM scratch (H+2, W+2, C) f32 — padded intermediate activation
    """
    H = o_ref.shape[1]
    W = o_ref.shape[2]
    C = o_ref.shape[3]

    xp = xp_ref[0]  # (H+2, W+2, C) f32

    def im2col(padded):
        # 9 shifted (H, W, C) views concatenated along the channel (lane) axis
        cols = [padded[dy:dy + H, dx:dx + W, :]
                for dy in range(KH) for dx in range(KW)]
        return jnp.concatenate(cols, axis=-1).astype(jnp.bfloat16)   # (H, W, 9C)

    # ---- conv1: single im2col matmul, K = 9C, f32 accumulation ----
    acc1 = jnp.einsum("hwk,kc->hwc", im2col(xp), w1_ref[...],
                      preferred_element_type=jnp.float32)            # (H, W, C)
    h = jnp.maximum(acc1 + b1_ref[...], 0.0)                         # ReLU

    # ---- pad intermediate into VMEM scratch: zero only the border, then interior ----
    zrow = jnp.zeros((1, W + 2, C), jnp.float32)
    zcol = jnp.zeros((H + 2, 1, C), jnp.float32)
    hpad_ref[0:1, :, :] = zrow
    hpad_ref[H + 1:H + 2, :, :] = zrow
    hpad_ref[:, 0:1, :] = zcol
    hpad_ref[:, W + 1:W + 2, :] = zcol
    hpad_ref[1:H + 1, 1:W + 1, :] = h

    # ---- conv2: single im2col matmul ----
    acc2 = jnp.einsum("hwk,kc->hwc", im2col(hpad_ref[...]), w2_ref[...],
                      preferred_element_type=jnp.float32)            # (H, W, C)

    # residual taken from the interior of the padded input (no second HBM copy)
    out = acc2 + b2_ref[...] + xp[1:H + 1, 1:W + 1, :]
    o_ref[0] = jnp.maximum(out, 0.0).astype(o_ref.dtype)             # final ReLU


def resnet18_basic_block_1(x_nchw, w1, b1, w2, b2):
    """x_nchw: (N, C, H, W) float32.  w*: (3, 3, C, C) HWIO.  b*: (C,)."""
    N, C, H, W = x_nchw.shape
    x = jnp.transpose(x_nchw, (0, 2, 3, 1))                          # NHWC
    xp = jnp.pad(x, ((0, 0), (1, 1), (1, 1), (0, 0)))                # zero pad for conv1

    # im2col weight layout: (dy, dx, cin) flattened -> (9C, C), bf16 for the MXU
    w1m = w1.reshape(KH * KW * C, C).astype(jnp.bfloat16)
    w2m = w2.reshape(KH * KW * C, C).astype(jnp.bfloat16)
    b1r = b1.reshape(1, 1, C).astype(jnp.float32)
    b2r = b2.reshape(1, 1, C).astype(jnp.float32)

    flops = 2 * 2 * KH * KW * N * H * W * C * C                      # 2 convs, MAC=2 flops
    bytes_accessed = (xp.size + N * H * W * C) * 4 + (w1m.size + w2m.size) * 2 \
        + (b1r.size + b2r.size) * 4

    out_nhwc = pl.pallas_call(
        _basic_block_kernel,
        out_shape=jax.ShapeDtypeStruct((N, H, W, C), x.dtype),
        grid_spec=pltpu.PrefetchScalarGridSpec(
            num_scalar_prefetch=0,
            grid=(N,),
            in_specs=[
                pl.BlockSpec((1, H + 2, W + 2, C), lambda n: (n, 0, 0, 0)),  # padded x
                pl.BlockSpec((KH * KW * C, C), lambda n: (0, 0)),            # w1 (9C, C)
                pl.BlockSpec((1, 1, C), lambda n: (0, 0, 0)),                # b1
                pl.BlockSpec((KH * KW * C, C), lambda n: (0, 0)),            # w2 (9C, C)
                pl.BlockSpec((1, 1, C), lambda n: (0, 0, 0)),                # b2
            ],
            out_specs=pl.BlockSpec((1, H, W, C), lambda n: (n, 0, 0, 0)),
            scratch_shapes=[pltpu.VMEM((H + 2, W + 2, C), jnp.float32)],
        ),
        compiler_params=pltpu.CompilerParams(dimension_semantics=("parallel",)),
        cost_estimate=pl.CostEstimate(flops=flops, transcendentals=0,
                                      bytes_accessed=bytes_accessed),
    )(xp, w1m, b1r, w2m, b2r)

    return jnp.transpose(out_nhwc, (0, 3, 1, 2))                     # back to NCHW


# ---------------- reference (plain JAX, bf16-matmul-matched) for validation ----------------
def _conv3x3_same_nhwc_bf16(x, w, b):
    y = jax.lax.conv_general_dilated(
        x.astype(jnp.bfloat16), w.astype(jnp.bfloat16),
        window_strides=(1, 1), padding="SAME",
        dimension_numbers=("NHWC", "HWIO", "NHWC"),
        preferred_element_type=jnp.float32)
    return y + b.reshape(1, 1, 1, -1).astype(jnp.float32)


def _reference(x_nchw, w1, b1, w2, b2):
    x = jnp.transpose(x_nchw, (0, 2, 3, 1))
    h = jnp.maximum(_conv3x3_same_nhwc_bf16(x, w1, b1), 0.0)
    y = _conv3x3_same_nhwc_bf16(h, w2, b2)
    y = jnp.maximum(y + x, 0.0)
    return jnp.transpose(y, (0, 3, 1, 2))


if __name__ == "__main__":
    N, C, H, W = 2, 4, 16, 16
    key = jax.random.PRNGKey(0)
    kx, k1, k2, k3, k4 = jax.random.split(key, 5)

    x = jax.random.normal(kx, (N, C, H, W), dtype=jnp.float32)
    # deterministic synthetic parameters (shapes match nn.Conv2d(C, C, 3, 1, 1) incl. bias)
    w1 = jax.random.normal(k1, (KH, KW, C, C), dtype=jnp.float32) * 0.1
    b1 = jax.random.normal(k2, (C,), dtype=jnp.float32) * 0.1
    w2 = jax.random.normal(k3, (KH, KW, C, C), dtype=jnp.float32) * 0.1
    b2 = jax.random.normal(k4, (C,), dtype=jnp.float32) * 0.1

    out = resnet18_basic_block_1(x, w1, b1, w2, b2)
    out = jax.block_until_ready(out)

    ref = jax.block_until_ready(_reference(x, w1, b1, w2, b2))
    assert out.shape == (N, C, H, W)
    err = float(jnp.max(jnp.abs(out - ref)))
    assert err < 3e-2, f"mismatch vs reference conv (max abs err {err})"

    print("KERNEL_OK")
</pallas_src>

<mosaic_0001>
module attributes {stable_mosaic.version = 11 : i64} {
  func.func @_basic_block_kernel(%arg0: i32, %arg1: memref<1x18x18x4xf32, #tpu.memory_space<vmem>>, %arg2: memref<36x4xbf16, #tpu.memory_space<vmem>>, %arg3: memref<1x1x4xf32, #tpu.memory_space<vmem>>, %arg4: memref<36x4xbf16, #tpu.memory_space<vmem>>, %arg5: memref<1x1x4xf32, #tpu.memory_space<vmem>>, %arg6: memref<1x16x16x4xf32, #tpu.memory_space<vmem>>, %arg7: memref<18x18x4xf32, #tpu.memory_space<vmem>>) attributes {dimension_semantics = [#tpu.dimension_semantics<parallel>], iteration_bounds = array<i64: 2>, scalar_prefetch = 0 : i64, scratch_operands = 1 : i64, tpu.core_type = #tpu.core_type<tc>, window_params = [{transform_indices = @transform_0, window_bounds = array<i64: 1, 18, 18, 4>}, {pipeline_mode = #tpu.pipeline_mode<synchronous>, transform_indices = @transform_1, window_bounds = array<i64: 36, 4>}, {pipeline_mode = #tpu.pipeline_mode<synchronous>, transform_indices = @transform_2, window_bounds = array<i64: 1, 1, 4>}, {pipeline_mode = #tpu.pipeline_mode<synchronous>, transform_indices = @transform_3, window_bounds = array<i64: 36, 4>}, {pipeline_mode = #tpu.pipeline_mode<synchronous>, transform_indices = @transform_4, window_bounds = array<i64: 1, 1, 4>}, {transform_indices = @transform_5, window_bounds = array<i64: 1, 16, 16, 4>}]} {
    %c0 = arith.constant 0 : index
    %c0_0 = arith.constant 0 : index
    %c0_1 = arith.constant 0 : index
    %c0_2 = arith.constant 0 : index
    %0 = vector.load %arg1[%c0, %c0_0, %c0_1, %c0_2] : memref<1x18x18x4xf32, #tpu.memory_space<vmem>>, vector<1x18x18x4xf32>
    %1 = vector.shape_cast %0 : vector<1x18x18x4xf32> to vector<18x18x4xf32>
    %2 = vector.extract_strided_slice %1 {offsets = [0, 0, 0], sizes = [16, 16, 4], strides = [1, 1, 1]} : vector<18x18x4xf32> to vector<16x16x4xf32>
    %3 = vector.extract_strided_slice %1 {offsets = [0, 1, 0], sizes = [16, 16, 4], strides = [1, 1, 1]} : vector<18x18x4xf32> to vector<16x16x4xf32>
    %4 = vector.extract_strided_slice %1 {offsets = [0, 2, 0], sizes = [16, 16, 4], strides = [1, 1, 1]} : vector<18x18x4xf32> to vector<16x16x4xf32>
    %5 = vector.extract_strided_slice %1 {offsets = [1, 0, 0], sizes = [16, 16, 4], strides = [1, 1, 1]} : vector<18x18x4xf32> to vector<16x16x4xf32>
    %6 = vector.extract_strided_slice %1 {offsets = [1, 1, 0], sizes = [16, 16, 4], strides = [1, 1, 1]} : vector<18x18x4xf32> to vector<16x16x4xf32>
    %7 = vector.extract_strided_slice %1 {offsets = [1, 2, 0], sizes = [16, 16, 4], strides = [1, 1, 1]} : vector<18x18x4xf32> to vector<16x16x4xf32>
    %8 = vector.extract_strided_slice %1 {offsets = [2, 0, 0], sizes = [16, 16, 4], strides = [1, 1, 1]} : vector<18x18x4xf32> to vector<16x16x4xf32>
    %9 = vector.extract_strided_slice %1 {offsets = [2, 1, 0], sizes = [16, 16, 4], strides = [1, 1, 1]} : vector<18x18x4xf32> to vector<16x16x4xf32>
    %10 = vector.extract_strided_slice %1 {offsets = [2, 2, 0], sizes = [16, 16, 4], strides = [1, 1, 1]} : vector<18x18x4xf32> to vector<16x16x4xf32>
    %11 = tpu.concatenate %2, %3, %4, %5, %6, %7, %8, %9, %10 in 2 : vector<16x16x4xf32>, vector<16x16x4xf32>, vector<16x16x4xf32>, vector<16x16x4xf32>, vector<16x16x4xf32>, vector<16x16x4xf32>, vector<16x16x4xf32>, vector<16x16x4xf32>, vector<16x16x4xf32> -> vector<16x16x36xf32>
    %12 = arith.truncf %11 : vector<16x16x36xf32> to vector<16x16x36xbf16>
    %c0_3 = arith.constant 0 : index
    %c0_4 = arith.constant 0 : index
    %13 = vector.load %arg2[%c0_3, %c0_4] : memref<36x4xbf16, #tpu.memory_space<vmem>>, vector<36x4xbf16>
    "tpu.trace_start"() <{level = 10 : i32, message = "hwk,kc->hwc"}> : () -> ()
    %cst = arith.constant dense<0.000000e+00> : vector<16x16x4xf32>
    %14 = tpu.matmul %12, %13, %cst {dimension_numbers = #tpu.dot_dimension_numbers<[2], [0], [0, 1], [1], [0, 0, 0, 1, 1, 1], [], []>} : vector<16x16x36xbf16>, vector<36x4xbf16>, vector<16x16x4xf32> -> vector<16x16x4xf32>
    "tpu.trace_stop"() : () -> ()
    %c0_5 = arith.constant 0 : index
    %c0_6 = arith.constant 0 : index
    %c0_7 = arith.constant 0 : index
    %15 = vector.load %arg3[%c0_5, %c0_6, %c0_7] : memref<1x1x4xf32, #tpu.memory_space<vmem>>, vector<1x1x4xf32>
    %16 = vector.broadcast %15 : vector<1x1x4xf32> to vector<16x16x4xf32>
    %17 = arith.addf %14, %16 : vector<16x16x4xf32>
    %cst_8 = arith.constant 0.000000e+00 : f32
    %18 = vector.broadcast %cst_8 : f32 to vector<16x16x4xf32>
    %19 = arith.maximumf %17, %18 : vector<16x16x4xf32>
    %cst_9 = arith.constant 0.000000e+00 : f32
    %20 = vector.broadcast %cst_9 : f32 to vector<1x18x4xf32>
    %cst_10 = arith.constant 0.000000e+00 : f32
    %21 = vector.broadcast %cst_10 : f32 to vector<18x1x4xf32>
    %c0_11 = arith.constant 0 : index
    %c0_12 = arith.constant 0 : index
    %c0_13 = arith.constant 0 : index
    %22 = vector.load %arg7[%c0_11, %c0_12, %c0_13] : memref<18x18x4xf32, #tpu.memory_space<vmem>>, vector<1x18x4xf32>
    tpu.vector_store %arg7[%c0_11, %c0_12, %c0_13], %20 {strides = array<i32>} : memref<18x18x4xf32, #tpu.memory_space<vmem>>, vector<1x18x4xf32>,
    %c17 = arith.constant 17 : index
    %c0_14 = arith.constant 0 : index
    %c0_15 = arith.constant 0 : index
    %23 = vector.load %arg7[%c17, %c0_14, %c0_15] : memref<18x18x4xf32, #tpu.memory_space<vmem>>, vector<1x18x4xf32>
    tpu.vector_store %arg7[%c17, %c0_14, %c0_15], %20 {strides = array<i32>} : memref<18x18x4xf32, #tpu.memory_space<vmem>>, vector<1x18x4xf32>,
    %c0_16 = arith.constant 0 : index
    %c0_17 = arith.constant 0 : index
    %c0_18 = arith.constant 0 : index
    %24 = vector.load %arg7[%c0_16, %c0_17, %c0_18] : memref<18x18x4xf32, #tpu.memory_space<vmem>>, vector<18x1x4xf32>
    tpu.vector_store %arg7[%c0_16, %c0_17, %c0_18], %21 {strides = array<i32>} : memref<18x18x4xf32, #tpu.memory_space<vmem>>, vector<18x1x4xf32>,
    %c0_19 = arith.constant 0 : index
    %c17_20 = arith.constant 17 : index
    %c0_21 = arith.constant 0 : index
    %25 = vector.load %arg7[%c0_19, %c17_20, %c0_21] : memref<18x18x4xf32, #tpu.memory_space<vmem>>, vector<18x1x4xf32>
    tpu.vector_store %arg7[%c0_19, %c17_20, %c0_21], %21 {strides = array<i32>} : memref<18x18x4xf32, #tpu.memory_space<vmem>>, vector<18x1x4xf32>,
    %c1 = arith.constant 1 : index
    %c1_22 = arith.constant 1 : index
    %c0_23 = arith.constant 0 : index
    %26 = vector.load %arg7[%c1, %c1_22, %c0_23] : memref<18x18x4xf32, #tpu.memory_space<vmem>>, vector<16x16x4xf32>
    tpu.vector_store %arg7[%c1, %c1_22, %c0_23], %19 {strides = array<i32>} : memref<18x18x4xf32, #tpu.memory_space<vmem>>, vector<16x16x4xf32>,
    %c0_24 = arith.constant 0 : index
    %c0_25 = arith.constant 0 : index
    %c0_26 = arith.constant 0 : index
    %27 = vector.load %arg7[%c0_24, %c0_25, %c0_26] : memref<18x18x4xf32, #tpu.memory_space<vmem>>, vector<18x18x4xf32>
    %28 = vector.extract_strided_slice %27 {offsets = [0, 0, 0], sizes = [16, 16, 4], strides = [1, 1, 1]} : vector<18x18x4xf32> to vector<16x16x4xf32>
    %29 = vector.extract_strided_slice %27 {offsets = [0, 1, 0], sizes = [16, 16, 4], strides = [1, 1, 1]} : vector<18x18x4xf32> to vector<16x16x4xf32>
    %30 = vector.extract_strided_slice %27 {offsets = [0, 2, 0], sizes = [16, 16, 4], strides = [1, 1, 1]} : vector<18x18x4xf32> to vector<16x16x4xf32>
    %31 = vector.extract_strided_slice %27 {offsets = [1, 0, 0], sizes = [16, 16, 4], strides = [1, 1, 1]} : vector<18x18x4xf32> to vector<16x16x4xf32>
    %32 = vector.extract_strided_slice %27 {offsets = [1, 1, 0], sizes = [16, 16, 4], strides = [1, 1, 1]} : vector<18x18x4xf32> to vector<16x16x4xf32>
    %33 = vector.extract_strided_slice %27 {offsets = [1, 2, 0], sizes = [16, 16, 4], strides = [1, 1, 1]} : vector<18x18x4xf32> to vector<16x16x4xf32>
    %34 = vector.extract_strided_slice %27 {offsets = [2, 0, 0], sizes = [16, 16, 4], strides = [1, 1, 1]} : vector<18x18x4xf32> to vector<16x16x4xf32>
    %35 = vector.extract_strided_slice %27 {offsets = [2, 1, 0], sizes = [16, 16, 4], strides = [1, 1, 1]} : vector<18x18x4xf32> to vector<16x16x4xf32>
    %36 = vector.extract_strided_slice %27 {offsets = [2, 2, 0], sizes = [16, 16, 4], strides = [1, 1, 1]} : vector<18x18x4xf32> to vector<16x16x4xf32>
    %37 = tpu.concatenate %28, %29, %30, %31, %32, %33, %34, %35, %36 in 2 : vector<16x16x4xf32>, vector<16x16x4xf32>, vector<16x16x4xf32>, vector<16x16x4xf32>, vector<16x16x4xf32>, vector<16x16x4xf32>, vector<16x16x4xf32>, vector<16x16x4xf32>, vector<16x16x4xf32> -> vector<16x16x36xf32>
    %38 = arith.truncf %37 : vector<16x16x36xf32> to vector<16x16x36xbf16>
    %c0_27 = arith.constant 0 : index
    %c0_28 = arith.constant 0 : index
    %39 = vector.load %arg4[%c0_27, %c0_28] : memref<36x4xbf16, #tpu.memory_space<vmem>>, vector<36x4xbf16>
    "tpu.trace_start"() <{level = 10 : i32, message = "hwk,kc->hwc"}> : () -> ()
    %cst_29 = arith.constant dense<0.000000e+00> : vector<16x16x4xf32>
    %40 = tpu.matmul %38, %39, %cst_29 {dimension_numbers = #tpu.dot_dimension_numbers<[2], [0], [0, 1], [1], [0, 0, 0, 1, 1, 1], [], []>} : vector<16x16x36xbf16>, vector<36x4xbf16>, vector<16x16x4xf32> -> vector<16x16x4xf32>
    "tpu.trace_stop"() : () -> ()
    %c0_30 = arith.constant 0 : index
    %c0_31 = arith.constant 0 : index
    %c0_32 = arith.constant 0 : index
    %41 = vector.load %arg5[%c0_30, %c0_31, %c0_32] : memref<1x1x4xf32, #tpu.memory_space<vmem>>, vector<1x1x4xf32>
    %42 = vector.broadcast %41 : vector<1x1x4xf32> to vector<16x16x4xf32>
    %43 = arith.addf %40, %42 : vector<16x16x4xf32>
    %44 = vector.extract_strided_slice %1 {offsets = [1, 1, 0], sizes = [16, 16, 4], strides = [1, 1, 1]} : vector<18x18x4xf32> to vector<16x16x4xf32>
    %45 = arith.addf %43, %44 : vector<16x16x4xf32>
    %cst_33 = arith.constant 0.000000e+00 : f32
    %46 = vector.broadcast %cst_33 : f32 to vector<16x16x4xf32>
    %47 = arith.maximumf %45, %46 : vector<16x16x4xf32>
    %c0_34 = arith.constant 0 : index
    %c0_35 = arith.constant 0 : index
    %c0_36 = arith.constant 0 : index
    %c0_37 = arith.constant 0 : index
    %48 = vector.load %arg6[%c0_34, %c0_35, %c0_36, %c0_37] : memref<1x16x16x4xf32, #tpu.memory_space<vmem>>, vector<1x16x16x4xf32>
    %49 = vector.shape_cast %48 : vector<1x16x16x4xf32> to vector<16x16x4xf32>
    %50 = vector.shape_cast %47 : vector<16x16x4xf32> to vector<1x16x16x4xf32>
    tpu.vector_store %arg6[%c0_34, %c0_35, %c0_36, %c0_37], %50 {strides = array<i32>} : memref<1x16x16x4xf32, #tpu.memory_space<vmem>>, vector<1x16x16x4xf32>,
    return
  }
  func.func @transform_0(%arg0: i32) -> (i32, i32, i32, i32) {
    %c0_i32 = arith.constant 0 : i32
    %c0_i32_0 = arith.constant 0 : i32
    %c0_i32_1 = arith.constant 0 : i32
    %c0_i32_2 = arith.constant 0 : i32
    return %arg0, %c0_i32, %c0_i32_0, %c0_i32_1 : i32, i32, i32, i32
  }
  func.func @transform_1(%arg0: i32) -> (i32, i32) {
    %c0_i32 = arith.constant 0 : i32
    %c0_i32_0 = arith.constant 0 : i32
    %c0_i32_1 = arith.constant 0 : i32
    return %c0_i32, %c0_i32_0 : i32, i32
  }
  func.func @transform_2(%arg0: i32) -> (i32, i32, i32) {
    %c0_i32 = arith.constant 0 : i32
    %c0_i32_0 = arith.constant 0 : i32
    %c0_i32_1 = arith.constant 0 : i32
    %c0_i32_2 = arith.constant 0 : i32
    return %c0_i32, %c0_i32_0, %c0_i32_1 : i32, i32, i32
  }
  func.func @transform_3(%arg0: i32) -> (i32, i32) {
    %c0_i32 = arith.constant 0 : i32
    %c0_i32_0 = arith.constant 0 : i32
    %c0_i32_1 = arith.constant 0 : i32
    return %c0_i32, %c0_i32_0 : i32, i32
  }
  func.func @transform_4(%arg0: i32) -> (i32, i32, i32) {
    %c0_i32 = arith.constant 0 : i32
    %c0_i32_0 = arith.constant 0 : i32
    %c0_i32_1 = arith.constant 0 : i32
    %c0_i32_2 = arith.constant 0 : i32
    return %c0_i32, %c0_i32_0, %c0_i32_1 : i32, i32, i32
  }
  func.func @transform_5(%arg0: i32) -> (i32, i32, i32, i32) {
    %c0_i32 = arith.constant 0 : i32
    %c0_i32_0 = arith.constant 0 : i32
    %c0_i32_1 = arith.constant 0 : i32
    %c0_i32_2 = arith.constant 0 : i32
    return %arg0, %c0_i32, %c0_i32_0, %c0_i32_1 : i32, i32, i32, i32
  }
}

</mosaic_0001>

<bundles_post_ra>
// kernel: tpu_custom_call.1
= control target key start
LH: loop header
LB: loop body
LE: loop exit
PB: predicated region body
PF: predicated region fallthrough
CT: control target
= control target key end

     0   :  { %s5243_s18 = smov 0   ;;  %s8562_s0 = inlined_call_operand.vmem [shape: f32[2,18,18,4], index: 0, kind: input, shape index: {}]   ;;  %s8563_s1 = inlined_call_operand.vmem [shape: bf16[36,4], index: 1, kind: input, shape index: {}]   ;;  %s8564_s2 = inlined_call_operand.vmem [shape: f32[1,1,4], index: 2, kind: input, shape index: {}]   ;;  %s8565_s3 = inlined_call_operand.vmem [shape: bf16[36,4], index: 3, kind: input, shape index: {}]   ;;  %s8566_s4 = inlined_call_operand.vmem [shape: f32[1,1,4], index: 4, kind: input, shape index: {}]   ;;  %s8567_s5 = inlined_call_operand.vmem [shape: f32[2,16,16,4], index: 5, kind: output, shape index: {}]  }
   0x1 LB: > { %s3665_s19 = sadd.s32 4294967295, %s5202_s18   ;;  %p3669_p0 = scmp.ge.s32.totalorder %s5202_s18, 1  ;;  %s5202_s18 = sphi %s5243_s18, %s15_s18  }
   0x2   : > { %p187_p1 = scmp.lt.s32.totalorder %s5202_s18, 3 }
   0x4   : > { %p188_p2 = pnand %p3669_p0, %p187_p1 }
   0x6   : > { %191 = sbr.rel (%p188_p2) target bundleno = 1146 (0x47a), region = 40 }
   0xb   : > { %p215_p3 = scmp.lt.s32.totalorder %s3665_s19, 1  ;;  %vm328_vm0 = vcmask 1046528   ;;  %s5204_s24 = smov 4   ;;  %vm505_vm1 = vcmask 1045504   ;;  %vm1640_vm2 = vcmask 1041408   ;;  %vm1284_vm3 = vcmask 31744  }
   0xc   : > { %s5205_s25 = smov 8   ;;  %s5206_s26 = smov 12   ;;  %vm1317_vm4 = vcmask 64512   ;;  %vm1350_vm5 = vcmask 97280   ;;  %vm1383_vm6 = vcmask 130048   ;;  %vm1416_vm7 = vcmask 162816  }
   0xd   : > { %s8931_s19 = smov (!%p215_p3, %s3665_s19), 1  ;;  %s5207_s27 = smov 16   ;;  %vm1449_vm8 = vcmask 195584   ;;  %vm1482_vm9 = vcmask 228352   ;;  %vm1515_vm10 = vcmask 261120   ;;  %vm1591_vm11 = vcmask 293888  }
   0xe   : > { %s3832_s20 = smul.u32 432, %s8931_s19  ;;  %s5208_s28 = smov 20   ;;  %vm1839_vm12 = vcmask 25600   ;;  %vm1845_vm13 = vcmask 24576  }
   0xf   : > { %s5209_s29 = smov 24   ;;  %s5210_s30 = smov 28  }
  0x10   : > { %s5257_s23 = scalar_lea.vmem %s8562_s0, %s3832_s20  ;;  %s5211_s12 = smov 32  }
  0x11   : > { %v5260_v0 = vld [vmem:[%s5257_s23 + $0x30] sm:$0xff]  ;;  %v5263_v1 = vld [vmem:[%s5257_s23 + $0x38] sm:$0xff]  ;;  %v5266_v2 = vld [vmem:[%s5257_s23 + $0x40] sm:$0x3] }
  0x12   : > { %v339_v3 = vrot.slane %v5260_v0, 1  ;;  %v340_v4 = vrot.slane %v5263_v1, 1  ;;  %v342_v5 = vrot.slane %v5266_v2, 1  ;;  %v5272_v6 = vld [vmem:[%s5257_s23] sm:$0xff]  ;;  %v5275_v7 = vld [vmem:[%s5257_s23 + $0x8] sm:$0xff]  ;;  %v5286_v12 = vld [vmem:[%s5257_s23 + $0x50] sm:$0xff] }
  0x13   : > { %v5278_v8 = vld [vmem:[%s5257_s23 + $0x48] sm:$0xff]  ;;  %v5281_v9 = vld [vmem:[%s5257_s23 + $0x10] sm:$0x3]  ;;  %v329_v10 = vrot.slane %v5272_v6, 1  ;;  %v330_v11 = vrot.slane %v5275_v7, 1  ;;  %v5300_v18 = vld [vmem:[%s5257_s23 + $0x18] sm:$0xff] }
  0x14   : > { %v344_v13 = vrot.slane %v5278_v8, 1  ;;  %v5290_v14 = vsel %vm328_vm0, %v339_v3, %v340_v4  ;;  %v5293_v15 = vsel %vm328_vm0, %v340_v4, %v342_v5  ;;  %v332_v16 = vrot.slane %v5281_v9, 1  ;;  %v5297_v17 = vld [vmem:[%s5257_s23 + $0x58] sm:$0x3]  ;;  %v5303_v19 = vld [vmem:[%s5257_s23 + $0x20] sm:$0xff]  ;;  %v5341_v37 = vld [vmem:[%s5257_s23 + $0x68] sm:$0xff] }
  0x15   : > { %8691 = vst [vmem:[#allocation3_spill] sm:$0xff] %v5290_v14  ;;  %8692 = vst [vmem:[#allocation4_spill] sm:$0xff] %v5293_v15  ;;  %v5307_v20 = vpack.i.bf16 %v5293_v15, %v5290_v14  ;;  %v331_v21 = vsel %vm328_vm0, %v329_v10, %v330_v11  ;;  %v345_v22 = vrot.slane %v5286_v12, 1  ;;  %v347_v23 = vrot.slane %v5297_v17, 1  ;;  %v5313_v24 = vld [vmem:[%s5257_s23 + $0x28] sm:$0x3] }
  0x16   : > { %v5316_v25 = vld [vmem:[%s5257_s23 + $0x78] sm:$0xff]  ;;  %v5319_v26 = vld [vmem:[%s5257_s23 + $0x80] sm:$0xff]  ;;  %v333_v27 = vsel %vm328_vm0, %v330_v11, %v332_v16  ;;  %v334_v28 = vrot.slane %v5300_v18, 1  ;;  %v335_v29 = vrot.slane %v5303_v19, 1  ;;  %v337_v30 = vrot.slane %v5313_v24, 1  ;;  %v5347_v39 = vld [vmem:[%s5257_s23 + $0xa8] sm:$0xff] }
  0x17   : > { %8693 = vst [vmem:[#allocation5_spill] sm:$0xff] %v5307_v20  ;;  %v5326_v31 = vld [vmem:[%s5257_s23 + $0x88] sm:$0x3]  ;;  %v5329_v32 = vld [vmem:[%s5257_s23 + $0x60] sm:$0xff]  ;;  %3861 = vrot.lane.b32.xlu1 %v5307_v20, %s5204_s24  ;;  %v3850_v33 = vpack.i.bf16 %v333_v27, %v331_v21  ;;  %v5334_v34 = vsel %vm328_vm0, %v344_v13, %v345_v22  ;;  %v5337_v35 = vsel %vm328_vm0, %v345_v22, %v347_v23  ;;  %v354_v36 = vrot.slane %v5316_v25, 1  ;;  %v5361_v44 = vld [vmem:[%s5257_s23 + $0xb0] sm:$0xff] }
  0x18   : > { %8694 = vst [vmem:[#allocation6_spill] sm:$0xff] %v5334_v34  ;;  %8695 = vst [vmem:[#allocation7_spill] sm:$0xff] %v5337_v35  ;;  %v5344_v38 = vld [vmem:[%s5257_s23 + $0x70] sm:$0x3]  ;;  %v5351_v40 = vpack.i.bf16 %v5337_v35, %v5334_v34  ;;  %v5354_v41 = vsel %vm328_vm0, %v334_v28, %v335_v29  ;;  %v5357_v42 = vsel %vm328_vm0, %v335_v29, %v337_v30  ;;  %v355_v43 = vrot.slane %v5319_v26, 1  ;;  %v5378_v51 = vld [vmem:[%s5257_s23 + $0x98] sm:$0xff] }
  0x19   : > { %8697 = vst [vmem:[#allocation9_spill] sm:$0xff] %v5354_v41  ;;  %8698 = vst [vmem:[#allocation10_spill] sm:$0xff] %v5357_v42  ;;  %v5364_v45 = vld [vmem:[%s5257_s23 + $0xb8] sm:$0x3]  ;;  %v5367_v46 = vld [vmem:[%s5257_s23 + $0x90] sm:$0xff]  ;;  %3851 = vrot.lane.b32.xlu0 %v3850_v33, %s5204_s24  ;;  %v5372_v47 = vpack.i.bf16 %v5357_v42, %v5354_v41  ;;  %v357_v48 = vrot.slane %v5326_v31, 1 }
  0x1a   : > { %8696 = vst [vmem:[#allocation8_spill] sm:$0xff] %v5351_v40  ;;  %v349_v49 = vrot.slane %v5329_v32, 1  ;;  %v350_v50 = vrot.slane %v5341_v37, 1  ;;  %v5381_v52 = vsel %vm328_vm0, %v354_v36, %v355_v43  ;;  %v352_v53 = vrot.slane %v5344_v38, 1  ;;  %v5387_v56 = vld [vmem:[%s5257_s23 + $0xa0] sm:$0x3] }
  0x1b   : > { %8699 = vst [vmem:[#allocation11_spill] sm:$0xff] %v5372_v47  ;;  %8700 = vst [vmem:[#allocation12_spill] sm:$0xff] %v5381_v52  ;;  %v364_v54 = vrot.slane %v5347_v39, 1  ;;  %v365_v55 = vrot.slane %v5361_v44, 1  ;;  %v5390_v57 = vld [vmem:[%s5257_s23 + $0xd8] sm:$0xff]  ;;  %3866 = vrot.lane.b32.xlu1 %v5351_v40, %s5204_s24  ;;  %v5395_v58 = vsel %vm328_vm0, %v355_v43, %v357_v48  ;;  %v367_v60 = vrot.slane %v5364_v45, 1 }
  0x1c   : > { %8701 = vst [vmem:[#allocation13_spill] sm:$0xff] %v5395_v58  ;;  %v5398_v59 = vsel %vm328_vm0, %v349_v49, %v350_v50  ;;  %v359_v61 = vrot.slane %v5367_v46, 1  ;;  %v5403_v62 = vld [vmem:[%s5257_s23 + $0xe0] sm:$0xff]  ;;  %v5406_v63 = vld [vmem:[%s5257_s23 + $0xe8] sm:$0x3]  ;;  %v5410_v3 = vpack.i.bf16 %v5395_v58, %v5381_v52  ;;  %v5413_v4 = vsel %vm328_vm0, %v350_v50, %v352_v53  ;;  %v5452_v43 = vld [vmem:[%s5257_s23 + $0x110] sm:$0xff] }
  0x1d   : > { %8702 = vst [vmem:[#allocation14_spill] sm:$0xff] %v5398_v59  ;;  %8704 = vst [vmem:[#allocation16_spill] sm:$0xff] %v5413_v4  ;;  %v5416_v5 = vsel %vm328_vm0, %v364_v54, %v365_v55  ;;  %v360_v10 = vrot.slane %v5378_v51, 1  ;;  %v5420_v11 = vld [vmem:[%s5257_s23 + $0xc0] sm:$0xff]  ;;  %v5423_v13 = vld [vmem:[%s5257_s23 + $0xc8] sm:$0xff]  ;;  %3856 = vrot.lane.b32.xlu0 %v5372_v47, %s5204_s24  ;;  %v5432_v21 = vpack.i.bf16 %v5413_v4, %v5398_v59  ;;  %v362_v23 = vrot.slane %v5387_v56, 1 }
  0x1e   : > { %8703 = vst [vmem:[#allocation15_spill] sm:$0xff] %v5410_v3  ;;  %8705 = vst [vmem:[#allocation17_spill] sm:$0xff] %v5416_v5  ;;  %v5426_v16 = vld [vmem:[%s5257_s23 + $0xd0] sm:$0x3]  ;;  %v5435_v22 = vsel %vm328_vm0, %v365_v55, %v367_v60  ;;  %v374_v27 = vrot.slane %v5390_v57, 1  ;;  %v5440_v28 = vld [vmem:[%s5257_s23 + $0x108] sm:$0xff] }
  0x1f   : > { %8706 = vst [vmem:[#allocation18_spill] sm:$0xff] %v5432_v21  ;;  %8707 = vst [vmem:[#allocation19_spill] sm:$0xff] %v5435_v22  ;;  %v5444_v29 = vpack.i.bf16 %v5435_v22, %v5416_v5  ;;  %v5447_v30 = vsel %vm328_vm0, %v359_v61, %v360_v10  ;;  %v375_v33 = vrot.slane %v5403_v62, 1  ;;  %v377_v36 = vrot.slane %v5406_v63, 1  ;;  %v5455_v48 = vld [vmem:[%s5257_s23 + $0x118] sm:$0x3]  ;;  %3876 = vrot.lane.b32.xlu1 %v5410_v3, %s5204_s24 }
  0x20   : > { %8709 = vst [vmem:[#allocation21_spill] sm:$0xff] %v5447_v30  ;;  %v5460_v49 = vsel %vm328_vm0, %v360_v10, %v362_v23  ;;  %v369_v50 = vrot.slane %v5420_v11, 1  ;;  %v370_v53 = vrot.slane %v5423_v13, 1  ;;  %v372_v54 = vrot.slane %v5426_v16, 1  ;;  %v5466_v55 = vld [vmem:[%s5257_s23 + $0xf0] sm:$0xff]  ;;  %v5469_v60 = vld [vmem:[%s5257_s23 + $0xf8] sm:$0xff] }
  0x21   : > { %8708 = vst [vmem:[#allocation20_spill] sm:$0xff] %v5444_v29  ;;  %8710 = vst [vmem:[#allocation22_spill] sm:$0xff] %v5460_v49  ;;  %v5472_v61 = vsel %vm328_vm0, %v374_v27, %v375_v33  ;;  %v5475_v22 = vsel %vm328_vm0, %v375_v33, %v377_v36  ;;  %v384_v10 = vrot.slane %v5440_v28, 1  ;;  %v5479_v23 = vld [vmem:[%s5257_s23 + $0x100] sm:$0x3]  ;;  %3871 = vrot.lane.b32.xlu0 %v5432_v21, %s5204_s24  ;;  %v385_v33 = vrot.slane %v5452_v43, 1 }
  0x22   : > { %8711 = vst [vmem:[#allocation23_spill] sm:$0xff] %v5472_v61  ;;  %8712 = vst [vmem:[#allocation24_spill] sm:$0xff] %v5475_v22  ;;  %v5485_v5 = vpack.i.bf16 %v5460_v49, %v5447_v30  ;;  %v5488_v27 = vsel %vm328_vm0, %v369_v50, %v370_v53  ;;  %v5492_v36 = vld [vmem:[%s5257_s23 + $0x138] sm:$0xff]  ;;  %v5495_v58 = vld [vmem:[%s5257_s23 + $0x140] sm:$0xff]  ;;  %v5501_v35 = vsel %vm328_vm0, %v370_v53, %v372_v54  ;;  %v387_v49 = vrot.slane %v5455_v48, 1 }
  0x23   : > { %8714 = vst [vmem:[#allocation26_spill] sm:$0xff] %v5488_v27  ;;  %v5498_v52 = vld [vmem:[%s5257_s23 + $0x148] sm:$0x3]  ;;  %8715 = vst [vmem:[#allocation27_spill] sm:$0xff] %v5501_v35  ;;  %v379_v30 = vrot.slane %v5466_v55, 1  ;;  %v380_v50 = vrot.slane %v5469_v60, 1  ;;  %3886 = vrot.lane.b32.xlu1 %v5444_v29, %s5204_s24  ;;  %v5510_v4 = vpack.i.bf16 %v5475_v22, %v5472_v61  ;;  %v5513_v34 = vsel %vm328_vm0, %v384_v10, %v385_v33 }
  0x24   : > { %8713 = vst [vmem:[#allocation25_spill] sm:$0xff] %v5485_v5  ;;  %8717 = vst [vmem:[#allocation29_spill] sm:$0xff] %v5513_v34  ;;  %v382_v53 = vrot.slane %v5479_v23, 1  ;;  %v5517_v54 = vld [vmem:[%s5257_s23 + $0x120] sm:$0xff]  ;;  %v5520_v59 = vld [vmem:[%s5257_s23 + $0x128] sm:$0xff]  ;;  %v5526_v15 = vsel %vm328_vm0, %v385_v33, %v387_v49  ;;  %v394_v41 = vrot.slane %v5492_v36, 1  ;;  %v5541_v29 = vpack.i.bf16 %v5501_v35, %v5488_v27 }
  0x25   : > { %8716 = vst [vmem:[#allocation28_spill] sm:$0xff] %v5510_v4  ;;  %8718 = vst [vmem:[#allocation30_spill] sm:$0xff] %v5520_v59  ;;  %v5523_v42 = vld [vmem:[%s5257_s23 + $0x130] sm:$0x3]  ;;  %v395_v22 = vrot.slane %v5495_v58, 1  ;;  %v397_v10 = vrot.slane %v5498_v52, 1  ;;  %3881 = vrot.lane.b32.xlu0 %v5485_v5, %s5204_s24  ;;  %v5544_v49 = vsel %vm328_vm0, %v379_v30, %v380_v50  ;;  %v5565_v30 = vpack.i.bf16 %v5526_v15, %v5513_v34 }
  0x26   : > { %8719 = vst [vmem:[#allocation31_spill] sm:$0xff] %v5523_v42  ;;  %8720 = vst [vmem:[#allocation32_spill] sm:$0xff] %v5526_v15  ;;  %v5532_v61 = vld [vmem:[%s5257_s23 + $0x168] sm:$0xff]  ;;  %v5535_v14 = vld [vmem:[%s5257_s23 + $0x170] sm:$0xff]  ;;  %v5550_v3 = vsel %vm328_vm0, %v380_v50, %v382_v53  ;;  %v389_v40 = vrot.slane %v5517_v54, 1  ;;  %v390_v21 = vrot.slane %v5520_v59, 1 }
  0x27   : > { %8721 = vst [vmem:[#allocation33_spill] sm:$0xff] %v5535_v14  ;;  %8722 = vst [vmem:[#allocation34_spill] sm:$0xff] %v5544_v49  ;;  %v5547_v33 = vld [vmem:[%s5257_s23 + $0x178] sm:$0x3]  ;;  %v392_v47 = vrot.slane %v5523_v42, 1  ;;  %v5556_v20 = vld [vmem:[%s5257_s23 + $0x150] sm:$0xff]  ;;  %3896 = vrot.lane.b32.xlu1 %v5510_v4, %s5204_s24  ;;  %v5573_v27 = vsel %vm328_vm0, %v394_v41, %v395_v22  ;;  %v5576_v42 = vsel %vm328_vm0, %v395_v22, %v397_v10 }
  0x28   : > { %8723 = vst [vmem:[#allocation35_spill] sm:$0xff] %v5550_v3  ;;  %v5559_v5 = vld [vmem:[%s5257_s23 + $0x158] sm:$0xff]  ;;  %8724 = vst [vmem:[#allocation36_spill] sm:$0xff] %v5565_v30  ;;  %v404_v50 = vrot.slane %v5532_v61, 1  ;;  %v405_v53 = vrot.slane %v5535_v14, 1  ;;  %v407_v59 = vrot.slane %v5547_v33, 1  ;;  %v5583_v15 = vpack.i.bf16 %v5550_v3, %v5544_v49 }
  0x29   : > { %v5570_v35 = vld [vmem:[%s5257_s23 + $0x160] sm:$0x3]  ;;  %8725 = vst [vmem:[#allocation37_spill] sm:$0xff] %v5573_v27  ;;  %8726 = vst [vmem:[#allocation38_spill] sm:$0xff] %v5576_v42  ;;  %3891 = vrot.lane.b32.xlu0 %v5541_v29, %s5204_s24  ;;  %v399_v34 = vrot.slane %v5556_v20, 1  ;;  %v400_v4 = vrot.slane %v5559_v5, 1  ;;  %v5588_v14 = vsel %vm328_vm0, %v389_v40, %v390_v21  ;;  %v5591_v41 = vsel %vm328_vm0, %v390_v21, %v392_v47 }
  0x2a   : > { %8727 = vst [vmem:[#allocation39_spill] sm:$0xff] %v5583_v15  ;;  %8728 = vst [vmem:[#allocation40_spill] sm:$0xff] %v5588_v14  ;;  %v402_v22 = vrot.slane %v5570_v35, 1  ;;  %v509_v10 = vrot.slane %v5281_v9, 2  ;;  %v5599_v3 = vpack.i.bf16 %v5576_v42, %v5573_v27  ;;  %v5602_v49 = vsel %vm328_vm0, %v404_v50, %v405_v53 }
  0x2b   : > { %8729 = vst [vmem:[#allocation41_spill] sm:$0xff] %v5591_v41  ;;  %3906 = vrot.lane.b32.xlu1 %v5565_v30, %s5204_s24  ;;  %8730 = vst [vmem:[#allocation42_spill] sm:$0xff] %v5602_v49  ;;  %v5605_v40 = vsel %vm328_vm0, %v405_v53, %v407_v59  ;;  %v511_v47 = vrot.slane %v5300_v18, 2  ;;  %v512_v21 = vrot.slane %v5303_v19, 2  ;;  %v514_v9 = vrot.slane %v5313_v24, 2 }
  0x2c   : > { %8731 = vst [vmem:[#allocation43_spill] sm:$0xff] %v5605_v40  ;;  %v5614_v42 = vpack.i.bf16 %v5591_v41, %v5588_v14  ;;  %v5617_v50 = vsel %vm328_vm0, %v399_v34, %v400_v4  ;;  %v506_v27 = vrot.slane %v5272_v6, 2  ;;  %v507_v59 = vrot.slane %v5275_v7, 2 }
  0x2d   : > { %3901 = vrot.lane.b32.xlu0 %v5583_v15, %s5204_s24  ;;  %8732 = vst [vmem:[#allocation44_spill] sm:$0xff] %v5617_v50  ;;  %v5622_v53 = vsel %vm328_vm0, %v400_v4, %v402_v22  ;;  %v521_v30 = vrot.slane %v5278_v8, 2  ;;  %v522_v24 = vrot.slane %v5286_v12, 2  ;;  %v524_v15 = vrot.slane %v5297_v17, 2 }
  0x2e   : > { %8733 = vst [vmem:[#allocation45_spill] sm:$0xff] %v5622_v53  ;;  %v5631_v34 = vpack.i.bf16 %v5605_v40, %v5602_v49  ;;  %v513_v6 = vsel %vm505_vm1, %v511_v47, %v512_v21  ;;  %v515_v7 = vsel %vm505_vm1, %v512_v21, %v514_v9  ;;  %v5639_v4 = vpack.i.bf16 %v5622_v53, %v5617_v50 }
  0x2f   : > { %3916 = vrot.lane.b32.xlu1 %v5599_v3, %s5204_s24  ;;  %v508_v17 = vsel %vm505_vm1, %v506_v27, %v507_v59  ;;  %v510_v22 = vsel %vm505_vm1, %v507_v59, %v509_v10  ;;  %v516_v41 = vrot.slane %v5260_v0, 2  ;;  %v523_v40 = vsel %vm505_vm1, %v521_v30, %v522_v24 }
  0x30   : > { %v525_v49 = vsel %vm505_vm1, %v522_v24, %v524_v15  ;;  %v517_v47 = vrot.slane %v5263_v1, 2  ;;  %v519_v21 = vrot.slane %v5266_v2, 2  ;;  %v5650_v9 = vpack.i.bf16 %v515_v7, %v513_v6 }
  0x31   : > { %3911 = vrot.lane.b32.xlu0 %v5614_v42, %s5204_s24  ;;  %v531_v53 = vrot.slane %v5316_v25, 2  ;;  %v532_v27 = vrot.slane %v5319_v26, 2  ;;  %v534_v10 = vrot.slane %v5326_v31, 2  ;;  %v3930_v30 = vpack.i.bf16 %v510_v22, %v508_v17 }
  0x32   : > { %v5657_v15 = vpack.i.bf16 %v525_v49, %v523_v40  ;;  %v526_v59 = vrot.slane %v5329_v32, 2  ;;  %v518_v2 = vsel %vm505_vm1, %v516_v41, %v517_v47  ;;  %v520_v24 = vsel %vm505_vm1, %v517_v47, %v519_v21 }
  0x33   : > { %3926 = vrot.lane.b32.xlu1 %v5631_v34, %s5204_s24  ;;  %v527_v6 = vrot.slane %v5341_v37, 2  ;;  %v529_v7 = vrot.slane %v5344_v38, 2  ;;  %v533_v31 = vsel %vm505_vm1, %v531_v53, %v532_v27  ;;  %v535_v17 = vsel %vm505_vm1, %v532_v27, %v534_v10 }
  0x34   : > { %v541_v49 = vrot.slane %v5347_v39, 2  ;;  %v542_v40 = vrot.slane %v5361_v44, 2  ;;  %v544_v41 = vrot.slane %v5364_v45, 2  ;;  %v536_v22 = vrot.slane %v5367_v46, 2 }
  0x35   : > { %3921 = vrot.lane.b32.xlu0 %v5639_v4, %s5204_s24  ;;  %v537_v47 = vrot.slane %v5378_v51, 2  ;;  %v539_v38 = vrot.slane %v5387_v56, 2  ;;  %v5675_v21 = vpack.i.bf16 %v520_v24, %v518_v2  ;;  %v528_v53 = vsel %vm505_vm1, %v526_v59, %v527_v6 }
  0x36   : > { %v530_v27 = vsel %vm505_vm1, %v527_v6, %v529_v7  ;;  %v5681_v10 = vpack.i.bf16 %v535_v17, %v533_v31  ;;  %v543_v45 = vsel %vm505_vm1, %v541_v49, %v542_v40  ;;  %v551_v50 = vrot.slane %v5390_v57, 2 }
  0x37   : > { %3936 = vrot.lane.b32.xlu1 %v5650_v9, %s5205_s25  ;;  %v552_v14 = vrot.slane %v5403_v62, 2  ;;  %v545_v56 = vsel %vm505_vm1, %v542_v40, %v544_v41  ;;  %v540_v2 = vsel %vm505_vm1, %v537_v47, %v539_v38  ;;  %v554_v59 = vrot.slane %v5406_v63, 2 }
  0x38   : > { %v5692_v24 = vpack.i.bf16 %v530_v27, %v528_v53  ;;  %v546_v6 = vrot.slane %v5420_v11, 2  ;;  %v547_v7 = vrot.slane %v5423_v13, 2  ;;  %v549_v31 = vrot.slane %v5426_v16, 2 }
  0x39   : > { %3931 = vrot.lane.b32.xlu0 %v3930_v30, %s5205_s25  ;;  %v538_v30 = vsel %vm505_vm1, %v536_v22, %v537_v47  ;;  %v5699_v17 = vpack.i.bf16 %v545_v56, %v543_v45  ;;  %v553_v63 = vsel %vm505_vm1, %v551_v50, %v552_v14  ;;  %v555_v40 = vsel %vm505_vm1, %v552_v14, %v554_v59 }
  0x3a   : > { %v5701_v49 = vpack.i.bf16 %v540_v2, %v538_v30  ;;  %v561_v41 = vrot.slane %v5440_v28, 2  ;;  %v562_v22 = vrot.slane %v5452_v43, 2  ;;  %v564_v47 = vrot.slane %v5455_v48, 2 }
  0x3b   : > { %3946 = vrot.lane.b32.xlu1 %v5657_v15, %s5205_s25  ;;  %8734 = vst [vmem:[#allocation46_spill] sm:$0xff] %v5699_v17  ;;  %v548_v16 = vsel %vm505_vm1, %v546_v6, %v547_v7  ;;  %v550_v38 = vsel %vm505_vm1, %v547_v7, %v549_v31  ;;  %v556_v53 = vrot.slane %v5466_v55, 2  ;;  %v557_v27 = vrot.slane %v5469_v60, 2  ;;  %v8735_v7 = vld [vmem:[#allocation30_spill] sm:$0xff] }
  0x3c   : > { %v559_v50 = vrot.slane %v5479_v23, 2  ;;  %v571_v14 = vrot.slane %v5492_v36, 2  ;;  %v572_v45 = vrot.slane %v5495_v58, 2  ;;  %v574_v56 = vrot.slane %v5498_v52, 2 }
  0x3d   : > { %3941 = vrot.lane.b32.xlu0 %v5675_v21, %s5205_s25  ;;  %v5720_v48 = vpack.i.bf16 %v555_v40, %v553_v63  ;;  %v563_v30 = vsel %vm505_vm1, %v561_v41, %v562_v22  ;;  %v565_v2 = vsel %vm505_vm1, %v562_v22, %v564_v47  ;;  %v5726_v59 = vpack.i.bf16 %v550_v38, %v548_v16  ;;  %v8736_v41 = vld [vmem:[#allocation31_spill] sm:$0xff]  ;;  %v8737_v16 = vld [vmem:[#allocation33_spill] sm:$0xff] }
  0x3e   : > { %v558_v23 = vsel %vm505_vm1, %v556_v53, %v557_v27  ;;  %v566_v6 = vrot.slane %v5517_v54, 2  ;;  %v567_v52 = vrot.slane %v8735_v7, 2  ;;  %v560_v31 = vsel %vm505_vm1, %v557_v27, %v559_v50 }
  0x3f   : > { %3956 = vrot.lane.b32.xlu1 %v5681_v10, %s5205_s25  ;;  %v573_v63 = vsel %vm505_vm1, %v571_v14, %v572_v45  ;;  %v575_v40 = vsel %vm505_vm1, %v572_v45, %v574_v56  ;;  %v5737_v22 = vpack.i.bf16 %v565_v2, %v563_v30  ;;  %v581_v47 = vrot.slane %v5532_v61, 2 }
  0x40   : > { %v582_v38 = vrot.slane %v8737_v16, 2  ;;  %v584_v53 = vrot.slane %v5547_v33, 2  ;;  %v5744_v27 = vpack.i.bf16 %v560_v31, %v558_v23  ;;  %v5746_v50 = vpack.i.bf16 %v575_v40, %v573_v63  ;;  %v5767_v63 = vld [vmem:[%s5257_s23 + $0x188] sm:$0xff] }
  0x41   : > { %3951 = vrot.lane.b32.xlu0 %v5692_v24, %s5205_s25  ;;  %v568_v14 = vsel %vm505_vm1, %v566_v6, %v567_v52  ;;  %v576_v45 = vrot.slane %v5556_v20, 2  ;;  %v577_v30 = vrot.slane %v5559_v5, 2  ;;  %v579_v33 = vrot.slane %v5570_v35, 2  ;;  %v5770_v35 = vld [vmem:[%s5257_s23 + $0x190] sm:$0x3] }
  0x42   : > { %v583_v2 = vsel %vm505_vm1, %v581_v47, %v582_v38  ;;  %v585_v23 = vsel %vm505_vm1, %v582_v38, %v584_v53  ;;  %v883_v47 = vrot.slane %v5767_v63, 2  ;;  %v885_v38 = vrot.slane %v5770_v35, 2 }
  0x43   : > { %3966 = vrot.lane.b32.xlu1 %v5699_v17, %s5205_s25  ;;  %v569_v17 = vrot.slane %v8736_v41, 2  ;;  %v578_v6 = vsel %vm505_vm1, %v576_v45, %v577_v30  ;;  %v5774_v40 = vpack.i.bf16 %v585_v23, %v583_v2  ;;  %v5805_v23 = vpack.i.bf16 %v5341_v37, %v5329_v32 }
  0x44   : > { %v886_v45 = vsel %vm505_vm1, %v883_v47, %v885_v38  ;;  %v5858_v32 = vpack.i.bf16 %v5452_v43, %v5440_v28  ;;  %v5864_v37 = vpack.i.bf16 %v5559_v5, %v5556_v20  ;;  %v8738_v20 = vld [vmem:[#allocation5_spill] sm:$0xff]  ;;  %v8744_v5 = vld [vmem:[#allocation20_spill] sm:$0xff]  ;;  %v782_v28 = vrot.slane %v5767_v63, 1 }
  0x45   : > { %3961 = vrot.lane.b32.xlu0 %v5701_v49, %s5205_s25  ;;  %v570_v56 = vsel %vm505_vm1, %v567_v52, %v569_v17  ;;  %v580_v17 = vsel %vm505_vm1, %v577_v30, %v579_v33  ;;  %v5764_v52 = vld [vmem:[%s5257_s23 + $0x180] sm:$0xff]  ;;  %v5791_v30 = vpack.i.bf16 %v5263_v1, %v5260_v0  ;;  %v4010_v33 = vpack.i.bf16 %v5303_v19, %v5300_v18 }
  0x46   : > { %v5759_v31 = vpack.i.bf16 %v570_v56, %v568_v14  ;;  %v882_v41 = vrot.slane %v5764_v52, 2  ;;  %v5781_v53 = vpack.i.bf16 %v580_v17, %v578_v6  ;;  %v5799_v2 = vpack.i.bf16 %v5767_v63, %v5764_v52 }
  0x47   : > { %3976 = vrot.lane.b32.xlu1 %v5720_v48, %s5205_s25  ;;  %v5810_v0 = vpack.i.bf16 %v5286_v12, %v5278_v8  ;;  %v5816_v1 = vpack.i.bf16 %v5378_v51, %v5367_v46  ;;  %v5822_v18 = vpack.i.bf16 %v5319_v26, %v5316_v25  ;;  %v5828_v8 = vpack.i.bf16 %v5423_v13, %v5420_v11  ;;  %v8739_v46 = vld [vmem:[#allocation11_spill] sm:$0xff]  ;;  %v8740_v51 = vld [vmem:[#allocation18_spill] sm:$0xff] }
  0x48   : > { %v884_v14 = vsel %vm505_vm1, %v882_v41, %v883_v47  ;;  %v5834_v12 = vpack.i.bf16 %v5361_v44, %v5347_v39  ;;  %v5840_v19 = vpack.i.bf16 %v5469_v60, %v5466_v55  ;;  %v5846_v25 = vpack.i.bf16 %v5403_v62, %v5390_v57  ;;  %v8741_v57 = vld [vmem:[#allocation8_spill] sm:$0xff]  ;;  %v8743_v62 = vld [vmem:[#allocation15_spill] sm:$0xff] }
  0x49   : > { %3971 = vrot.lane.b32.xlu0 %v5726_v59, %s5205_s25  ;;  %v5785_v56 = vpack.i.bf16 %v886_v45, %v884_v14  ;;  %v5852_v26 = vpack.i.bf16 %v8735_v7, %v5517_v54  ;;  %v5870_v39 = vpack.i.bf16 %v5495_v58, %v5492_v36  ;;  %v5878_v44 = vpack.i.bf16 %v8737_v16, %v5532_v61  ;;  %v8742_v58 = vld [vmem:[#allocation25_spill] sm:$0xff]  ;;  %v8745_v11 = vld [vmem:[#allocation39_spill] sm:$0xff]  ;;  %v8746_v55 = vld [vmem:[#allocation28_spill] sm:$0xff] }
  0x4a   : > { %v781_v13 = vrot.slane %v5764_v52, 1  ;;  %v784_v43 = vrot.slane %v5770_v35, 1  ;;  %v8749_v7 = vld [vmem:[#allocation36_spill] sm:$0xff] }
  0x4b   : > { %3986 = vrot.lane.b32.xlu1 %v5737_v22, %s5205_s25 }
  0x4c   : > { %v5914_v36 = vsel %vm328_vm0, %v781_v13, %v782_v28  ;;  %v5917_v54 = vsel %vm328_vm0, %v782_v28, %v784_v43 }
  0x4d   : > { %3981 = vrot.lane.b32.xlu0 %v5744_v27, %s5205_s25  ;;  %8747 = vst [vmem:[#allocation30_spill] sm:$0xff] %v5914_v36  ;;  %8748 = vst [vmem:[#allocation31_spill] sm:$0xff] %v5917_v54  ;;  %v5929_v17 = vpack.i.bf16 %v5917_v54, %v5914_v36 }
  0x4f   : > { %3996 = vrot.lane.b32.xlu1 %v5746_v50, %s5205_s25 }
  0x51   : > { %3991 = vrot.lane.b32.xlu0 %v5759_v31, %s5205_s25 }
  0x53   : > { %4006 = vrot.lane.b32.xlu1 %v5774_v40, %s5205_s25 }
  0x55   : > { %4001 = vrot.lane.b32.xlu0 %v5781_v53, %s5205_s25 }
  0x57   : > { %4016 = vrot.lane.b32.xlu1 %v5791_v30, %s5206_s26 }
  0x59   : > { %4011 = vrot.lane.b32.xlu0 %v4010_v33, %s5206_s26 }
  0x5b   : > { %4026 = vrot.lane.b32.xlu1 %v5805_v23, %s5206_s26 }
  0x5d   : > { %4021 = vrot.lane.b32.xlu0 %v5810_v0, %s5206_s26 }
  0x5f   : > { %4036 = vrot.lane.b32.xlu1 %v5816_v1, %s5206_s26 }
  0x61   : > { %4031 = vrot.lane.b32.xlu0 %v5822_v18, %s5206_s26 }
  0x63   : > { %4046 = vrot.lane.b32.xlu1 %v5828_v8, %s5206_s26 }
  0x65   : > { %4041 = vrot.lane.b32.xlu0 %v5834_v12, %s5206_s26 }
  0x67   : > { %4056 = vrot.lane.b32.xlu1 %v5840_v19, %s5206_s26 }
  0x69   : > { %4051 = vrot.lane.b32.xlu0 %v5846_v25, %s5206_s26 }
  0x6b   : > { %4066 = vrot.lane.b32.xlu1 %v5852_v26, %s5206_s26 }
  0x6d   : > { %4061 = vrot.lane.b32.xlu0 %v5858_v32, %s5206_s26 }
  0x6f   : > { %4076 = vrot.lane.b32.xlu1 %v5864_v37, %s5206_s26 }
  0x71   : > { %4071 = vrot.lane.b32.xlu0 %v5870_v39, %s5206_s26 }
  0x73   : > { %4086 = vrot.lane.b32.xlu1 %v5799_v2, %s5206_s26 }
  0x75   : > { %4081 = vrot.lane.b32.xlu0 %v5878_v44, %s5206_s26 }
  0x77   : > { %4096 = vrot.lane.b32.xlu1 %v8738_v20, %s5207_s27 }
  0x79   : > { %4091 = vrot.lane.b32.xlu0 %v8739_v46, %s5207_s27  ;;  %v8750_v46 = vld [vmem:[#allocation46_spill] sm:$0xff] }
  0x7b   : > { %4106 = vrot.lane.b32.xlu1 %v8740_v51, %s5207_s27 }
  0x7d   : > { %4101 = vrot.lane.b32.xlu0 %v8741_v57, %s5207_s27 }
  0x7f   : > { %4116 = vrot.lane.b32.xlu1 %v8742_v58, %s5207_s27 }
  0x81   : > { %4111 = vrot.lane.b32.xlu0 %v8743_v62, %s5207_s27 }
  0x83   : > { %4126 = vrot.lane.b32.xlu1 %v5541_v29, %s5207_s27 }
  0x85   : > { %4121 = vrot.lane.b32.xlu0 %v8744_v5, %s5207_s27 }
  0x87   : > { %4136 = vrot.lane.b32.xlu1 %v8745_v11, %s5207_s27 }
  0x89   : > { %4131 = vrot.lane.b32.xlu0 %v8746_v55, %s5207_s27  ;;  %v5907_v60 = vpop.permute.xlu1 %3861 }
  0x8b   : > { %v5909_v61 = vpop.permute.xlu0 %3851  ;;  %4146 = vrot.lane.b32.xlu1 %v5614_v42, %s5207_s27 }
  0x8d   : > { %4141 = vrot.lane.b32.xlu0 %v8749_v7, %s5207_s27  ;;  %v5921_v16 = vpop.permute.xlu1 %3866 }
  0x8f   : > { %v5923_v6 = vpop.permute.xlu0 %3856  ;;  %4156 = vrot.lane.b32.xlu1 %v5639_v4, %s5207_s27 }
  0x91   : > { %4151 = vrot.lane.b32.xlu0 %v5599_v3, %s5207_s27  ;;  %v5933_v52 = vpop.permute.xlu1 %3876 }
  0x93   : > { %v5935_v63 = vpop.permute.xlu0 %3871  ;;  %4166 = vrot.lane.b32.xlu1 %v5929_v17, %s5207_s27 }
  0x95   : > { %4161 = vrot.lane.b32.xlu0 %v5631_v34, %s5207_s27  ;;  %v5941_v35 = vpop.permute.xlu1 %3886 }
  0x97   : > { %v5943_v41 = vpop.permute.xlu0 %3881  ;;  %4176 = vrot.lane.b32.xlu1 %v5675_v21, %s5208_s28 }
  0x99   : > { %4171 = vrot.lane.b32.xlu0 %v5650_v9, %s5208_s28  ;;  %v5949_v47 = vpop.permute.xlu1 %3896 }
  0x9b   : > { %v5951_v38 = vpop.permute.xlu0 %3891  ;;  %4186 = vrot.lane.b32.xlu1 %v5692_v24, %s5208_s28 }
  0x9d   : > { %4181 = vrot.lane.b32.xlu0 %v5657_v15, %s5208_s28  ;;  %v5957_v14 = vpop.permute.xlu1 %3906 }
  0x9f   : > { %v5959_v45 = vpop.permute.xlu0 %3901  ;;  %4196 = vrot.lane.b32.xlu1 %v5701_v49, %s5208_s28 }
  0xa1   : > { %4191 = vrot.lane.b32.xlu0 %v5681_v10, %s5208_s28  ;;  %v5965_v9 = vpop.permute.xlu1 %3916 }
  0xa3   : > { %v5967_v33 = vpop.permute.xlu0 %3911  ;;  %4206 = vrot.lane.b32.xlu1 %v5726_v59, %s5208_s28 }
  0xa5   : > { %4201 = vrot.lane.b32.xlu0 %v8750_v46, %s5208_s28  ;;  %v5973_v13 = vpop.permute.xlu1 %3926 }
  0xa6   : > { %8751 = vst [vmem:[#allocation33_spill] sm:$0xff] %v5973_v13 }
  0xa7   : > { %v5975_v28 = vpop.permute.xlu0 %3921  ;;  %4216 = vrot.lane.b32.xlu1 %v5744_v27, %s5208_s28 }
  0xa8   : > { %8752 = vst [vmem:[#allocation5_spill] sm:$0xff] %v5975_v28 }
  0xa9   : > { %4211 = vrot.lane.b32.xlu0 %v5720_v48, %s5208_s28  ;;  %v5981_v43 = vpop.permute.xlu1 %3936 }
  0xaa   : > { %8753 = vst [vmem:[#allocation11_spill] sm:$0xff] %v5981_v43 }
  0xab   : > { %v5983_v54 = vpop.permute.xlu0 %3931  ;;  %4226 = vrot.lane.b32.xlu1 %v5759_v31, %s5208_s28 }
  0xac   : > { %8754 = vst [vmem:[#allocation18_spill] sm:$0xff] %v5983_v54 }
  0xad   : > { %4221 = vrot.lane.b32.xlu0 %v5737_v22, %s5208_s28  ;;  %v5989_v36 = vpop.permute.xlu1 %3946 }
  0xae   : > { %8755 = vst [vmem:[#allocation8_spill] sm:$0xff] %v5989_v36 }
  0xaf   : > { %v5991_v13 = vpop.permute.xlu0 %3941  ;;  %4236 = vrot.lane.b32.xlu1 %v5781_v53, %s5208_s28 }
  0xb1   : > { %4231 = vrot.lane.b32.xlu0 %v5746_v50, %s5208_s28  ;;  %v5997_v28 = vpop.permute.xlu1 %3956 }
  0xb2   : > { %8756 = vst [vmem:[#allocation25_spill] sm:$0xff] %v5997_v28 }
  0xb3   : > { %v5999_v43 = vpop.permute.xlu0 %3951  ;;  %4246 = vrot.lane.b32.xlu1 %v5785_v56, %s5208_s28 }
  0xb4   : > { %8757 = vst [vmem:[#allocation15_spill] sm:$0xff] %v5999_v43 }
  0xb5   : > { %4241 = vrot.lane.b32.xlu0 %v5774_v40, %s5208_s28  ;;  %v6005_v54 = vpop.permute.xlu1 %3966 }
  0xb6   : > { %8758 = vst [vmem:[#allocation20_spill] sm:$0xff] %v6005_v54 }
  0xb7   : > { %v6007_v36 = vpop.permute.xlu0 %3961  ;;  %4256 = vrot.lane.b32.xlu1 %v5810_v0, %s5209_s29 }
  0xb8   : > { %8759 = vst [vmem:[#allocation39_spill] sm:$0xff] %v6007_v36 }
  0xb9   : > { %4251 = vrot.lane.b32.xlu0 %v5791_v30, %s5209_s29  ;;  %v6013_v28 = vpop.permute.xlu1 %3976 }
  0xbb   : > { %v6015_v43 = vpop.permute.xlu0 %3971  ;;  %4266 = vrot.lane.b32.xlu1 %v5822_v18, %s5209_s29 }
  0xbd   : > { %4261 = vrot.lane.b32.xlu0 %v5805_v23, %s5209_s29  ;;  %v6021_v54 = vpop.permute.xlu1 %3986 }
  0xbf   : > { %v6023_v36 = vpop.permute.xlu0 %3981  ;;  %4276 = vrot.lane.b32.xlu1 %v5834_v12, %s5209_s29 }
  0xc1   : > { %4271 = vrot.lane.b32.xlu0 %v5816_v1, %s5209_s29  ;;  %v6029_v30 = vpop.permute.xlu1 %3996 }
  0xc3   : > { %v6031_v0 = vpop.permute.xlu0 %3991  ;;  %4286 = vrot.lane.b32.xlu1 %v5846_v25, %s5209_s29  ;;  %v6052_v25 = vld [vmem:[%s5257_s23 + $0x198] sm:$0xff] }
  0xc5   : > { %4281 = vrot.lane.b32.xlu0 %v5828_v8, %s5209_s29  ;;  %v6037_v23 = vpop.permute.xlu1 %4006  ;;  %v6055_v8 = vld [vmem:[%s5257_s23 + $0x1a0] sm:$0xff] }
  0xc7   : > { %v6039_v18 = vpop.permute.xlu0 %4001  ;;  %4296 = vrot.lane.b32.xlu1 %v5858_v32, %s5209_s29 }
  0xc8   : > { %8760 = vst [vmem:[#allocation28_spill] sm:$0xff] %v6039_v18 }
  0xc9   : > { %4291 = vrot.lane.b32.xlu0 %v5840_v19, %s5209_s29  ;;  %v6045_v1 = vpop.permute.xlu1 %4016  ;;  %v4325_v19 = vpack.i.bf16 %v6055_v8, %v6052_v25 }
  0xcb   : > { %v6047_v12 = vpop.permute.xlu0 %4011  ;;  %4306 = vrot.lane.b32.xlu1 %v5870_v39, %s5209_s29 }
  0xcc   : > { %8761 = vst [vmem:[#allocation36_spill] sm:$0xff] %v6047_v12 }
  0xcd   : > { %4301 = vrot.lane.b32.xlu0 %v5852_v26, %s5209_s29  ;;  %v6059_v18 = vpop.permute.xlu1 %4026 }
  0xcf   : > { %v6061_v32 = vpop.permute.xlu0 %4021  ;;  %4316 = vrot.lane.b32.xlu1 %v5878_v44, %s5209_s29 }
  0xd0   : > { %8762 = vst [vmem:[#allocation46_spill] sm:$0xff] %v6061_v32 }
  0xd1   : > { %4311 = vrot.lane.b32.xlu0 %v5864_v37, %s5209_s29  ;;  %v6069_v39 = vpop.permute.xlu1 %4036  ;;  %v5130_v37 = vld [vmem:[%s8563_s1 + $0x10] ss:$0 sps:$4 sm:$0x33]  }
  0xd2   : > { %3830 = vmatprep.subr.msk.bf16.mxu0 %vm1640_vm2, %v5130_v37 }
  0xd3   : > { %v6071_v12 = vpop.permute.xlu0 %4031  ;;  %4326 = vrot.lane.b32.xlu1 %v4325_v19, %s5209_s29  ;;  %v1642_v19 = vsel %vm1640_vm2, %v5130_v37, 0 }
  0xd4   : > { %8763 = vst [vmem:[#allocation47_spill] sm:$0xff] %v6071_v12  ;;  %3755 = vmatpush3.bf16.msra.mxu0 %v1642_v19  ;;  %v5167_v12 = vld [vmem:[%s5257_s23 + $0x150] sm:$0xff] }
  0xd5   : > { %4321 = vrot.lane.b32.xlu0 %v5799_v2, %s5209_s29  ;;  %v6076_v26 = vpop.permute.xlu1 %4046 }
  0xd6   : > { %8764 = vst [vmem:[#allocation48_spill] sm:$0xff] %v6076_v26 }
  0xd7   : > { %v6078_v32 = vpop.permute.xlu0 %4041  ;;  %4336 = vrot.lane.b32.xlu1 %v8741_v57, %s5210_s30  ;;  %v5131_v57 = vld [vmem:[%s8563_s1 + $0x8] sm:$0xff]  }
  0xd8   : > { %8765 = vst [vmem:[#allocation49_spill] sm:$0xff] %v6078_v32  ;;  %3756 = vmatprep.subr.bf16.mxu0 %v5131_v57 }
  0xd9   : > { %4331 = vrot.lane.b32.xlu0 %v8738_v20, %s5210_s30  ;;  %v6087_v44 = vpop.permute.xlu1 %4056  ;;  %3757 = vmatpush3.bf16.msra.mxu0 %v5131_v57 }
  0xda   : > { %8766 = vst [vmem:[#allocation50_spill] sm:$0xff] %v6087_v44 }
  0xdb   : > { %v6090_v2 = vpop.permute.xlu0 %4051  ;;  %4346 = vrot.lane.b32.xlu1 %v8743_v62, %s5210_s30  ;;  %v5132_v62 = vld [vmem:[%s8563_s1] sm:$0xff]  }
  0xdc   : > { %8767 = vst [vmem:[#allocation51_spill] sm:$0xff] %v6090_v2  ;;  %3758 = vmatprep.subr.bf16.mxu0 %v5132_v62  ;;  %v5165_v2 = vld [vmem:[%s5257_s23 + $0x168] sm:$0xff] }
  0xdd   : > { %4341 = vrot.lane.b32.xlu0 %v8740_v51, %s5210_s30  ;;  %v6100_v20 = vpop.permute.xlu1 %4066  ;;  %3759 = vmatpush3.bf16.msra.mxu0 %v5132_v62 }
  0xde   : > { %8768 = vst [vmem:[#allocation52_spill] sm:$0xff] %v6100_v20  ;;  %v5164_v20 = vld [vmem:[%s5257_s23 + $0x170] sm:$0xff] }
  0xdf   : > { %v6102_v44 = vpop.permute.xlu0 %4061  ;;  %4356 = vrot.lane.b32.xlu1 %v8744_v5, %s5210_s30 }
  0xe0   : > { %8769 = vst [vmem:[#allocation53_spill] sm:$0xff] %v6102_v44 }
  0xe1   : > { %4351 = vrot.lane.b32.xlu0 %v8742_v58, %s5210_s30  ;;  %v6111_v37 = vpop.permute.xlu1 %4076 }
  0xe2   : > { %8770 = vst [vmem:[#allocation54_spill] sm:$0xff] %v6111_v37 }
  0xe3   : > { %v6113_v51 = vpop.permute.xlu0 %4071  ;;  %4366 = vrot.lane.b32.xlu1 %v8746_v55, %s5210_s30 }
  0xe4   : > { %8771 = vst [vmem:[#allocation55_spill] sm:$0xff] %v6113_v51 }
  0xe5   : > { %4361 = vrot.lane.b32.xlu0 %v5541_v29, %s5210_s30  ;;  %v6119_v5 = vpop.permute.xlu1 %4086 }
  0xe6   : > { %8772 = vst [vmem:[#allocation56_spill] sm:$0xff] %v6119_v5 }
  0xe7   : > { %v6121_v19 = vpop.permute.xlu0 %4081  ;;  %4376 = vrot.lane.b32.xlu1 %v5675_v21, %s5211_s12 }
  0xe8   : > { %8773 = vst [vmem:[#allocation57_spill] sm:$0xff] %v6121_v19  ;;  %v8809_v19 = vld [vmem:[#allocation25_spill] sm:$0xff] }
  0xe9   : > { %4371 = vrot.lane.b32.xlu0 %v8745_v11, %s5210_s30  ;;  %v6127_v58 = vpop.permute.xlu1 %4096  ;;  %v3959_v51 = vunpack.i.h.bf16 %v8809_v19  ;;  %v3958_v37 = vunpack.i.l.bf16 %v8809_v19 }
  0xea   : > { %8774 = vst [vmem:[#allocation58_spill] sm:$0xff] %v6127_v58  ;;  %v3944_v58 = vunpack.i.h.bf16 %v5991_v13 }
  0xeb   : > { %v6129_v57 = vpop.permute.xlu0 %4091  ;;  %4386 = vrot.lane.b32.xlu1 %v5692_v24, %s5211_s12 }
  0xec   : > { %8775 = vst [vmem:[#allocation59_spill] sm:$0xff] %v6129_v57 }
  0xed   : > { %4381 = vrot.lane.b32.xlu0 %v5657_v15, %s5211_s12  ;;  %v6135_v29 = vpop.permute.xlu1 %4106 }
  0xee   : > { %8776 = vst [vmem:[#allocation60_spill] sm:$0xff] %v6135_v29  ;;  %v8807_v29 = vld [vmem:[#allocation8_spill] sm:$0xff] }
  0xef   : > { %v6137_v55 = vpop.permute.xlu0 %4101  ;;  %4396 = vrot.lane.b32.xlu1 %v5701_v49, %s5211_s12  ;;  %v3949_v57 = vunpack.i.h.bf16 %v8807_v29 }
  0xf0   : > { %8777 = vst [vmem:[#allocation61_spill] sm:$0xff] %v6137_v55 }
  0xf1   : > { %4391 = vrot.lane.b32.xlu0 %v5681_v10, %s5211_s12  ;;  %v6143_v21 = vpop.permute.xlu1 %4116 }
  0xf2   : > { %8778 = vst [vmem:[#allocation62_spill] sm:$0xff] %v6143_v21 }
  0xf3   : > { %v6145_v11 = vpop.permute.xlu0 %4111  ;;  %4406 = vrot.lane.b32.xlu1 %v5726_v59, %s5211_s12 }
  0xf4   : > { %8779 = vst [vmem:[#allocation63_spill] sm:$0xff] %v6145_v11 }
  0xf5   : > { %4401 = vrot.lane.b32.xlu0 %v8750_v46, %s5211_s12  ;;  %v6151_v15 = vpop.permute.xlu1 %4126 }
  0xf6   : > { %8780 = vst [vmem:[#allocation64_spill] sm:$0xff] %v6151_v15  ;;  %v5151_v15 = vld [vmem:[%s5257_s23 + $0x90] sm:$0xff] }
  0xf7   : > { %v6153_v24 = vpop.permute.xlu0 %4121  ;;  %4416 = vrot.lane.b32.xlu1 %v8749_v7, %s5210_s30  ;;  %v279_v7 = vld [vmem:[%s5257_s23 + $0x1a8] sm:$0x3] }
  0xf8   : > { %8781 = vst [vmem:[#allocation65_spill] sm:$0xff] %v6153_v24 }
  0xf9   : > { %4411 = vrot.lane.b32.xlu0 %v5720_v48, %s5211_s12  ;;  %v6159_v10 = vpop.permute.xlu1 %4136 }
  0xfa   : > { %8782 = vst [vmem:[#allocation66_spill] sm:$0xff] %v6159_v10 }
  0xfb   : > { %v6161_v49 = vpop.permute.xlu0 %4131  ;;  %4426 = vrot.lane.b32.xlu1 %v5737_v22, %s5211_s12  ;;  %v1083_v22 = vrot.slane %v6055_v8, 1 }
  0xfc   : > { %8783 = vst [vmem:[#allocation67_spill] sm:$0xff] %v6161_v49  ;;  %v1186_v49 = vrot.slane %v279_v7, 2 }
  0xfd   : > { %4421 = vrot.lane.b32.xlu0 %v5744_v27, %s5211_s12  ;;  %v6167_v59 = vpop.permute.xlu1 %4146  ;;  %v1082_v27 = vrot.slane %v6052_v25, 1 }
  0xfe   : > { %8784 = vst [vmem:[#allocation68_spill] sm:$0xff] %v6167_v59  ;;  %v1085_v59 = vrot.slane %v279_v7, 1 }
  0xff   : > { %v6169_v46 = vpop.permute.xlu0 %4141  ;;  %4436 = vrot.lane.b32.xlu1 %v5599_v3, %s5210_s30 }
 0x100   : > { %8785 = vst [vmem:[#allocation69_spill] sm:$0xff] %v6169_v46 }
 0x101   : > { %4431 = vrot.lane.b32.xlu0 %v5614_v42, %s5210_s30  ;;  %v6175_v48 = vpop.permute.xlu1 %4156  ;;  %v1184_v42 = vrot.slane %v6055_v8, 2 }
 0x102   : > { %8786 = vst [vmem:[#allocation70_spill] sm:$0xff] %v6175_v48  ;;  %v1086_v48 = vsel %vm328_vm0, %v1083_v22, %v1085_v59 }
 0x103   : > { %v6178_v62 = vpop.permute.xlu0 %4151  ;;  %4446 = vrot.lane.b32.xlu1 %v5746_v50, %s5211_s12  ;;  %v1084_v50 = vsel %vm328_vm0, %v1082_v27, %v1083_v22  ;;  %v3868_v27 = vunpack.i.l.bf16 %v5921_v16 }
 0x104   : > { %8787 = vst [vmem:[#allocation71_spill] sm:$0xff] %v6178_v62  ;;  %v1183_v62 = vrot.slane %v6052_v25, 2  ;;  %v4475_v8 = vpack.i.bf16 %v1086_v48, %v1084_v50  ;;  %v1187_v25 = vsel %vm505_vm1, %v1184_v42, %v1186_v49  ;;  %v3863_v49 = vunpack.i.l.bf16 %v5907_v60 }
 0x105   : > { %4441 = vrot.lane.b32.xlu0 %v5759_v31, %s5211_s12  ;;  %v6186_v3 = vpop.permute.xlu1 %4166  ;;  %v3853_v48 = vunpack.i.l.bf16 %v5909_v61  ;;  %v3879_v50 = vunpack.i.h.bf16 %v5933_v52 }
 0x106   : > { %8788 = vst [vmem:[#allocation72_spill] sm:$0xff] %v6186_v3 }
 0x107   : > { %v6189_v46 = vpop.permute.xlu0 %4161  ;;  %4456 = vrot.lane.b32.xlu1 %v5631_v34, %s5210_s30  ;;  %v1185_v34 = vsel %vm505_vm1, %v1183_v62, %v1184_v42  ;;  %v3869_v62 = vunpack.i.h.bf16 %v5921_v16  ;;  %v3873_v16 = vunpack.i.l.bf16 %v5935_v63 }
 0x108   : > { %8789 = vst [vmem:[#allocation73_spill] sm:$0xff] %v6189_v46  ;;  %v5149_v46 = vld [vmem:[%s5257_s23 + $0xa8] sm:$0xff] }
 0x109   : > { %4451 = vrot.lane.b32.xlu0 %v5639_v4, %s5210_s30  ;;  %v6198_v31 = vpop.permute.xlu1 %4176  ;;  %v4485_v4 = vpack.i.bf16 %v1187_v25, %v1185_v34  ;;  %v5136_v25 = vld [vmem:[%s5257_s23 + $0x38] sm:$0xff] }
 0x10a   : > { %8790 = vst [vmem:[#allocation74_spill] sm:$0xff] %v6198_v31  ;;  %v5148_v31 = vld [vmem:[%s5257_s23 + $0xb0] sm:$0xff] }
 0x10b   : > { %v6200_v3 = vpop.permute.xlu0 %4171  ;;  %4466 = vrot.lane.b32.xlu1 %v5774_v40, %s5211_s12  ;;  %v3864_v40 = vunpack.i.h.bf16 %v5907_v60  ;;  %v3858_v60 = vunpack.i.l.bf16 %v5923_v6 }
 0x10c   : > { %8791 = vst [vmem:[#allocation75_spill] sm:$0xff] %v6200_v3  ;;  %v3918_v3 = vunpack.i.l.bf16 %v5965_v9 }
 0x10d   : > { %4461 = vrot.lane.b32.xlu0 %v5781_v53, %s5211_s12  ;;  %v6208_v59 = vpop.permute.xlu1 %4186  ;;  %v3854_v53 = vunpack.i.h.bf16 %v5909_v61  ;;  %v3878_v61 = vunpack.i.l.bf16 %v5933_v52  ;;  %v5138_v52 = vld [vmem:[%s5257_s23 + $0x8] sm:$0xff] }
 0x10e   : > { %8792 = vst [vmem:[#allocation76_spill] sm:$0xff] %v6208_v59 }
 0x10f   : > { %v6210_v7 = vpop.permute.xlu0 %4181  ;;  %4476 = vrot.lane.b32.xlu1 %v4475_v8, %s5210_s30  ;;  %v3874_v8 = vunpack.i.h.bf16 %v5935_v63  ;;  %v5139_v63 = vld [vmem:[%s5257_s23] sm:$0xff] }
 0x110   : > { %8793 = vst [vmem:[#allocation77_spill] sm:$0xff] %v6210_v7 }
 0x111   : > { %4471 = vrot.lane.b32.xlu0 %v5929_v17, %s5210_s30  ;;  %v6215_v22 = vpop.permute.xlu1 %4196  ;;  %v3859_v17 = vunpack.i.h.bf16 %v5923_v6  ;;  %v5137_v6 = vld [vmem:[%s5257_s23 + $0x30] sm:$0xff] }
 0x112   : > { %8794 = vst [vmem:[#allocation78_spill] sm:$0xff] %v6215_v22  ;;  %v6246_v22 = vsel %vm1284_vm3, %v5138_v52, %v3854_v53  ;;  %v5143_v52 = vld [vmem:[%s5257_s23 + $0x18] sm:$0xff] }
 0x113   : > { %v6224_v42 = vpop.permute.xlu0 %4191  ;;  %4486 = vrot.lane.b32.xlu1 %v4485_v4, %s5211_s12  ;;  %v6238_v4 = vsel %vm1284_vm3, %v5136_v25, %v3864_v40  ;;  %v5141_v25 = vld [vmem:[%s5257_s23 + $0x48] sm:$0xff]  ;;  %v6268_v59 = vsel %vm1284_vm3, %v5143_v52, %v3858_v60  ;;  %v3888_v60 = vunpack.i.l.bf16 %v5941_v35  ;;  %v3884_v52 = vunpack.i.h.bf16 %v5943_v41 }
 0x114   : > { %8795 = vst [vmem:[#allocation79_spill] sm:$0xff] %v6224_v42  ;;  %v6242_v42 = vsel %vm1284_vm3, %v5137_v6, %v3863_v49  ;;  %v6258_v7 = vsel %vm1284_vm3, %v5141_v25, %v3868_v27  ;;  %v5142_v49 = vld [vmem:[%s5257_s23 + $0x20] sm:$0xff]  ;;  %v5146_v27 = vld [vmem:[%s5257_s23 + $0x68] sm:$0xff] }
 0x115   : > { %4481 = vrot.lane.b32.xlu0 %v5785_v56, %s5211_s12  ;;  %v6234_v34 = vpop.permute.xlu1 %4206  ;;  %v6250_v56 = vsel %vm1284_vm3, %v5139_v63, %v3853_v48  ;;  %v6262_v6 = vsel %vm1284_vm3, %v5142_v49, %v3859_v17  ;;  %v5144_v48 = vld [vmem:[%s5257_s23 + $0x80] sm:$0xff]  ;;  %v6280_v25 = vsel %vm1284_vm3, %v5146_v27, %v3874_v8  ;;  %v3898_v8 = vunpack.i.l.bf16 %v5949_v47 }
 0x116   : > { %8796 = vst [vmem:[#allocation80_spill] sm:$0xff] %v6234_v34  ;;  %v5140_v34 = vld [vmem:[%s5257_s23 + $0x50] sm:$0xff]  ;;  %v6272_v63 = vsel %vm1284_vm3, %v5144_v48, %v3879_v50  ;;  %v5147_v17 = vld [vmem:[%s5257_s23 + $0x60] sm:$0xff]  ;;  %v3899_v48 = vunpack.i.h.bf16 %v5949_v47  ;;  %v3909_v27 = vunpack.i.h.bf16 %v5957_v14  ;;  %v3919_v47 = vunpack.i.h.bf16 %v5965_v9 }
 0x117   : > { %v6254_v40 = vsel %vm1284_vm3, %v5140_v34, %v3869_v62  ;;  %v6264_v53 = vpop.permute.xlu0 %4201  ;;  %v5145_v62 = vld [vmem:[%s5257_s23 + $0x78] sm:$0xff]  ;;  %v6284_v49 = vsel %vm1284_vm3, %v5147_v17, %v3873_v16  ;;  %v3894_v16 = vunpack.i.h.bf16 %v5951_v38  ;;  %v3904_v17 = vunpack.i.h.bf16 %v5959_v45 }
 0x118   : > { %8797 = vst [vmem:[#allocation81_spill] sm:$0xff] %v6264_v53  ;;  %v6276_v34 = vsel %vm1284_vm3, %v5145_v62, %v3878_v61  ;;  %v3889_v53 = vunpack.i.h.bf16 %v5941_v35  ;;  %v3883_v61 = vunpack.i.l.bf16 %v5943_v41  ;;  %v3893_v62 = vunpack.i.l.bf16 %v5951_v38 }
 0x119   : > { %v6289_v50 = vpop.permute.xlu1 %4216  ;;  %v3908_v35 = vunpack.i.l.bf16 %v5957_v14  ;;  %v3914_v38 = vunpack.i.h.bf16 %v5967_v33  ;;  %v6311_v10 = vsel %vm1284_vm3, %v5149_v46, %v3888_v60  ;;  %v3913_v9 = vunpack.i.l.bf16 %v5967_v33  ;;  %v5153_v46 = vld [vmem:[%s5257_s23 + $0xd8] sm:$0xff] }
 0x11a   : > { %8798 = vst [vmem:[#allocation82_spill] sm:$0xff] %v6289_v50  ;;  %v3903_v50 = vunpack.i.l.bf16 %v5959_v45  ;;  %v6307_v14 = vsel %vm1284_vm3, %v5148_v31, %v3889_v53  ;;  %v6322_v11 = vsel %vm1284_vm3, %v5151_v15, %v3883_v61  ;;  %v5152_v31 = vld [vmem:[%s5257_s23 + $0xe0] sm:$0xff]  ;;  %v6330_v60 = vsel %vm1284_vm3, %v5153_v46, %v3898_v8  ;;  %v5156_v61 = vld [vmem:[%s5257_s23 + $0x110] sm:$0xff]  ;;  %v5158_v8 = vld [vmem:[%s5257_s23 + $0xf8] sm:$0xff] }
 0x11b   : > { %v6299_v41 = vpop.permute.xlu0 %4211  ;;  %v6326_v53 = vsel %vm1284_vm3, %v5152_v31, %v3899_v48  ;;  %v6342_v48 = vsel %vm1284_vm3, %v5156_v61, %v3909_v27  ;;  %v5157_v31 = vld [vmem:[%s5257_s23 + $0x108] sm:$0xff]  ;;  %v6350_v46 = vsel %vm1284_vm3, %v5158_v8, %v3904_v17  ;;  %v5161_v27 = vld [vmem:[%s5257_s23 + $0x138] sm:$0xff]  ;;  %v5163_v17 = vld [vmem:[%s5257_s23 + $0x120] sm:$0xff] }
 0x11c   : > { %8799 = vst [vmem:[#allocation83_spill] sm:$0xff] %v6299_v41  ;;  %v5150_v41 = vld [vmem:[%s5257_s23 + $0x98] sm:$0xff]  ;;  %v6364_v61 = vsel %vm1284_vm3, %v5161_v27, %v3918_v3  ;;  %v6372_v8 = vsel %vm1284_vm3, %v5163_v17, %v3913_v9  ;;  %v8805_v27 = vld [vmem:[#allocation11_spill] sm:$0xff] }
 0x11d   : > { %v6315_v45 = vsel %vm1284_vm3, %v5150_v41, %v3884_v52  ;;  %v6318_v24 = vpop.permute.xlu1 %4226  ;;  %v5154_v52 = vld [vmem:[%s5257_s23 + $0xc8] sm:$0xff]  ;;  %v5155_v41 = vld [vmem:[%s5257_s23 + $0xc0] sm:$0xff]  ;;  %v3939_v5 = vunpack.i.h.bf16 %v8805_v27 }
 0x11e   : > { %8800 = vst [vmem:[#allocation84_spill] sm:$0xff] %v6318_v24  ;;  %v6334_v33 = vsel %vm1284_vm3, %v5154_v52, %v3894_v16  ;;  %v6338_v15 = vsel %vm1284_vm3, %v5155_v41, %v3893_v62  ;;  %v6346_v24 = vsel %vm1284_vm3, %v5157_v31, %v3908_v35  ;;  %v5159_v52 = vld [vmem:[%s5257_s23 + $0xf0] sm:$0xff]  ;;  %v5160_v62 = vld [vmem:[%s5257_s23 + $0x140] sm:$0xff]  ;;  %v5162_v35 = vld [vmem:[%s5257_s23 + $0x128] sm:$0xff] }
 0x11f   : > { %v6352_v16 = vpop.permute.xlu0 %4221  ;;  %v6356_v21 = vsel %vm1284_vm3, %v5159_v52, %v3903_v50  ;;  %v6360_v41 = vsel %vm1284_vm3, %v5160_v62, %v3919_v47  ;;  %v6368_v31 = vsel %vm1284_vm3, %v5162_v35, %v3914_v38  ;;  %v8803_v52 = vld [vmem:[#allocation5_spill] sm:$0xff]  ;;  %v3938_v38 = vunpack.i.l.bf16 %v8805_v27  ;;  %v8806_v35 = vld [vmem:[#allocation18_spill] sm:$0xff]  ;;  %v8810_v27 = vld [vmem:[#allocation15_spill] sm:$0xff] }
 0x120   : > { %8801 = vst [vmem:[#allocation85_spill] sm:$0xff] %v6352_v16  ;;  %v8802_v16 = vld [vmem:[#allocation33_spill] sm:$0xff]  ;;  %v3924_v47 = vunpack.i.h.bf16 %v8803_v52  ;;  %v3923_v3 = vunpack.i.l.bf16 %v8803_v52  ;;  %v3933_v9 = vunpack.i.l.bf16 %v8806_v35  ;;  %v3934_v17 = vunpack.i.h.bf16 %v8806_v35 }
 0x121   : > { %v3929_v55 = vunpack.i.h.bf16 %v8802_v16  ;;  %v3928_v50 = vunpack.i.l.bf16 %v8802_v16  ;;  %v6377_v62 = vpop.permute.xlu1 %4236  ;;  %v3948_v16 = vunpack.i.l.bf16 %v8807_v29  ;;  %v3943_v52 = vunpack.i.l.bf16 %v5991_v13  ;;  %v5166_v29 = vld [vmem:[%s5257_s23 + $0x158] sm:$0xff] }
 0x122   : > { %8804 = vst [vmem:[#allocation33_spill] sm:$0xff] %v6377_v62  ;;  %v3953_v44 = vunpack.i.l.bf16 %v8810_v27  ;;  %v6403_v26 = vsel %vm1284_vm3, %v5166_v29, %v3924_v47  ;;  %v3954_v13 = vunpack.i.h.bf16 %v8810_v27  ;;  %v6410_v19 = vsel %vm1284_vm3, %v5167_v12, %v3923_v3  ;;  %v8814_v47 = vld [vmem:[#allocation39_spill] sm:$0xff] }
 0x123   : > { %v6387_v62 = vpop.permute.xlu0 %4231  ;;  %v6395_v35 = vsel %vm1284_vm3, %v5164_v20, %v3929_v55  ;;  %v6399_v32 = vsel %vm1284_vm3, %v5165_v2, %v3928_v50  ;;  %v6414_v20 = vsel %vm1317_vm4, %v6268_v59, %v3938_v38  ;;  %v6418_v2 = vsel %vm1317_vm4, %v6262_v6, %v3939_v5 }
 0x124   : > { %8808 = vst [vmem:[#allocation5_spill] sm:$0xff] %v6387_v62  ;;  %v6422_v55 = vsel %vm1317_vm4, %v6250_v56, %v3933_v9  ;;  %v6426_v50 = vsel %vm1317_vm4, %v6246_v22, %v3934_v17  ;;  %v6430_v12 = vsel %vm1317_vm4, %v6254_v40, %v3949_v57  ;;  %v6434_v59 = vsel %vm1317_vm4, %v6258_v7, %v3948_v16 }
 0x125   : > { %v6406_v62 = vpop.permute.xlu1 %4246  ;;  %v6438_v5 = vsel %vm1317_vm4, %v6238_v4, %v3944_v58  ;;  %v6444_v56 = vsel %vm1317_vm4, %v6242_v42, %v3943_v52  ;;  %v6448_v22 = vsel %vm1317_vm4, %v6272_v63, %v3959_v51  ;;  %v6452_v57 = vsel %vm1317_vm4, %v6276_v34, %v3958_v37  ;;  %v8813_v4 = vld [vmem:[#allocation20_spill] sm:$0xff] }
 0x126   : > { %8811 = vst [vmem:[#allocation11_spill] sm:$0xff] %v6406_v62  ;;  %v6456_v7 = vsel %vm1317_vm4, %v6284_v49, %v3953_v44  ;;  %v6460_v58 = vsel %vm1317_vm4, %v6280_v25, %v3954_v13  ;;  %v3969_v40 = vunpack.i.h.bf16 %v8813_v4  ;;  %v3968_v42 = vunpack.i.l.bf16 %v8813_v4 }
 0x127   : > { %v6440_v6 = vpop.permute.xlu0 %4241  ;;  %v3963_v3 = vunpack.i.l.bf16 %v8814_v47  ;;  %v3964_v63 = vunpack.i.h.bf16 %v8814_v47  ;;  %v3979_v37 = vunpack.i.h.bf16 %v6013_v28  ;;  %v3978_v34 = vunpack.i.l.bf16 %v6013_v28 }
 0x128   : > { %8812 = vst [vmem:[#allocation18_spill] sm:$0xff] %v6440_v6  ;;  %v3973_v44 = vunpack.i.l.bf16 %v6015_v43  ;;  %v3974_v49 = vunpack.i.h.bf16 %v6015_v43  ;;  %v3989_v25 = vunpack.i.h.bf16 %v6021_v54  ;;  %v3988_v38 = vunpack.i.l.bf16 %v6021_v54 }
 0x129   : > { %v6465_v51 = vpop.permute.xlu1 %4256  ;;  %v3983_v9 = vunpack.i.l.bf16 %v6023_v36  ;;  %v3984_v16 = vunpack.i.h.bf16 %v6023_v36  ;;  %v3999_v52 = vunpack.i.h.bf16 %v6029_v30  ;;  %v3998_v27 = vunpack.i.l.bf16 %v6029_v30 }
 0x12a   : > { %v3993_v28 = vunpack.i.l.bf16 %v6031_v0  ;;  %v6483_v43 = vsel %vm1317_vm4, %v6307_v14, %v3969_v40  ;;  %v6487_v54 = vsel %vm1317_vm4, %v6311_v10, %v3968_v42  ;;  %v6491_v29 = vsel %vm1317_vm4, %v6322_v11, %v3963_v3  ;;  %v8815_v42 = vld [vmem:[#allocation28_spill] sm:$0xff] }
 0x12b   : > { %v6475_v17 = vpop.permute.xlu0 %4251  ;;  %v3994_v36 = vunpack.i.h.bf16 %v6031_v0  ;;  %v6498_v30 = vsel %vm1317_vm4, %v6315_v45, %v3964_v63  ;;  %v6502_v14 = vsel %vm1317_vm4, %v6326_v53, %v3979_v37  ;;  %v6506_v10 = vsel %vm1317_vm4, %v6330_v60, %v3978_v34 }
 0x12c   : > { %v6510_v11 = vsel %vm1317_vm4, %v6338_v15, %v3973_v44  ;;  %v6514_v0 = vsel %vm1317_vm4, %v6334_v33, %v3974_v49  ;;  %v6518_v45 = vsel %vm1317_vm4, %v6342_v48, %v3989_v25  ;;  %v6522_v53 = vsel %vm1317_vm4, %v6346_v24, %v3988_v38  ;;  %v8817_v49 = vld [vmem:[#allocation46_spill] sm:$0xff] }
 0x12d   : > { %v6494_v13 = vpop.permute.xlu1 %4266  ;;  %v6526_v60 = vsel %vm1317_vm4, %v6356_v21, %v3983_v9  ;;  %v6532_v15 = vsel %vm1317_vm4, %v6350_v46, %v3984_v16  ;;  %v6536_v33 = vsel %vm1317_vm4, %v6360_v41, %v3999_v52  ;;  %v6540_v48 = vsel %vm1317_vm4, %v6364_v61, %v3998_v27  ;;  %v8818_v52 = vld [vmem:[#allocation47_spill] sm:$0xff] }
 0x12e   : > { %v6544_v24 = vsel %vm1317_vm4, %v6372_v8, %v3993_v28  ;;  %v6548_v21 = vsel %vm1317_vm4, %v6368_v31, %v3994_v36  ;;  %v4009_v40 = vunpack.i.h.bf16 %v6037_v23  ;;  %v4008_v46 = vunpack.i.l.bf16 %v6037_v23  ;;  %v8816_v8 = vld [vmem:[#allocation36_spill] sm:$0xff] }
 0x12f   : > { %v6528_v4 = vpop.permute.xlu0 %4261  ;;  %v4003_v47 = vunpack.i.l.bf16 %v8815_v42  ;;  %v4004_v3 = vunpack.i.h.bf16 %v8815_v42  ;;  %v4019_v61 = vunpack.i.h.bf16 %v6045_v1  ;;  %v4018_v63 = vunpack.i.l.bf16 %v6045_v1 }
 0x130   : > { %v4013_v37 = vunpack.i.l.bf16 %v8816_v8  ;;  %v4014_v34 = vunpack.i.h.bf16 %v8816_v8  ;;  %v4029_v31 = vunpack.i.h.bf16 %v6059_v18  ;;  %v4028_v44 = vunpack.i.l.bf16 %v6059_v18 }
 0x131   : > { %v6553_v41 = vpop.permute.xlu1 %4276  ;;  %v4023_v23 = vunpack.i.l.bf16 %v8817_v49  ;;  %v4024_v38 = vunpack.i.h.bf16 %v8817_v49  ;;  %v4039_v9 = vunpack.i.h.bf16 %v6069_v39  ;;  %v4038_v16 = vunpack.i.l.bf16 %v6069_v39 }
 0x132   : > { %v4033_v1 = vunpack.i.l.bf16 %v8818_v52  ;;  %v6571_v27 = vsel %vm1317_vm4, %v6395_v35, %v4009_v40  ;;  %v6575_v28 = vsel %vm1317_vm4, %v6399_v32, %v4008_v46  ;;  %v6579_v18 = vsel %vm1317_vm4, %v6410_v19, %v4003_v47  ;;  %v8821_v47 = vld [vmem:[#allocation48_spill] sm:$0xff] }
 0x133   : > { %v6563_v25 = vpop.permute.xlu0 %4271  ;;  %8819 = vst [vmem:[#allocation8_spill] sm:$0xff] %v6571_v27  ;;  %8820 = vst [vmem:[#allocation25_spill] sm:$0xff] %v6575_v28  ;;  %v4034_v36 = vunpack.i.h.bf16 %v8818_v52  ;;  %v6586_v39 = vsel %vm1317_vm4, %v6403_v26, %v4004_v3  ;;  %v6590_v35 = vsel %vm1350_vm5, %v6414_v20, %v4018_v63  ;;  %v6594_v32 = vsel %vm1350_vm5, %v6418_v2, %v4019_v61  ;;  %v8822_v61 = vld [vmem:[#allocation49_spill] sm:$0xff] }
 0x134   : > { %v6598_v19 = vsel %vm1350_vm5, %v6422_v55, %v4013_v37  ;;  %v6602_v40 = vsel %vm1350_vm5, %v6426_v50, %v4014_v34  ;;  %v6606_v26 = vsel %vm1350_vm5, %v6434_v59, %v4028_v44  ;;  %v6610_v20 = vsel %vm1350_vm5, %v6430_v12, %v4029_v31  ;;  %v8825_v44 = vld [vmem:[#allocation52_spill] sm:$0xff] }
 0x135   : > { %v6582_v42 = vpop.permute.xlu1 %4286  ;;  %v6614_v2 = vsel %vm1350_vm5, %v6444_v56, %v4023_v23  ;;  %v6620_v55 = vsel %vm1350_vm5, %v6438_v5, %v4024_v38  ;;  %v6624_v50 = vsel %vm1350_vm5, %v6452_v57, %v4038_v16  ;;  %v6628_v59 = vsel %vm1350_vm5, %v6448_v22, %v4039_v9  ;;  %v8823_v22 = vld [vmem:[#allocation50_spill] sm:$0xff]  ;;  %v8826_v38 = vld [vmem:[#allocation53_spill] sm:$0xff] }
 0x136   : > { %v6632_v12 = vsel %vm1350_vm5, %v6456_v7, %v4033_v1  ;;  %v6636_v56 = vsel %vm1350_vm5, %v6460_v58, %v4034_v36  ;;  %v4049_v3 = vunpack.i.h.bf16 %v8821_v47  ;;  %v4048_v5 = vunpack.i.l.bf16 %v8821_v47  ;;  %v8824_v7 = vld [vmem:[#allocation51_spill] sm:$0xff]  ;;  %v8827_v1 = vld [vmem:[#allocation54_spill] sm:$0xff] }
 0x137   : > { %v6616_v46 = vpop.permute.xlu0 %4281  ;;  %v4043_v63 = vunpack.i.l.bf16 %v8822_v61  ;;  %v4044_v8 = vunpack.i.h.bf16 %v8822_v61  ;;  %v4059_v37 = vunpack.i.h.bf16 %v8823_v22  ;;  %v4058_v34 = vunpack.i.l.bf16 %v8823_v22  ;;  %v8828_v61 = vld [vmem:[#allocation55_spill] sm:$0xff] }
 0x138   : > { %v4053_v31 = vunpack.i.l.bf16 %v8824_v7  ;;  %v4054_v58 = vunpack.i.h.bf16 %v8824_v7  ;;  %v4069_v49 = vunpack.i.h.bf16 %v8825_v44  ;;  %v4068_v23 = vunpack.i.l.bf16 %v8825_v44 }
 0x139   : > { %v6641_v57 = vpop.permute.xlu1 %4296  ;;  %v4063_v9 = vunpack.i.l.bf16 %v8826_v38  ;;  %v4064_v52 = vunpack.i.h.bf16 %v8826_v38  ;;  %v4079_v36 = vunpack.i.h.bf16 %v8827_v1  ;;  %v4078_v47 = vunpack.i.l.bf16 %v8827_v1 }
 0x13a   : > { %v4073_v22 = vunpack.i.l.bf16 %v8828_v61  ;;  %v6659_v27 = vsel %vm1350_vm5, %v6487_v54, %v4048_v5  ;;  %v6663_v7 = vsel %vm1350_vm5, %v6483_v43, %v4049_v3  ;;  %v6667_v44 = vsel %vm1350_vm5, %v6491_v29, %v4043_v63  ;;  %v8830_v63 = vld [vmem:[#allocation57_spill] sm:$0xff] }
 0x13b   : > { %v6651_v16 = vpop.permute.xlu0 %4291  ;;  %v4074_v38 = vunpack.i.h.bf16 %v8828_v61  ;;  %v6674_v1 = vsel %vm1350_vm5, %v6498_v30, %v4044_v8  ;;  %v6678_v54 = vsel %vm1350_vm5, %v6506_v10, %v4058_v34  ;;  %v6682_v43 = vsel %vm1350_vm5, %v6502_v14, %v4059_v37  ;;  %v8831_v37 = vld [vmem:[#allocation58_spill] sm:$0xff] }
 0x13c   : > { %v6686_v29 = vsel %vm1350_vm5, %v6510_v11, %v4053_v31  ;;  %v6690_v3 = vsel %vm1350_vm5, %v6514_v0, %v4054_v58  ;;  %v6694_v30 = vsel %vm1350_vm5, %v6522_v53, %v4068_v23  ;;  %v6698_v10 = vsel %vm1350_vm5, %v6518_v45, %v4069_v49 }
 0x13d   : > { %v6670_v28 = vpop.permute.xlu1 %4306  ;;  %v6702_v14 = vsel %vm1350_vm5, %v6526_v60, %v4063_v9  ;;  %v6708_v11 = vsel %vm1350_vm5, %v6532_v15, %v4064_v52  ;;  %v6712_v0 = vsel %vm1350_vm5, %v6540_v48, %v4078_v47  ;;  %v6716_v53 = vsel %vm1350_vm5, %v6536_v33, %v4079_v36  ;;  %v8833_v33 = vld [vmem:[#allocation59_spill] sm:$0xff]  ;;  %v8836_v36 = vld [vmem:[#allocation61_spill] sm:$0xff] }
 0x13e   : > { %8829 = vst [vmem:[#allocation15_spill] sm:$0xff] %v6670_v28  ;;  %v6720_v45 = vsel %vm1350_vm5, %v6544_v24, %v4073_v22  ;;  %v6724_v60 = vsel %vm1350_vm5, %v6548_v21, %v4074_v38  ;;  %v4084_v8 = vunpack.i.h.bf16 %v8830_v63  ;;  %v4083_v15 = vunpack.i.l.bf16 %v8830_v63  ;;  %v8834_v24 = vld [vmem:[#allocation60_spill] sm:$0xff]  ;;  %v8838_v63 = vld [vmem:[#allocation62_spill] sm:$0xff] }
 0x13f   : > { %v6704_v5 = vpop.permute.xlu0 %4301  ;;  %v4098_v34 = vunpack.i.l.bf16 %v8831_v37  ;;  %v4099_v31 = vunpack.i.h.bf16 %v8831_v37  ;;  %v4094_v58 = vunpack.i.h.bf16 %v8833_v33  ;;  %v4093_v49 = vunpack.i.l.bf16 %v8833_v33 }
 0x140   : > { %v4108_v23 = vunpack.i.l.bf16 %v8834_v24  ;;  %v4109_v21 = vunpack.i.h.bf16 %v8834_v24  ;;  %v4104_v47 = vunpack.i.h.bf16 %v8836_v36  ;;  %v4103_v61 = vunpack.i.l.bf16 %v8836_v36 }
 0x141   : > { %v6729_v48 = vpop.permute.xlu1 %4316  ;;  %v4119_v37 = vunpack.i.h.bf16 %v8838_v63  ;;  %v4118_v62 = vunpack.i.l.bf16 %v8838_v63  ;;  %v6747_v6 = vsel %vm1350_vm5, %v6579_v18, %v4083_v15  ;;  %v6751_v24 = vsel %vm1350_vm5, %v6586_v39, %v4084_v8  ;;  %v8841_v15 = vld [vmem:[#allocation64_spill] sm:$0xff] }
 0x142   : > { %8832 = vst [vmem:[#allocation20_spill] sm:$0xff] %v6729_v48  ;;  %v8839_v48 = vld [vmem:[#allocation63_spill] sm:$0xff]  ;;  %v6755_v36 = vsel %vm1383_vm6, %v6590_v35, %v4098_v34  ;;  %v6762_v63 = vsel %vm1383_vm6, %v6594_v32, %v4099_v31  ;;  %v6766_v18 = vsel %vm1383_vm6, %v6598_v19, %v4093_v49  ;;  %v6770_v39 = vsel %vm1383_vm6, %v6602_v40, %v4094_v58  ;;  %v8843_v31 = vld [vmem:[#allocation65_spill] sm:$0xff] }
 0x143   : > { %v6739_v22 = vpop.permute.xlu0 %4311  ;;  %v4113_v33 = vunpack.i.l.bf16 %v8839_v48  ;;  %v4114_v52 = vunpack.i.h.bf16 %v8839_v48  ;;  %v6774_v35 = vsel %vm1383_vm6, %v6606_v26, %v4108_v23  ;;  %v6778_v8 = vsel %vm1383_vm6, %v6610_v20, %v4109_v21  ;;  %v8845_v21 = vld [vmem:[#allocation67_spill] sm:$0xff] }
 0x144   : > { %8837 = vst [vmem:[#allocation39_spill] sm:$0xff] %v6739_v22  ;;  %v6782_v32 = vsel %vm1383_vm6, %v6614_v2, %v4103_v61  ;;  %v6786_v19 = vsel %vm1383_vm6, %v6620_v55, %v4104_v47  ;;  %v4128_v34 = vunpack.i.l.bf16 %v8841_v15  ;;  %v6793_v26 = vsel %vm1383_vm6, %v6624_v50, %v4118_v62  ;;  %v8844_v62 = vld [vmem:[#allocation66_spill] sm:$0xff]  ;;  %v8846_v61 = vld [vmem:[#allocation68_spill] sm:$0xff]  ;;  %v8849_v22 = vld [vmem:[#allocation71_spill] sm:$0xff] }
 0x145   : > { %v6758_v38 = vpop.permute.xlu1 %4326  ;;  %v6797_v20 = vsel %vm1383_vm6, %v6628_v59, %v4119_v37  ;;  %v6801_v2 = vsel %vm1383_vm6, %v6632_v12, %v4113_v33  ;;  %v4129_v48 = vunpack.i.h.bf16 %v8841_v15  ;;  %v6806_v55 = vsel %vm1383_vm6, %v6636_v56, %v4114_v52  ;;  %v8847_v33 = vld [vmem:[#allocation69_spill] sm:$0xff] }
 0x146   : > { %8840 = vst [vmem:[#allocation28_spill] sm:$0xff] %v6758_v38  ;;  %v4124_v58 = vunpack.i.h.bf16 %v8843_v31  ;;  %v4123_v49 = vunpack.i.l.bf16 %v8843_v31  ;;  %v4138_v50 = vunpack.i.l.bf16 %v8844_v62  ;;  %v4139_v59 = vunpack.i.h.bf16 %v8844_v62 }
 0x147   : > { %v6789_v40 = vpop.permute.xlu0 %4321  ;;  %v4134_v47 = vunpack.i.h.bf16 %v8845_v21  ;;  %v4133_v12 = vunpack.i.l.bf16 %v8845_v21  ;;  %v4148_v37 = vunpack.i.l.bf16 %v8846_v61  ;;  %v6819_v56 = vsel %vm1383_vm6, %v6659_v27, %v4128_v34  ;;  %v8848_v21 = vld [vmem:[#allocation70_spill] sm:$0xff] }
 0x148   : > { %8842 = vst [vmem:[#allocation36_spill] sm:$0xff] %v6789_v40  ;;  %v4149_v52 = vunpack.i.h.bf16 %v8846_v61  ;;  %v4144_v15 = vunpack.i.h.bf16 %v8847_v33  ;;  %v4143_v31 = vunpack.i.l.bf16 %v8847_v33  ;;  %v6828_v62 = vsel %vm1383_vm6, %v6663_v7, %v4129_v48 }
 0x149   : > { %v6811_v23 = vpop.permute.xlu1 %4336  ;;  %v4159_v9 = vunpack.i.h.bf16 %v8848_v21  ;;  %v4158_v40 = vunpack.i.l.bf16 %v8848_v21  ;;  %v4153_v28 = vunpack.i.l.bf16 %v8849_v22  ;;  %v6835_v27 = vsel %vm1383_vm6, %v6667_v44, %v4123_v49  ;;  %v8858_v21 = vld [vmem:[#allocation77_spill] sm:$0xff] }
 0x14a   : > { %v6839_v34 = vsel %vm1383_vm6, %v6674_v1, %v4124_v58  ;;  %v6843_v61 = vsel %vm1383_vm6, %v6678_v54, %v4138_v50  ;;  %v4154_v7 = vunpack.i.h.bf16 %v8849_v22  ;;  %v6850_v33 = vsel %vm1383_vm6, %v6682_v43, %v4139_v59  ;;  %v8850_v58 = vld [vmem:[#allocation73_spill] sm:$0xff] }
 0x14b   : > { %v6824_v38 = vpop.permute.xlu0 %4331  ;;  %v6854_v44 = vsel %vm1383_vm6, %v6686_v29, %v4133_v12  ;;  %v6858_v1 = vsel %vm1383_vm6, %v6690_v3, %v4134_v47  ;;  %v6862_v54 = vsel %vm1383_vm6, %v6694_v30, %v4148_v37  ;;  %v6866_v22 = vsel %vm1383_vm6, %v6698_v10, %v4149_v52  ;;  %v8854_v12 = vld [vmem:[#allocation74_spill] sm:$0xff] }
 0x14c   : > { %v6870_v43 = vsel %vm1383_vm6, %v6702_v14, %v4143_v31  ;;  %v6874_v29 = vsel %vm1383_vm6, %v6708_v11, %v4144_v15  ;;  %v4163_v3 = vunpack.i.l.bf16 %v8850_v58  ;;  %v6881_v30 = vsel %vm1383_vm6, %v6712_v0, %v4158_v40 }
 0x14d   : > { %v6846_v48 = vpop.permute.xlu1 %4346  ;;  %8851 = vst [vmem:[#allocation46_spill] sm:$0xff] %v6881_v30  ;;  %v6885_v10 = vsel %vm1383_vm6, %v6716_v53, %v4159_v9  ;;  %v6889_v14 = vsel %vm1383_vm6, %v6720_v45, %v4153_v28  ;;  %v4164_v50 = vunpack.i.h.bf16 %v8850_v58  ;;  %v6894_v11 = vsel %vm1383_vm6, %v6724_v60, %v4154_v7  ;;  %v8855_v53 = vld [vmem:[#allocation75_spill] sm:$0xff]  ;;  %v8856_v45 = vld [vmem:[#allocation76_spill] sm:$0xff] }
 0x14e   : > { %8852 = vst [vmem:[#allocation47_spill] sm:$0xff] %v6885_v10  ;;  %v4179_v0 = vunpack.i.h.bf16 %v8854_v12  ;;  %v4178_v40 = vunpack.i.l.bf16 %v8854_v12  ;;  %v4174_v9 = vunpack.i.h.bf16 %v8855_v53  ;;  %v4173_v28 = vunpack.i.l.bf16 %v8855_v53  ;;  %v8860_v53 = vld [vmem:[#allocation78_spill] sm:$0xff]  ;;  %v8861_v30 = vld [vmem:[#allocation79_spill] sm:$0xff] }
 0x14f   : > { %v6877_v49 = vpop.permute.xlu0 %4341  ;;  %v4189_v52 = vunpack.i.h.bf16 %v8856_v45  ;;  %v4188_v15 = vunpack.i.l.bf16 %v8856_v45  ;;  %v6908_v31 = vsel %vm1383_vm6, %v6747_v6, %v4163_v3  ;;  %v4184_v7 = vunpack.i.h.bf16 %v8858_v21 }
 0x150   : > { %8857 = vst [vmem:[#allocation48_spill] sm:$0xff] %v6908_v31  ;;  %v4183_v58 = vunpack.i.l.bf16 %v8858_v21  ;;  %v6916_v47 = vsel %vm1383_vm6, %v6751_v24, %v4164_v50  ;;  %v4199_v10 = vunpack.i.h.bf16 %v8860_v53  ;;  %v4198_v45 = vunpack.i.l.bf16 %v8860_v53 }
 0x151   : > { %v6899_v37 = vpop.permute.xlu1 %4356  ;;  %8859 = vst [vmem:[#allocation49_spill] sm:$0xff] %v6916_v47  ;;  %v4193_v60 = vunpack.i.l.bf16 %v8861_v30  ;;  %v1419_v6 = vsel %vm1416_vm7, %v6755_v36, %v4178_v40  ;;  %v1420_v3 = vsel %vm1416_vm7, %v6762_v63, %v4179_v0  ;;  %v4254_v21 = vunpack.i.h.bf16 %v6475_v17 }
 0x152   : > { %v4253_v59 = vunpack.i.l.bf16 %v6475_v17  ;;  %v1417_v24 = vsel %vm1416_vm7, %v6766_v18, %v4173_v28  ;;  %v1418_v50 = vsel %vm1416_vm7, %v6770_v39, %v4174_v9  ;;  %v6935_v53 = vsel %vm1416_vm7, %v6774_v35, %v4188_v15 }
 0x153   : > { %v6912_v12 = vpop.permute.xlu0 %4351  ;;  %v6939_v36 = vsel %vm1416_vm7, %v6778_v8, %v4189_v52  ;;  %v1421_v63 = vsel %vm1416_vm7, %v6782_v32, %v4183_v58  ;;  %v1422_v17 = vsel %vm1416_vm7, %v6786_v19, %v4184_v7  ;;  %v4334_v0 = vunpack.i.h.bf16 %v6824_v38  ;;  %v8862_v58 = vld [vmem:[#allocation80_spill] sm:$0xff] }
 0x154   : > { %v4333_v18 = vunpack.i.l.bf16 %v6824_v38  ;;  %v6951_v39 = vsel %vm1416_vm7, %v6793_v26, %v4198_v45  ;;  %v6955_v35 = vsel %vm1416_vm7, %v6797_v20, %v4199_v10  ;;  %v4194_v8 = vunpack.i.h.bf16 %v8861_v30 }
 0x155   : > { %v6927_v31 = vpop.permute.xlu1 %4366  ;;  %v6960_v32 = vsel %vm1416_vm7, %v6801_v2, %v4193_v60  ;;  %v4259_v19 = vunpack.i.h.bf16 %v6465_v51  ;;  %v4258_v38 = vunpack.i.l.bf16 %v6465_v51  ;;  %v1450_v28 = vsel %vm1449_vm8, %v1417_v24, %v4253_v59 }
 0x156   : > { %v1451_v26 = vsel %vm1449_vm8, %v1418_v50, %v4254_v21  ;;  %v4264_v52 = vunpack.i.h.bf16 %v6528_v4  ;;  %v4263_v20 = vunpack.i.l.bf16 %v6528_v4  ;;  %v4344_v30 = vunpack.i.h.bf16 %v6877_v49 }
 0x157   : > { %v6947_v40 = vpop.permute.xlu0 %4361  ;;  %v4343_v2 = vunpack.i.l.bf16 %v6877_v49  ;;  %v1483_v7 = vsel %vm1482_vm9, %v1450_v28, %v4333_v18  ;;  %v1484_v51 = vsel %vm1482_vm9, %v1451_v26, %v4334_v0  ;;  %v1426_v59 = vsel %vm1416_vm7, %v6806_v55, %v4194_v8 }
 0x158   : > { %v4209_v45 = vunpack.i.h.bf16 %v8862_v58  ;;  %v4208_v24 = vunpack.i.l.bf16 %v8862_v58  ;;  %v4339_v50 = vunpack.i.h.bf16 %v6811_v23  ;;  %v4338_v49 = vunpack.i.l.bf16 %v6811_v23 }
 0x159   : > { %v4377_v9 = vpop.permute.xlu1 %4376  ;;  %v1454_v18 = vsel %vm1449_vm8, %v1421_v63, %v4263_v20  ;;  %v1455_v0 = vsel %vm1449_vm8, %v1422_v17, %v4264_v52  ;;  %v1452_v8 = vsel %vm1449_vm8, %v1419_v6, %v4258_v38  ;;  %v1453_v26 = vsel %vm1449_vm8, %v1420_v3, %v4259_v19 }
 0x15a   : > { %v4379_v10 = vunpack.i.h.bf16 %v4377_v9  ;;  %v4378_v15 = vunpack.i.l.bf16 %v4377_v9  ;;  %v4269_v17 = vunpack.i.h.bf16 %v6494_v13  ;;  %v4268_v52 = vunpack.i.l.bf16 %v6494_v13 }
 0x15b   : > { %v6970_v60 = vpop.permute.xlu0 %4371  ;;  %v1485_v6 = vsel %vm1482_vm9, %v1452_v8, %v4338_v49  ;;  %v1486_v3 = vsel %vm1482_vm9, %v1453_v26, %v4339_v50  ;;  %v4274_v38 = vunpack.i.h.bf16 %v6563_v25  ;;  %v4273_v58 = vunpack.i.l.bf16 %v6563_v25  ;;  %v8863_v26 = vld [vmem:[#allocation81_spill] sm:$0xff] }
 0x15c   : > { %v1516_v21 = vsel %vm1515_vm10, %v1483_v7, %v4378_v15  ;;  %v1517_v4 = vsel %vm1515_vm10, %v1484_v51, %v4379_v10  ;;  %v1487_v10 = vsel %vm1482_vm9, %v1454_v18, %v4343_v2  ;;  %v1488_v15 = vsel %vm1482_vm9, %v1455_v0, %v4344_v30 }
 0x15d   : > { %v4387_v9 = vpop.permute.xlu1 %4386  ;;  %v1548_v47 = vpack.c.bf16 %v1517_v4, %v1516_v21  ;;  %v4349_v21 = vunpack.i.h.bf16 %v6846_v48  ;;  %v4348_v4 = vunpack.i.l.bf16 %v6846_v48  ;;  %v4354_v49 = vunpack.i.h.bf16 %v6912_v12 }
 0x15e   : > { %v4389_v28 = vunpack.i.h.bf16 %v4387_v9  ;;  %v4388_v55 = vunpack.i.l.bf16 %v4387_v9  ;;  %v4353_v50 = vunpack.i.l.bf16 %v6912_v12  ;;  %v1456_v12 = vsel %vm1449_vm8, %v6935_v53, %v4268_v52 }
 0x15f   : > { %v4382_v7 = vpop.permute.xlu0 %4381  ;;  %3760 = vmatprep.mubr.msk.bf16.mxu0 %vm1591_vm11, %v1548_v47 }
 0x160   : > { %v1520_v23 = vsel %vm1515_vm10, %v1487_v10, %v4388_v55  ;;  %v1521_v51 = vsel %vm1515_vm10, %v1488_v15, %v4389_v28  ;;  %v4384_v63 = vunpack.i.h.bf16 %v4382_v7  ;;  %v4383_v20 = vunpack.i.l.bf16 %v4382_v7 }
 0x161   : > { %v4397_v19 = vpop.permute.xlu1 %4396  ;;  %v1550_v2 = vpack.c.bf16 %v1521_v51, %v1520_v23  ;;  %v7005_v28 = vsel %vm1416_vm7, %v6819_v56, %v4208_v24  ;;  %v7009_v55 = vsel %vm1416_vm7, %v6828_v62, %v4209_v45  ;;  %v4204_v10 = vunpack.i.h.bf16 %v8863_v26 }
 0x162   : > { %v1518_v30 = vsel %vm1515_vm10, %v1485_v6, %v4383_v20  ;;  %v1519_v47 = vsel %vm1515_vm10, %v1486_v3, %v4384_v63  ;;  %v4399_v25 = vunpack.i.h.bf16 %v4397_v19  ;;  %v4398_v8 = vunpack.i.l.bf16 %v4397_v19  ;;  %v8864_v20 = vld [vmem:[#allocation82_spill] sm:$0xff] }
 0x163   : > { %v4392_v9 = vpop.permute.xlu0 %4391  ;;  %v1549_v13 = vpack.c.bf16 %v1519_v47, %v1518_v30  ;;  %v4203_v15 = vunpack.i.l.bf16 %v8863_v26  ;;  %v1457_v56 = vsel %vm1449_vm8, %v6939_v36, %v4269_v17  ;;  %v1458_v62 = vsel %vm1449_vm8, %v6960_v32, %v4273_v58 }
 0x164   : > { %v4394_v18 = vunpack.i.h.bf16 %v4392_v9  ;;  %v4393_v0 = vunpack.i.l.bf16 %v4392_v9  ;;  %v1459_v45 = vsel %vm1449_vm8, %v1426_v59, %v4274_v38  ;;  %v1489_v24 = vsel %vm1482_vm9, %v1456_v12, %v4348_v4 }
 0x165   : > { %3761 = vmatmul.mubr.msk.bf16.vlgmr.msra.gmra.mxu0 %vm1591_vm11, %v1549_v13  ;;  %v4407_v48 = vpop.permute.xlu1 %4406  ;;  %v1490_v7 = vsel %vm1482_vm9, %v1457_v56, %v4349_v21  ;;  %v1491_v51 = vsel %vm1482_vm9, %v1458_v62, %v4353_v50  ;;  %v1492_v63 = vsel %vm1482_vm9, %v1459_v45, %v4354_v49  ;;  %v4219_v17 = vunpack.i.h.bf16 %v8864_v20 }
 0x166   : > { %3764 = vmatprep.mubr.msk.bf16.mxu0 %vm1591_vm11, %v1550_v2  ;;  %v1523_v53 = vsel %vm1515_vm10, %v1490_v7, %v4394_v18  ;;  %v1522_v36 = vsel %vm1515_vm10, %v1489_v24, %v4393_v0  ;;  %v4218_v52 = vunpack.i.l.bf16 %v8864_v20  ;;  %v1524_v32 = vsel %vm1515_vm10, %v1491_v51, %v4398_v8 }
 0x167   : > { %v4402_v23 = vpop.permute.xlu0 %4401  ;;  %v1525_v59 = vsel %vm1515_vm10, %v1492_v63, %v4399_v25  ;;  %v4279_v3 = vunpack.i.h.bf16 %v6553_v41  ;;  %v4278_v19 = vunpack.i.l.bf16 %v6553_v41  ;;  %v4284_v38 = vunpack.i.h.bf16 %v6616_v46 }
 0x168   : > { %v4283_v30 = vunpack.i.l.bf16 %v6616_v46  ;;  %v4359_v47 = vunpack.i.h.bf16 %v6899_v37  ;;  %v4358_v2 = vunpack.i.l.bf16 %v6899_v37  ;;  %v4364_v58 = vunpack.i.h.bf16 %v6947_v40 }
 0x169   : > { %v7032_v6 = vpop.permute.xlu1 %4416  ;;  %v1551_v4 = vpack.c.bf16 %v1523_v53, %v1522_v36  ;;  %v4363_v9 = vunpack.i.l.bf16 %v6947_v40  ;;  %v4404_v13 = vunpack.i.h.bf16 %v4402_v23  ;;  %v4403_v49 = vunpack.i.l.bf16 %v4402_v23 }
 0x16a   : > { %v1552_v50 = vpack.c.bf16 %v1525_v59, %v1524_v32  ;;  %v1429_v41 = vsel %vm1416_vm7, %v6835_v27, %v4203_v15  ;;  %v1430_v46 = vsel %vm1416_vm7, %v6839_v34, %v4204_v10  ;;  %v4409_v18 = vunpack.i.h.bf16 %v4407_v48 }
 0x16b   : > { %v7041_v21 = vpop.permute.xlu0 %4411  ;;  %v4408_v0 = vunpack.i.l.bf16 %v4407_v48  ;;  %v7053_v25 = vsel %vm1416_vm7, %v6843_v61, %v4218_v52  ;;  %v7057_v40 = vsel %vm1416_vm7, %v6850_v33, %v4219_v17  ;;  %v1460_v27 = vsel %vm1449_vm8, %v6951_v39, %v4278_v19 }
 0x16c   : > { %v1461_v34 = vsel %vm1449_vm8, %v6955_v35, %v4279_v3  ;;  %v1462_v8 = vsel %vm1449_vm8, %v1429_v41, %v4283_v30  ;;  %v1463_v48 = vsel %vm1449_vm8, %v1430_v46, %v4284_v38  ;;  %v1493_v26 = vsel %vm1482_vm9, %v1460_v27, %v4358_v2  ;;  %v8865_v35 = vld [vmem:[#allocation83_spill] sm:$0xff] }
 0x16d   : > { %3765 = vmatmul.mubr.msk.bf16.gmra.mxu0 %vm1591_vm11, %v1551_v4  ;;  %v7049_v37 = vpop.permute.xlu1 %4426  ;;  %v1494_v61 = vsel %vm1482_vm9, %v1461_v34, %v4359_v47  ;;  %v1495_v33 = vsel %vm1482_vm9, %v1462_v8, %v4363_v9  ;;  %v1496_v15 = vsel %vm1482_vm9, %v1463_v48, %v4364_v58  ;;  %v1526_v12 = vsel %vm1515_vm10, %v1493_v26, %v4403_v49  ;;  %v8866_v47 = vld [vmem:[#allocation84_spill] sm:$0xff] }
 0x16e   : > { %3768 = vmatprep.mubr.msk.bf16.mxu0 %vm1591_vm11, %v1552_v50  ;;  %v1527_v39 = vsel %vm1515_vm10, %v1494_v61, %v4404_v13  ;;  %v4214_v56 = vunpack.i.h.bf16 %v8865_v35  ;;  %v4213_v62 = vunpack.i.l.bf16 %v8865_v35  ;;  %v1528_v45 = vsel %vm1515_vm10, %v1495_v33, %v4408_v0 }
 0x16f   : > { %v4422_v10 = vpop.permute.xlu0 %4421  ;;  %v1529_v24 = vsel %vm1515_vm10, %v1496_v15, %v4409_v18  ;;  %v4289_v7 = vunpack.i.h.bf16 %v6582_v42  ;;  %v4288_v23 = vunpack.i.l.bf16 %v6582_v42  ;;  %v4294_v51 = vunpack.i.h.bf16 %v6651_v16 }
 0x170   : > { %v4293_v63 = vunpack.i.l.bf16 %v6651_v16  ;;  %v4369_v53 = vunpack.i.h.bf16 %v6927_v31  ;;  %v4368_v36 = vunpack.i.l.bf16 %v6927_v31  ;;  %v4374_v20 = vunpack.i.h.bf16 %v6970_v60 }
 0x171   : > { %v7083_v17 = vpop.permute.xlu1 %4436  ;;  %v1553_v32 = vpack.c.bf16 %v1527_v39, %v1526_v12  ;;  %v4373_v59 = vunpack.i.l.bf16 %v6970_v60  ;;  %v4414_v3 = vunpack.i.h.bf16 %v7041_v21  ;;  %v4413_v42 = vunpack.i.l.bf16 %v7041_v21 }
 0x172   : > { %v1554_v19 = vpack.c.bf16 %v1529_v24, %v1528_v45  ;;  %v1433_v16 = vsel %vm1416_vm7, %v6854_v44, %v4213_v62  ;;  %v1434_v31 = vsel %vm1416_vm7, %v6858_v1, %v4214_v56  ;;  %v4424_v38 = vunpack.i.h.bf16 %v4422_v10 }
 0x173   : > { %v7085_v52 = vpop.permute.xlu0 %4431  ;;  %v4423_v30 = vunpack.i.l.bf16 %v4422_v10  ;;  %v4229_v2 = vunpack.i.h.bf16 %v8866_v47  ;;  %v4228_v58 = vunpack.i.l.bf16 %v8866_v47  ;;  %v1464_v60 = vsel %vm1449_vm8, %v7005_v28, %v4288_v23 }
 0x174   : > { %v1465_v21 = vsel %vm1449_vm8, %v7009_v55, %v4289_v7  ;;  %v1466_v44 = vsel %vm1449_vm8, %v1433_v16, %v4293_v63  ;;  %v1467_v1 = vsel %vm1449_vm8, %v1434_v31, %v4294_v51  ;;  %v1497_v4 = vsel %vm1482_vm9, %v1464_v60, %v4368_v36  ;;  %v8867_v55 = vld [vmem:[#allocation85_spill] sm:$0xff] }
 0x175   : > { %3769 = vmatmul.mubr.msk.bf16.gmra.mxu0 %vm1591_vm11, %v1553_v32  ;;  %v1498_v9 = vsel %vm1482_vm9, %v1465_v21, %v4369_v53  ;;  %v1499_v49 = vsel %vm1482_vm9, %v1466_v44, %v4373_v59  ;;  %v1500_v50 = vsel %vm1482_vm9, %v1467_v1, %v4374_v20  ;;  %v1530_v41 = vsel %vm1515_vm10, %v1497_v4, %v4413_v42  ;;  %v7114_v34 = vpop.permute.xlu1 %4446 }
 0x176   : > { %3772 = vmatprep.mubr.msk.bf16.mxu0 %vm1591_vm11, %v1554_v19  ;;  %v1531_v28 = vsel %vm1515_vm10, %v1498_v9, %v4414_v3  ;;  %v4224_v46 = vunpack.i.h.bf16 %v8867_v55  ;;  %v4223_v18 = vunpack.i.l.bf16 %v8867_v55  ;;  %v1532_v0 = vsel %vm1515_vm10, %v1499_v49, %v4423_v30  ;;  %v8869_v19 = vld [vmem:[#allocation15_spill] sm:$0xff]  ;;  %v8871_v49 = vld [vmem:[#allocation33_spill] sm:$0xff] }
 0x177   : > { %v4442_v13 = vpop.permute.xlu0 %4441  ;;  %v1533_v27 = vsel %vm1515_vm10, %v1500_v50, %v4424_v38  ;;  %v4299_v8 = vunpack.i.h.bf16 %v6641_v57  ;;  %v4298_v48 = vunpack.i.l.bf16 %v6641_v57  ;;  %v4304_v26 = vunpack.i.h.bf16 %v6704_v5  ;;  %v8870_v38 = vld [vmem:[#allocation39_spill] sm:$0xff] }
 0x178   : > { %v4303_v61 = vunpack.i.l.bf16 %v6704_v5  ;;  %v4419_v10 = vunpack.i.h.bf16 %v7032_v6  ;;  %v4418_v33 = vunpack.i.l.bf16 %v7032_v6  ;;  %v4429_v15 = vunpack.i.h.bf16 %v7049_v37 }
 0x179   : > { %v1555_v12 = vpack.c.bf16 %v1531_v28, %v1530_v41  ;;  %v4428_v35 = vunpack.i.l.bf16 %v7049_v37  ;;  %v4434_v56 = vunpack.i.h.bf16 %v7085_v52  ;;  %v4433_v62 = vunpack.i.l.bf16 %v7085_v52  ;;  %v8868_v52 = vld [vmem:[#allocation5_spill] sm:$0xff] }
 0x17a   : > { %v1556_v57 = vpack.c.bf16 %v1533_v27, %v1532_v0  ;;  %v1439_v45 = vsel %vm1416_vm7, %v6862_v54, %v4228_v58  ;;  %v1440_v5 = vsel %vm1416_vm7, %v6866_v22, %v4229_v2  ;;  %v4444_v24 = vunpack.i.h.bf16 %v4442_v13 }
 0x17b   : > { %v7123_v39 = vpop.permute.xlu0 %4451  ;;  %v4443_v6 = vunpack.i.l.bf16 %v4442_v13  ;;  %v1437_v7 = vsel %vm1416_vm7, %v6870_v43, %v4223_v18  ;;  %v1438_v37 = vsel %vm1416_vm7, %v6874_v29, %v4224_v46  ;;  %v1468_v23 = vsel %vm1449_vm8, %v7053_v25, %v4298_v48  ;;  %v7146_v43 = vpop.permute.xlu1 %4456 }
 0x17c   : > { %v1469_v51 = vsel %vm1449_vm8, %v7057_v40, %v4299_v8  ;;  %v1470_v54 = vsel %vm1449_vm8, %v1437_v7, %v4303_v61  ;;  %v1471_v22 = vsel %vm1449_vm8, %v1438_v37, %v4304_v26  ;;  %v1501_v63 = vsel %vm1482_vm9, %v1468_v23, %v4418_v33  ;;  %v8872_v33 = vld [vmem:[#allocation18_spill] sm:$0xff] }
 0x17d   : > { %3773 = vmatmul.mubr.msk.bf16.gmra.mxu0 %vm1591_vm11, %v1555_v12  ;;  %v1502_v53 = vsel %vm1482_vm9, %v1469_v51, %v4419_v10  ;;  %v1534_v29 = vsel %vm1515_vm10, %v1501_v63, %v4428_v35  ;;  %v1503_v20 = vsel %vm1482_vm9, %v1470_v54, %v4433_v62  ;;  %v1504_v40 = vsel %vm1482_vm9, %v1471_v22, %v4434_v56  ;;  %v8873_v56 = vld [vmem:[#allocation20_spill] sm:$0xff] }
 0x17e   : > { %3776 = vmatprep.mubr.msk.bf16.mxu0 %vm1591_vm11, %v1556_v57  ;;  %v1535_v25 = vsel %vm1515_vm10, %v1502_v53, %v4429_v15  ;;  %v4234_v32 = vunpack.i.h.bf16 %v8868_v52  ;;  %v4233_v59 = vunpack.i.l.bf16 %v8868_v52  ;;  %v1536_v3 = vsel %vm1515_vm10, %v1503_v20, %v4443_v6  ;;  %v8876_v20 = vld [vmem:[#allocation47_spill] sm:$0xff] }
 0x17f   : > { %v4462_v36 = vpop.permute.xlu0 %4461  ;;  %v1537_v42 = vsel %vm1515_vm10, %v1504_v40, %v4444_v24  ;;  %v4309_v16 = vunpack.i.h.bf16 %v8869_v19  ;;  %v4308_v31 = vunpack.i.l.bf16 %v8869_v19  ;;  %v4314_v30 = vunpack.i.h.bf16 %v8870_v38  ;;  %v4467_v41 = vpop.permute.xlu1 %4466 }
 0x180   : > { %v4313_v47 = vunpack.i.l.bf16 %v8870_v38  ;;  %v4439_v2 = vunpack.i.h.bf16 %v7083_v17  ;;  %v4438_v58 = vunpack.i.l.bf16 %v7083_v17  ;;  %v4449_v60 = vunpack.i.h.bf16 %v7114_v34 }
 0x181   : > { %v1557_v21 = vpack.c.bf16 %v1535_v25, %v1534_v29  ;;  %v4448_v44 = vunpack.i.l.bf16 %v7114_v34  ;;  %v4454_v1 = vunpack.i.h.bf16 %v7123_v39  ;;  %v4453_v4 = vunpack.i.l.bf16 %v7123_v39  ;;  %v8875_v29 = vld [vmem:[#allocation46_spill] sm:$0xff] }
 0x182   : > { %v1558_v13 = vpack.c.bf16 %v1537_v42, %v1536_v3  ;;  %v4239_v50 = vunpack.i.h.bf16 %v8871_v49  ;;  %v4238_v28 = vunpack.i.l.bf16 %v8871_v49  ;;  %v4464_v55 = vunpack.i.h.bf16 %v4462_v36  ;;  %v8878_v3 = vld [vmem:[#allocation49_spill] sm:$0xff] }
 0x183   : > { %v4472_v9 = vpop.permute.xlu0 %4471  ;;  %v4463_v46 = vunpack.i.l.bf16 %v4462_v36  ;;  %v1441_v17 = vsel %vm1416_vm7, %v6889_v14, %v4233_v59  ;;  %v1442_v18 = vsel %vm1416_vm7, %v6894_v11, %v4234_v32  ;;  %v1472_v0 = vsel %vm1449_vm8, %v1439_v45, %v4308_v31  ;;  %v8874_v45 = vld [vmem:[#allocation36_spill] sm:$0xff]  ;;  %v4477_v51 = vpop.permute.xlu1 %4476 }
 0x184   : > { %v1473_v27 = vsel %vm1449_vm8, %v1440_v5, %v4309_v16  ;;  %v1474_v34 = vsel %vm1449_vm8, %v1441_v17, %v4313_v47  ;;  %v1475_v8 = vsel %vm1449_vm8, %v1442_v18, %v4314_v30  ;;  %v1505_v48 = vsel %vm1482_vm9, %v1472_v0, %v4438_v58  ;;  %v8877_v59 = vld [vmem:[#allocation48_spill] sm:$0xff] }
 0x185   : > { %3777 = vmatmul.mubr.msk.bf16.gmra.mxu0 %vm1591_vm11, %v1557_v21  ;;  %v1506_v26 = vsel %vm1482_vm9, %v1473_v27, %v4439_v2  ;;  %v1538_v61 = vsel %vm1515_vm10, %v1505_v48, %v4448_v44  ;;  %v1507_v11 = vsel %vm1482_vm9, %v1474_v34, %v4453_v4  ;;  %v1508_v10 = vsel %vm1482_vm9, %v1475_v8, %v4454_v1  ;;  %v8879_v44 = vld [vmem:[#allocation11_spill] sm:$0xff]  ;;  %v8884_v17 = vld [vmem:[#allocation8_spill] sm:$0xff] }
 0x186   : > { %3780 = vmatprep.mubr.msk.bf16.mxu0 %vm1591_vm11, %v1558_v13  ;;  %v1539_v14 = vsel %vm1515_vm10, %v1506_v26, %v4449_v60  ;;  %v4244_v15 = vunpack.i.h.bf16 %v8872_v33  ;;  %v4243_v39 = vunpack.i.l.bf16 %v8872_v33  ;;  %v1540_v12 = vsel %vm1515_vm10, %v1507_v11, %v4463_v46  ;;  %v8885_v0 = vld [vmem:[#allocation28_spill] sm:$0xff] }
 0x187   : > { %v1541_v35 = vsel %vm1515_vm10, %v1508_v10, %v4464_v55  ;;  %v4319_v62 = vunpack.i.h.bf16 %v8873_v56  ;;  %v4318_v57 = vunpack.i.l.bf16 %v8873_v56  ;;  %v4324_v5 = vunpack.i.h.bf16 %v8874_v45  ;;  %v4482_v6 = vpop.permute.xlu0 %4481  ;;  %v8886_v8 = vld [vmem:[#allocation72_spill] sm:$0xff] }
 0x188   : > { %v4323_v24 = vunpack.i.l.bf16 %v8874_v45  ;;  %v4459_v7 = vunpack.i.h.bf16 %v7146_v43  ;;  %v4458_v37 = vunpack.i.l.bf16 %v7146_v43  ;;  %v4469_v23 = vunpack.i.h.bf16 %v4467_v41 }
 0x189   : > { %v1559_v54 = vpack.c.bf16 %v1539_v14, %v1538_v61  ;;  %v4468_v22 = vunpack.i.l.bf16 %v4467_v41  ;;  %v4474_v63 = vunpack.i.h.bf16 %v4472_v9  ;;  %v4473_v53 = vunpack.i.l.bf16 %v4472_v9  ;;  %v4487_v9 = vpop.permute.xlu1 %4486  ;;  %v8882_v41 = vld [vmem:[#allocation25_spill] sm:$0xff] }
 0x18a   : > { %v1560_v36 = vpack.c.bf16 %v1541_v35, %v1540_v12  ;;  %v1443_v25 = vsel %vm1416_vm7, %v8875_v29, %v4238_v28  ;;  %v1444_v40 = vsel %vm1416_vm7, %v8876_v20, %v4239_v50  ;;  %v4484_v52 = vunpack.i.h.bf16 %v4482_v6  ;;  %v8880_v50 = vld [vmem:[#allocation56_spill] sm:$0xff] }
 0x18b   : > { %v4483_v32 = vunpack.i.l.bf16 %v4482_v6  ;;  %v1445_v43 = vsel %vm1416_vm7, %v8877_v59, %v4243_v39  ;;  %v1446_v42 = vsel %vm1416_vm7, %v8878_v3, %v4244_v15  ;;  %v1476_v19 = vsel %vm1449_vm8, %v1443_v25, %v4318_v57  ;;  %v7294_v3 = vld [vmem:[%s8564_s2] ss:$0 sm:$0xff] }
 0x18c   : > { %v1477_v16 = vsel %vm1449_vm8, %v1444_v40, %v4319_v62  ;;  %v1478_v31 = vsel %vm1449_vm8, %v1445_v43, %v4323_v24  ;;  %v1479_v38 = vsel %vm1449_vm8, %v1446_v42, %v4324_v5  ;;  %v1509_v30 = vsel %vm1482_vm9, %v1476_v19, %v4458_v37 }
 0x18d   : > { %3781 = vmatmul.mubr.msk.bf16.gmra.mxu0 %vm1591_vm11, %v1559_v54  ;;  %v1510_v47 = vsel %vm1482_vm9, %v1477_v16, %v4459_v7  ;;  %v1542_v2 = vsel %vm1515_vm10, %v1509_v30, %v4468_v22  ;;  %v1511_v60 = vsel %vm1482_vm9, %v1478_v31, %v4473_v53  ;;  %v1512_v21 = vsel %vm1482_vm9, %v1479_v38, %v4474_v63 }
 0x18e   : > { %3784 = vmatprep.mubr.msk.bf16.mxu0 %vm1591_vm11, %v1560_v36  ;;  %v1543_v58 = vsel %vm1515_vm10, %v1510_v47, %v4469_v23  ;;  %v4249_v1 = vunpack.i.h.bf16 %v8879_v44  ;;  %v4248_v4 = vunpack.i.l.bf16 %v8879_v44  ;;  %v1544_v13 = vsel %vm1515_vm10, %v1511_v60, %v4483_v32 }
 0x18f   : > { %v1545_v49 = vsel %vm1515_vm10, %v1512_v21, %v4484_v52  ;;  %v8881_v28 = vunpack.i.l.bf16 %v8880_v50  ;;  %v8883_v46 = vunpack.i.h.bf16 %v8880_v50  ;;  %v4329_v27 = vunpack.i.h.bf16 %v8885_v0 }
 0x190   : > { %v4328_v34 = vunpack.i.l.bf16 %v8885_v0  ;;  %v8887_v48 = vunpack.i.l.bf16 %v8886_v8  ;;  %v4479_v61 = vunpack.i.h.bf16 %v4477_v51  ;;  %v4478_v14 = vunpack.i.l.bf16 %v4477_v51 }
 0x191   : > { %v1381_v55 = vsel %vm1350_vm5, %v8882_v41, %v8881_v28  ;;  %v1382_v18 = vsel %vm1350_vm5, %v8884_v17, %v8883_v46  ;;  %v1561_v11 = vpack.c.bf16 %v1543_v58, %v1542_v2  ;;  %v8888_v10 = vunpack.i.h.bf16 %v8886_v8 }
 0x192   : > { %v1414_v26 = vsel %vm1383_vm6, %v1381_v55, %v8887_v48  ;;  %v4489_v15 = vunpack.i.h.bf16 %v4487_v9  ;;  %v4488_v39 = vunpack.i.l.bf16 %v4487_v9  ;;  %v1562_v12 = vpack.c.bf16 %v1545_v49, %v1544_v13 }
 0x193   : > { %v1415_v33 = vsel %vm1383_vm6, %v1382_v18, %v8888_v10  ;;  %v1447_v35 = vsel %vm1416_vm7, %v1414_v26, %v4248_v4  ;;  %v5212_v37 = vmov 0.0  }
 0x194   : > { %v1448_v56 = vsel %vm1416_vm7, %v1415_v33, %v4249_v1  ;;  %v1480_v62 = vsel %vm1449_vm8, %v1447_v35, %v4328_v34  ;;  %1837 = vst.msk [vmem:[#allocation2] sm:$0xff] %vm1284_vm3, %v5212_v37  ;;  %1838 = vst.msk [vmem:[#allocation2 + $0x8] sm:$0xff] %vm1284_vm3, %v5212_v37 }
 0x195   : > { %3785 = vmatmul.mubr.msk.bf16.gmra.mxu0 %vm1591_vm11, %v1561_v11  ;;  %v1481_v57 = vsel %vm1449_vm8, %v1448_v56, %v4329_v27  ;;  %v1513_v45 = vsel %vm1482_vm9, %v1480_v62, %v4478_v14  ;;  %1840 = vst.msk [vmem:[#allocation2 + $0x10] sm:$0x3] %vm1839_vm12, %v5212_v37  ;;  %1844 = vst.msk [vmem:[#allocation2 + $0x1a8] sm:$0x3] %vm1839_vm12, %v5212_v37 }
 0x196   : > { %3788 = vmatprep.mubr.msk.bf16.mxu0 %vm1591_vm11, %v1562_v12  ;;  %v1514_v5 = vsel %vm1482_vm9, %v1481_v57, %v4479_v61  ;;  %v1546_v24 = vsel %vm1515_vm10, %v1513_v45, %v4488_v39  ;;  %1842 = vst.msk [vmem:[#allocation2 + $0x198] sm:$0xff] %vm1284_vm3, %v5212_v37  ;;  %1843 = vst.msk [vmem:[#allocation2 + $0x1a0] sm:$0xff] %vm1284_vm3, %v5212_v37 }
 0x197   : > { %v1547_v6 = vsel %vm1515_vm10, %v1514_v5, %v4489_v15  ;;  %1846 = vst.msk [vmem:[#allocation2] sm:$0x1] %vm1845_vm13, %v5212_v37  ;;  %1864 = vst.msk [vmem:[#allocation2 + $0x11] sm:$0x1] %vm1845_vm13, %v5212_v37 }
 0x198   : > { %v1563_v7 = vpack.c.bf16 %v1547_v6, %v1546_v24  ;;  %1847 = vst.msk [vmem:[#allocation2 + $0x18] sm:$0x1] %vm1845_vm13, %v5212_v37  ;;  %1848 = vst.msk [vmem:[#allocation2 + $0x30] sm:$0x1] %vm1845_vm13, %v5212_v37 }
 0x199   : > { %1849 = vst.msk [vmem:[#allocation2 + $0x48] sm:$0x1] %vm1845_vm13, %v5212_v37  ;;  %1850 = vst.msk [vmem:[#allocation2 + $0x60] sm:$0x1] %vm1845_vm13, %v5212_v37 }
 0x19a   : > { %1851 = vst.msk [vmem:[#allocation2 + $0x78] sm:$0x1] %vm1845_vm13, %v5212_v37  ;;  %1852 = vst.msk [vmem:[#allocation2 + $0x90] sm:$0x1] %vm1845_vm13, %v5212_v37 }
 0x19b   : > { %1853 = vst.msk [vmem:[#allocation2 + $0xa8] sm:$0x1] %vm1845_vm13, %v5212_v37  ;;  %1854 = vst.msk [vmem:[#allocation2 + $0xc0] sm:$0x1] %vm1845_vm13, %v5212_v37  ;;  %v1916_v51 = vld [vmem:[#allocation2 + $0x8] sm:$0xff] }
 0x19c   : > { %1855 = vst.msk [vmem:[#allocation2 + $0xd8] sm:$0x1] %vm1845_vm13, %v5212_v37  ;;  %1856 = vst.msk [vmem:[#allocation2 + $0xf0] sm:$0x1] %vm1845_vm13, %v5212_v37  ;;  %v2018_v63 = vrot.slane %v1916_v51, 1  ;;  %v2194_v40 = vrot.slane %v1916_v51, 2 }
 0x19d   : > { %3789 = vmatmul.mubr.msk.bf16.gmra.mxu0 %vm1591_vm11, %v1563_v7  ;;  %1857 = vst.msk [vmem:[#allocation2 + $0x108] sm:$0x1] %vm1845_vm13, %v5212_v37  ;;  %1858 = vst.msk [vmem:[#allocation2 + $0x120] sm:$0x1] %vm1845_vm13, %v5212_v37 }
 0x19e   : > { %1859 = vst.msk [vmem:[#allocation2 + $0x138] sm:$0x1] %vm1845_vm13, %v5212_v37  ;;  %1860 = vst.msk [vmem:[#allocation2 + $0x150] sm:$0x1] %vm1845_vm13, %v5212_v37  ;;  %v1915_v23 = vld [vmem:[#allocation2] sm:$0xff] }
 0x19f   : > { %1861 = vst.msk [vmem:[#allocation2 + $0x168] sm:$0x1] %vm1845_vm13, %v5212_v37  ;;  %1862 = vst.msk [vmem:[#allocation2 + $0x180] sm:$0x1] %vm1845_vm13, %v5212_v37  ;;  %v1917_v54 = vld [vmem:[#allocation2 + $0x10] sm:$0x3] }
 0x1a0   : > { %1865 = vst.msk [vmem:[#allocation2 + $0x29] sm:$0x1] %vm1845_vm13, %v5212_v37  ;;  %1866 = vst.msk [vmem:[#allocation2 + $0x41] sm:$0x1] %vm1845_vm13, %v5212_v37  ;;  %v2017_v22 = vrot.slane %v1915_v23, 1  ;;  %v2020_v53 = vrot.slane %v1917_v54, 1 }
 0x1a1   : > { %1867 = vst.msk [vmem:[#allocation2 + $0x59] sm:$0x1] %vm1845_vm13, %v5212_v37  ;;  %1868 = vst.msk [vmem:[#allocation2 + $0x71] sm:$0x1] %vm1845_vm13, %v5212_v37  ;;  %v2193_v20 = vrot.slane %v1915_v23, 2  ;;  %v2196_v52 = vrot.slane %v1917_v54, 2 }
 0x1a2   : > { %1869 = vst.msk [vmem:[#allocation2 + $0x89] sm:$0x1] %vm1845_vm13, %v5212_v37  ;;  %1870 = vst.msk [vmem:[#allocation2 + $0xa1] sm:$0x1] %vm1845_vm13, %v5212_v37  ;;  %v2019_v36 = vsel %vm328_vm0, %v2017_v22, %v2018_v63  ;;  %v2021_v29 = vsel %vm328_vm0, %v2018_v63, %v2020_v53 }
 0x1a3   : > { %1871 = vst.msk [vmem:[#allocation2 + $0xb9] sm:$0x1] %vm1845_vm13, %v5212_v37  ;;  %1872 = vst.msk [vmem:[#allocation2 + $0xd1] sm:$0x1] %vm1845_vm13, %v5212_v37  ;;  %v4490_v25 = vpack.i.bf16 %v2021_v29, %v2019_v36  ;;  %v2195_v32 = vsel %vm505_vm1, %v2193_v20, %v2194_v40  ;;  %v2197_v59 = vsel %vm505_vm1, %v2194_v40, %v2196_v52 }
 0x1a4   : > { %1873 = vst.msk [vmem:[#allocation2 + $0xe9] sm:$0x1] %vm1845_vm13, %v5212_v37  ;;  %1874 = vst.msk [vmem:[#allocation2 + $0x101] sm:$0x1] %vm1845_vm13, %v5212_v37  ;;  %v4495_v43 = vpack.i.bf16 %v2197_v59, %v2195_v32 }
 0x1a5   : > { %1875 = vst.msk [vmem:[#allocation2 + $0x119] sm:$0x1] %vm1845_vm13, %v5212_v37  ;;  %1876 = vst.msk [vmem:[#allocation2 + $0x131] sm:$0x1] %vm1845_vm13, %v5212_v37  ;;  %4491 = vrot.lane.b32.xlu0 %v4490_v25, %s5204_s24 }
 0x1a6   : > { %1877 = vst.msk [vmem:[#allocation2 + $0x149] sm:$0x1] %vm1845_vm13, %v5212_v37  ;;  %1878 = vst.msk [vmem:[#allocation2 + $0x161] sm:$0x1] %vm1845_vm13, %v5212_v37 }
 0x1a7   : > { %1879 = vst.msk [vmem:[#allocation2 + $0x179] sm:$0x1] %vm1845_vm13, %v5212_v37  ;;  %1880 = vst.msk [vmem:[#allocation2 + $0x191] sm:$0x1] %vm1845_vm13, %v5212_v37 }
 0x1a8   : > { %1863 = vst.msk [vmem:[#allocation2 + $0x198] sm:$0x1] %vm1845_vm13, %v5212_v37  ;;  %1881 = vst.msk [vmem:[#allocation2 + $0x1a9] sm:$0x1] %vm1845_vm13, %v5212_v37 }
 0x1a9   : > { %4496 = vrot.lane.b32.xlu0 %v4495_v43, %s5205_s25 }
 0x225   : > { %v3762_v42 = vpop.f32.mrf.mxu0 }
 0x226   : > { %v1687_v19 = vadd.f32 %v3762_v42, %v7294_v3 }
 0x227   : > { %v1678_v16 = vpop.f32.mrf.mxu0 }
 0x228   : > { %v1807_v31 = vmax.f32 %v1687_v19, 0.0  ;;  %v1679_v38 = vadd.f32 %v7294_v3, %v1678_v16 }
 0x229   : > { %v3763_v30 = vpop.f32.mrf.mxu0 }
 0x22a   : > { %1885 = vst.msk [vmem:[#allocation2 + $0x31] sm:$0xff] %vm1284_vm3, %v1807_v31  ;;  %v1805_v47 = vmax.f32 %v1679_v38, 0.0  ;;  %v1690_v2 = vadd.f32 %v3763_v30, %v7294_v3 }
 0x22b   : > { %v1681_v58 = vpop.f32.mrf.mxu0 }
 0x22c   : > { %1883 = vst.msk [vmem:[#allocation2 + $0x19] sm:$0xff] %vm1284_vm3, %v1805_v47  ;;  %v1808_v60 = vmax.f32 %v1690_v2, 0.0  ;;  %v1682_v21 = vadd.f32 %v7294_v3, %v1681_v58 }
 0x22d   : > { %v3766_v44 = vpop.f32.mrf.mxu0 }
 0x22e   : > { %1886 = vst.msk [vmem:[#allocation2 + $0x39] sm:$0xff] %vm1284_vm3, %v1808_v60  ;;  %v1806_v1 = vmax.f32 %v1682_v21, 0.0  ;;  %v1703_v4 = vadd.f32 %v3766_v44, %v7294_v3 }
 0x22f   : > { %v1694_v9 = vpop.f32.mrf.mxu0 }
 0x230   : > { %1884 = vst.msk [vmem:[#allocation2 + $0x21] sm:$0xff] %vm1284_vm3, %v1806_v1  ;;  %v1811_v13 = vmax.f32 %v1703_v4, 0.0  ;;  %v1695_v49 = vadd.f32 %v7294_v3, %v1694_v9 }
 0x231   : > { %v3767_v50 = vpop.f32.mrf.mxu0  ;;  %v1921_v18 = vld [vmem:[#allocation2 + $0x30] sm:$0xff] }
 0x232   : > { %1889 = vst.msk [vmem:[#allocation2 + $0x61] sm:$0xff] %vm1284_vm3, %v1811_v13  ;;  %v1809_v28 = vmax.f32 %v1695_v49, 0.0  ;;  %v1706_v41 = vadd.f32 %v3767_v50, %v7294_v3  ;;  %v2027_v10 = vrot.slane %v1921_v18, 1  ;;  %v2203_v37 = vrot.slane %v1921_v18, 2 }
 0x233   : > { %v1697_v55 = vpop.f32.mrf.mxu0  ;;  %v7312_v14 = vld [vmem:[#allocation2 + $0x18] sm:$0xff] }
 0x234   : > { %1887 = vst.msk [vmem:[#allocation2 + $0x49] sm:$0xff] %vm1284_vm3, %v1809_v28  ;;  %v1812_v46 = vmax.f32 %v1706_v41, 0.0  ;;  %v1698_v17 = vadd.f32 %v7294_v3, %v1697_v55  ;;  %v2022_v19 = vrot.slane %v7312_v14, 1  ;;  %v2198_v1 = vrot.slane %v7312_v14, 2 }
 0x235   : > { %v3770_v0 = vpop.f32.mrf.mxu0  ;;  %v1922_v27 = vld [vmem:[#allocation2 + $0x38] sm:$0xff]  ;;  %v1923_v34 = vld [vmem:[#allocation2 + $0x40] sm:$0x3] }
 0x236   : > { %1890 = vst.msk [vmem:[#allocation2 + $0x69] sm:$0xff] %vm1284_vm3, %v1812_v46  ;;  %v1810_v8 = vmax.f32 %v1698_v17, 0.0  ;;  %v1719_v48 = vadd.f32 %v3770_v0, %v7294_v3  ;;  %v4500_v26 = vpack.i.bf16 %v1922_v27, %v1921_v18  ;;  %v2028_v33 = vrot.slane %v1922_v27, 1 }
 0x237   : > { %v1710_v61 = vpop.f32.mrf.mxu0  ;;  %v7314_v11 = vld [vmem:[#allocation2 + $0x20] sm:$0xff]  ;;  %v2030_v15 = vrot.slane %v1923_v34, 1  ;;  %v2204_v45 = vrot.slane %v1922_v27, 2  ;;  %v2206_v5 = vrot.slane %v1923_v34, 2  ;;  %v1920_v22 = vld [vmem:[#allocation2 + $0x28] sm:$0x3] }
 0x238   : > { %1888 = vst.msk [vmem:[#allocation2 + $0x51] sm:$0xff] %vm1284_vm3, %v1810_v8  ;;  %v1815_v39 = vmax.f32 %v1719_v48, 0.0  ;;  %v1711_v12 = vadd.f32 %v7294_v3, %v1710_v61  ;;  %4501 = vrot.lane.b32.xlu1 %v4500_v26, %s5206_s26  ;;  %v4510_v35 = vpack.i.bf16 %v7314_v11, %v7312_v14  ;;  %v2029_v62 = vsel %vm328_vm0, %v2027_v10, %v2028_v33 }
 0x239   : > { %v3771_v56 = vpop.f32.mrf.mxu0  ;;  %v2031_v57 = vsel %vm328_vm0, %v2028_v33, %v2030_v15  ;;  %v2205_v53 = vsel %vm505_vm1, %v2203_v37, %v2204_v45  ;;  %v2207_v36 = vsel %vm505_vm1, %v2204_v45, %v2206_v5  ;;  %v2023_v40 = vrot.slane %v7314_v11, 1  ;;  %v1927_v10 = vld [vmem:[#allocation2 + $0x60] sm:$0xff] }
 0x23a   : > { %1893 = vst.msk [vmem:[#allocation2 + $0x91] sm:$0xff] %vm1284_vm3, %v1815_v39  ;;  %v1813_v24 = vmax.f32 %v1711_v12, 0.0  ;;  %v1722_v6 = vadd.f32 %v3771_v56, %v7294_v3  ;;  %4511 = vrot.lane.b32.xlu0 %v4510_v35, %s5206_s26  ;;  %v4515_v54 = vpack.i.bf16 %v2031_v57, %v2029_v62  ;;  %v2025_v52 = vrot.slane %v1920_v22, 1 }
 0x23b   : > { %v1713_v7 = vpop.f32.mrf.mxu0  ;;  %v4520_v43 = vpack.i.bf16 %v2207_v36, %v2205_v53  ;;  %v2024_v30 = vsel %vm328_vm0, %v2022_v19, %v2023_v40  ;;  %v2199_v2 = vrot.slane %v7314_v11, 2  ;;  %v2201_v58 = vrot.slane %v1920_v22, 2 }
 0x23c   : > { %1891 = vst.msk [vmem:[#allocation2 + $0x79] sm:$0xff] %vm1284_vm3, %v1813_v24  ;;  %v1816_v23 = vmax.f32 %v1722_v6, 0.0  ;;  %v1714_v51 = vadd.f32 %v7294_v3, %v1713_v7  ;;  %4506 = vrot.lane.b32.xlu1 %v4500_v26, %s5209_s29  ;;  %v2026_v47 = vsel %vm328_vm0, %v2023_v40, %v2025_v52  ;;  %v7362_v26 = vld [vmem:[#allocation2 + $0x48] sm:$0xff]  ;;  %v2037_v62 = vrot.slane %v1927_v10, 1 }
 0x23d   : > { %v3774_v63 = vpop.f32.mrf.mxu0  ;;  %v4545_v13 = vpack.i.bf16 %v2026_v47, %v2024_v30  ;;  %v2200_v50 = vsel %vm505_vm1, %v2198_v1, %v2199_v2  ;;  %v2202_v28 = vsel %vm505_vm1, %v2199_v2, %v2201_v58  ;;  %v1928_v34 = vld [vmem:[#allocation2 + $0x68] sm:$0xff]  ;;  %v1929_v8 = vld [vmem:[#allocation2 + $0x70] sm:$0x3]  ;;  %v2213_v22 = vrot.slane %v1927_v10, 2 }
 0x23e   : > { %1894 = vst.msk [vmem:[#allocation2 + $0x99] sm:$0xff] %vm1284_vm3, %v1816_v23  ;;  %v1814_v29 = vmax.f32 %v1714_v51, 0.0  ;;  %v1735_v25 = vadd.f32 %v3774_v63, %v7294_v3  ;;  %4516 = vrot.lane.b32.xlu0 %v4515_v54, %s5204_s24  ;;  %v4550_v27 = vpack.i.bf16 %v2202_v28, %v2200_v50  ;;  %v2038_v15 = vrot.slane %v1928_v34, 1  ;;  %v7388_v40 = vld [vmem:[%s8565_s3 + $0x10] ss:$0 sps:$4 sm:$0x33]  }
 0x23f   : > { %v1726_v20 = vpop.f32.mrf.mxu0  ;;  %v7357_v17 = vld [vmem:[#allocation2 + $0x50] sm:$0xff]  ;;  %v2040_v39 = vrot.slane %v1929_v8, 1  ;;  %v2214_v7 = vrot.slane %v1928_v34, 2  ;;  %v2216_v37 = vrot.slane %v1929_v8, 2  ;;  %3831 = vmatprep.subr.msk.bf16.mxu1 %vm1640_vm2, %v7388_v40 }
 0x240   : > { %1892 = vst.msk [vmem:[#allocation2 + $0x81] sm:$0xff] %vm1284_vm3, %v1814_v29  ;;  %v1819_v32 = vmax.f32 %v1735_v25, 0.0  ;;  %v1727_v59 = vadd.f32 %v7294_v3, %v1726_v20  ;;  %4536 = vrot.lane.b32.xlu1 %v4515_v54, %s5210_s30  ;;  %v4575_v11 = vpack.i.bf16 %v7357_v17, %v7362_v26  ;;  %v2039_v24 = vsel %vm328_vm0, %v2037_v62, %v2038_v15 }
 0x241   : > { %v3775_v42 = vpop.f32.mrf.mxu0  ;;  %v2041_v6 = vsel %vm328_vm0, %v2038_v15, %v2040_v39  ;;  %v2215_v25 = vsel %vm505_vm1, %v2213_v22, %v2214_v7  ;;  %v2217_v20 = vsel %vm505_vm1, %v2214_v7, %v2216_v37  ;;  %v2033_v30 = vrot.slane %v7357_v17, 1 }
 0x242   : > { %1897 = vst.msk [vmem:[#allocation2 + $0xc1] sm:$0xff] %vm1284_vm3, %v1819_v32  ;;  %v1817_v16 = vmax.f32 %v1727_v59, 0.0  ;;  %v1738_v31 = vadd.f32 %v3775_v42, %v7294_v3  ;;  %4521 = vrot.lane.b32.xlu0 %v4520_v43, %s5205_s25  ;;  %v4585_v36 = vpack.i.bf16 %v2041_v6, %v2039_v24  ;;  %v4565_v59 = vpack.i.bf16 %v1928_v34, %v1927_v10  ;;  %v7423_v34 = vld [vmem:[#allocation2 + $0x90] sm:$0xff] }
 0x243   : > { %v1729_v38 = vpop.f32.mrf.mxu0  ;;  %8890 = vst [vmem:[#allocation51_spill] sm:$0xff] %v7423_v34  ;;  %v2047_v39 = vrot.slane %v7423_v34, 1  ;;  %v2223_v7 = vrot.slane %v7423_v34, 2 }
 0x244   : > { %1895 = vst.msk [vmem:[#allocation2 + $0xa9] sm:$0xff] %vm1284_vm3, %v1817_v16  ;;  %v1820_v60 = vmax.f32 %v1738_v31, 0.0  ;;  %v1730_v21 = vadd.f32 %v7294_v3, %v1729_v38  ;;  %4541 = vrot.lane.b32.xlu1 %v4520_v43, %s5211_s12  ;;  %v4590_v31 = vpack.i.bf16 %v2217_v20, %v2215_v25 }
 0x245   : > { %v3778_v44 = vpop.f32.mrf.mxu0  ;;  %v1935_v50 = vld [vmem:[#allocation2 + $0xa0] sm:$0x3] }
 0x246   : > { %1898 = vst.msk [vmem:[#allocation2 + $0xc9] sm:$0xff] %vm1284_vm3, %v1820_v60  ;;  %v1818_v4 = vmax.f32 %v1730_v21, 0.0  ;;  %v1751_v9 = vadd.f32 %v3778_v44, %v7294_v3  ;;  %4526 = vrot.lane.b32.xlu0 %v4515_v54, %s5207_s27  ;;  %v2032_v21 = vrot.slane %v7362_v26, 1  ;;  %v2209_v44 = vrot.slane %v7357_v17, 2  ;;  %v7414_v17 = vld [vmem:[#allocation2 + $0x78] sm:$0xff] }
 0x247   : > { %v1742_v49 = vpop.f32.mrf.mxu0  ;;  %v2042_v20 = vrot.slane %v7414_v17, 1 }
 0x248   : > { %1896 = vst.msk [vmem:[#allocation2 + $0xb1] sm:$0xff] %vm1284_vm3, %v1818_v4  ;;  %v1823_v41 = vmax.f32 %v1751_v9, 0.0  ;;  %v1743_v55 = vadd.f32 %v7294_v3, %v1742_v49  ;;  %4546 = vrot.lane.b32.xlu1 %v4545_v13, %s5204_s24  ;;  %v7404_v4 = vld [vmem:[#allocation2 + $0x80] sm:$0xff]  ;;  %v7409_v49 = vld [vmem:[#allocation2 + $0x98] sm:$0xff] }
 0x249   : > { %v3779_v46 = vpop.f32.mrf.mxu0  ;;  %8889 = vst [vmem:[#allocation50_spill] sm:$0xff] %v7409_v49 }
 0x24a   : > { %1901 = vst.msk [vmem:[#allocation2 + $0xf1] sm:$0xff] %vm1284_vm3, %v1823_v41  ;;  %v1821_v18 = vmax.f32 %v1743_v55, 0.0  ;;  %v1754_v0 = vadd.f32 %v3779_v46, %v7294_v3  ;;  %4531 = vrot.lane.b32.xlu0 %v4520_v43, %s5208_s28  ;;  %v1926_v43 = vld [vmem:[#allocation2 + $0x58] sm:$0x3]  ;;  %v2034_v41 = vsel %vm328_vm0, %v2032_v21, %v2033_v30  ;;  %v2208_v46 = vrot.slane %v7362_v26, 2 }
 0x24b   : > { %v1745_v48 = vpop.f32.mrf.mxu0  ;;  %v2035_v47 = vrot.slane %v1926_v43, 1  ;;  %v2211_v1 = vrot.slane %v1926_v43, 2 }
 0x24c   : > { %1899 = vst.msk [vmem:[#allocation2 + $0xd9] sm:$0xff] %vm1284_vm3, %v1821_v18  ;;  %v1824_v61 = vmax.f32 %v1754_v0, 0.0  ;;  %v1746_v14 = vadd.f32 %v7294_v3, %v1745_v48  ;;  %4551 = vrot.lane.b32.xlu1 %v4550_v27, %s5205_s25  ;;  %v2210_v48 = vsel %vm505_vm1, %v2208_v46, %v2209_v44 }
 0x24d   : > { %v3782_v33 = vpop.f32.mrf.mxu0  ;;  %v2036_v55 = vsel %vm328_vm0, %v2033_v30, %v2035_v47  ;;  %v2212_v26 = vsel %vm505_vm1, %v2209_v44, %v2211_v1  ;;  %v7450_v22 = vld [vmem:[#allocation2 + $0xc8] sm:$0xff] }
 0x24e   : > { %1902 = vst.msk [vmem:[#allocation2 + $0xf9] sm:$0xff] %vm1284_vm3, %v1824_v61  ;;  %v1822_v12 = vmax.f32 %v1746_v14, 0.0  ;;  %v1767_v35 = vadd.f32 %v3782_v33, %v7294_v3  ;;  %4576 = vrot.lane.b32.xlu0 %v4575_v11, %s5206_s26  ;;  %v2048_v61 = vrot.slane %v7409_v49, 1  ;;  %v2050_v14 = vrot.slane %v1935_v50, 1  ;;  %v5134_v44 = vld [vmem:[%s8565_s3 + $0x8] sm:$0xff]  }
 0x24f   : > { %v1758_v56 = vpop.f32.mrf.mxu0  ;;  %v7431_v33 = vpack.i.bf16 %v2036_v55, %v2034_v41 }
 0x250   : > { %1900 = vst.msk [vmem:[#allocation2 + $0xe1] sm:$0xff] %vm1284_vm3, %v1822_v12  ;;  %v1827_v57 = vmax.f32 %v1767_v35, 0.0  ;;  %v1759_v45 = vadd.f32 %v7294_v3, %v1758_v56  ;;  %4556 = vrot.lane.b32.xlu1 %v4545_v13, %s5207_s27  ;;  %v2224_v12 = vrot.slane %v7409_v49, 2  ;;  %v2226_v35 = vrot.slane %v1935_v50, 2  ;;  %v7435_v56 = vld [vmem:[#allocation2 + $0x88] sm:$0x3] }
 0x251   : > { %v3783_v5 = vpop.f32.mrf.mxu0  ;;  %v2049_v24 = vsel %vm328_vm0, %v2047_v39, %v2048_v61  ;;  %v2051_v6 = vsel %vm328_vm0, %v2048_v61, %v2050_v14 }
 0x252   : > { %1905 = vst.msk [vmem:[#allocation2 + $0x121] sm:$0xff] %vm1284_vm3, %v1827_v57  ;;  %v1825_v23 = vmax.f32 %v1759_v45, 0.0  ;;  %v1770_v51 = vadd.f32 %v3783_v5, %v7294_v3  ;;  %4581 = vrot.lane.b32.xlu0 %v4575_v11, %s5209_s29  ;;  %v7440_v45 = vpack.i.bf16 %v2212_v26, %v2210_v48  ;;  %v7461_v25 = vpack.i.bf16 %v2051_v6, %v2049_v24 }
 0x253   : > { %v1761_v54 = vpop.f32.mrf.mxu0 }
 0x254   : > { %1903 = vst.msk [vmem:[#allocation2 + $0x109] sm:$0xff] %vm1284_vm3, %v1825_v23  ;;  %v1828_v63 = vmax.f32 %v1770_v51, 0.0  ;;  %v1762_v53 = vadd.f32 %v7294_v3, %v1761_v54  ;;  %4561 = vrot.lane.b32.xlu1 %v4550_v27, %s5208_s28  ;;  %v7421_v27 = vpack.i.bf16 %v7404_v4, %v7414_v17  ;;  %v2043_v51 = vrot.slane %v7404_v4, 1 }
 0x255   : > { %v3786_v29 = vpop.f32.mrf.mxu0  ;;  %v2045_v54 = vrot.slane %v7435_v56, 1  ;;  %v7467_v43 = vld [vmem:[#allocation2 + $0xf8] sm:$0xff] }
 0x256   : > { %1906 = vst.msk [vmem:[#allocation2 + $0x129] sm:$0xff] %vm1284_vm3, %v1828_v63  ;;  %v1826_v52 = vmax.f32 %v1762_v53, 0.0  ;;  %v1783_v32 = vadd.f32 %v3786_v29, %v7294_v3  ;;  %4586 = vrot.lane.b32.xlu0 %v4585_v36, %s5204_s24  ;;  %v1941_v63 = vld [vmem:[#allocation2 + $0xd0] sm:$0x3]  ;;  %v7454_v53 = vpack.i.bf16 %v7409_v49, %v7423_v34  ;;  %v2227_v29 = vsel %vm505_vm1, %v2224_v12, %v2226_v35 }
 0x257   : > { %v1774_v42 = vpop.f32.mrf.mxu0  ;;  %v7477_v30 = vld [vmem:[#allocation2 + $0xe0] sm:$0xff]  ;;  %v1944_v21 = vld [vmem:[#allocation2 + $0xe8] sm:$0x3]  ;;  %v2244_v48 = vrot.slane %v7467_v43, 2 }
 0x258   : > { %1904 = vst.msk [vmem:[#allocation2 + $0x111] sm:$0xff] %vm1284_vm3, %v1826_v52  ;;  %v1831_v19 = vmax.f32 %v1783_v32, 0.0  ;;  %v1775_v16 = vadd.f32 %v7294_v3, %v1774_v42  ;;  %4566 = vrot.lane.b32.xlu1 %v4565_v59, %s5206_s26  ;;  %v7464_v52 = vld [vmem:[#allocation2 + $0xc0] sm:$0xff]  ;;  %v2058_v32 = vrot.slane %v7450_v22, 1  ;;  %v2063_v46 = vrot.slane %v7477_v30, 1 }
 0x259   : > { %v3787_v38 = vpop.f32.mrf.mxu0  ;;  %v1947_v42 = vld [vmem:[#allocation2 + $0x100] sm:$0x3]  ;;  %v2233_v1 = vrot.slane %v7464_v52, 2 }
 0x25a   : > { %1909 = vst.msk [vmem:[#allocation2 + $0x151] sm:$0xff] %vm1284_vm3, %v1831_v19  ;;  %v1829_v2 = vmax.f32 %v1775_v16, 0.0  ;;  %v1786_v58 = vadd.f32 %v3787_v38, %v7294_v3  ;;  %4591 = vrot.lane.b32.xlu0 %v4590_v31, %s5205_s25  ;;  %v2044_v16 = vsel %vm328_vm0, %v2042_v20, %v2043_v51  ;;  %v2234_v38 = vrot.slane %v7450_v22, 2 }
 0x25b   : > { %v1777_v60 = vpop.f32.mrf.mxu0  ;;  %v2070_v50 = vrot.slane %v1947_v42, 1 }
 0x25c   : > { %1907 = vst.msk [vmem:[#allocation2 + $0x139] sm:$0xff] %vm1284_vm3, %v1829_v2  ;;  %v1832_v9 = vmax.f32 %v1786_v58, 0.0  ;;  %v1778_v13 = vadd.f32 %v7294_v3, %v1777_v60  ;;  %4571 = vrot.lane.b32.xlu1 %v4565_v59, %s5209_s29  ;;  %v2060_v59 = vrot.slane %v1941_v63, 1  ;;  %v2057_v2 = vrot.slane %v7464_v52, 1  ;;  %v7481_v60 = vld [vmem:[#allocation2 + $0xf0] sm:$0xff] }
 0x25d   : > { %v3790_v28 = vpop.f32.mrf.mxu0  ;;  %v2236_v58 = vrot.slane %v1941_v63, 2  ;;  %v7506_v26 = vld [vmem:[#allocation2 + $0x128] sm:$0xff]  ;;  %v1953_v61 = vld [vmem:[#allocation2 + $0x130] sm:$0x3] }
 0x25e   : > { %1910 = vst.msk [vmem:[#allocation2 + $0x159] sm:$0xff] %vm1284_vm3, %v1832_v9  ;;  %v1830_v18 = vmax.f32 %v1778_v13, 0.0  ;;  %v1799_v0 = vadd.f32 %v3790_v28, %v7294_v3  ;;  %4596 = vrot.lane.b32.xlu0 %v4585_v36, %s5207_s27  ;;  %v7487_v9 = vld [vmem:[#allocation2 + $0xd8] sm:$0xff]  ;;  %v2068_v13 = vrot.slane %v7467_v43, 1  ;;  %v7493_v41 = vsel %vm328_vm0, %v2057_v2, %v2058_v32 }
 0x25f   : > { %v1790_v8 = vpop.f32.mrf.mxu0  ;;  %v7496_v55 = vsel %vm328_vm0, %v2058_v32, %v2060_v59  ;;  %v7509_v14 = vsel %vm505_vm1, %v2234_v38, %v2236_v58  ;;  %v7513_v39 = vld [vmem:[#allocation2 + $0x110] sm:$0xff]  ;;  %v1950_v24 = vld [vmem:[#allocation2 + $0x118] sm:$0x3] }
 0x260   : > { %1908 = vst.msk [vmem:[#allocation2 + $0x141] sm:$0xff] %vm1284_vm3, %v1830_v18  ;;  %v1835_v11 = vmax.f32 %v1799_v0, 0.0  ;;  %v1791_v10 = vadd.f32 %v7294_v3, %v1790_v8  ;;  %4606 = vrot.lane.b32.xlu1 %v4585_v36, %s5210_s30  ;;  %v2225_v36 = vsel %vm505_vm1, %v2223_v7, %v2224_v12  ;;  %v7502_v18 = vsel %vm505_vm1, %v2233_v1, %v2234_v38 }
 0x261   : > { %v3791_v15 = vpop.f32.mrf.mxu0  ;;  %v7472_v19 = vpack.i.bf16 %v2227_v29, %v2225_v36  ;;  %v2067_v0 = vrot.slane %v7481_v60, 1  ;;  %v2065_v8 = vrot.slane %v1944_v21, 1  ;;  %v7521_v35 = vsel %vm328_vm0, %v2068_v13, %v2070_v50 }
 0x262   : > { %1913 = vst.msk [vmem:[#allocation2 + $0x181] sm:$0xff] %vm1284_vm3, %v1835_v11  ;;  %v1833_v62 = vmax.f32 %v1791_v10, 0.0  ;;  %v1802_v57 = vadd.f32 %v3791_v15, %v7294_v3  ;;  %4601 = vrot.lane.b32.xlu0 %v4590_v31, %s5208_s28  ;;  %v2062_v11 = vrot.slane %v7487_v9, 1  ;;  %v2246_v10 = vrot.slane %v1947_v42, 2 }
 0x263   : > { %v1793_v5 = vpop.f32.mrf.mxu0  ;;  %v2239_v15 = vrot.slane %v7477_v30, 2  ;;  %v7518_v12 = vsel %vm328_vm0, %v2067_v0, %v2068_v13  ;;  %v2238_v7 = vrot.slane %v7487_v9, 2  ;;  %v2073_v36 = vrot.slane %v7513_v39, 1 }
 0x264   : > { %1911 = vst.msk [vmem:[#allocation2 + $0x169] sm:$0xff] %vm1284_vm3, %v1833_v62  ;;  %v1836_v37 = vmax.f32 %v1802_v57, 0.0  ;;  %v1794_v23 = vadd.f32 %v7294_v3, %v1793_v5  ;;  %4611 = vrot.lane.b32.xlu1 %v4590_v31, %s5211_s12  ;;  %v2046_v31 = vsel %vm328_vm0, %v2043_v51, %v2045_v54  ;;  %v2243_v62 = vrot.slane %v7481_v60, 2  ;;  %v7524_v5 = vld [vmem:[#allocation2 + $0x120] sm:$0xff] }
 0x265   : > { %v7490_v28 = vpack.i.bf16 %v2046_v31, %v2044_v16  ;;  %v2241_v57 = vrot.slane %v1944_v21, 2  ;;  %v7527_v6 = vsel %vm328_vm0, %v2062_v11, %v2063_v46  ;;  %v2080_v51 = vrot.slane %v1953_v61, 1  ;;  %v7549_v59 = vld [vmem:[#allocation2 + $0x158] sm:$0xff] }
 0x266   : > { %1914 = vst.msk [vmem:[#allocation2 + $0x189] sm:$0xff] %vm1284_vm3, %v1836_v37  ;;  %v1834_v3 = vmax.f32 %v1794_v23, 0.0  ;;  %4626 = vrot.lane.b32.xlu0 %v7431_v33, %s5210_s30  ;;  %v7530_v37 = vld [vmem:[#allocation2 + $0x108] sm:$0xff]  ;;  %v2078_v23 = vrot.slane %v7506_v26, 1  ;;  %v7536_v54 = vsel %vm328_vm0, %v2063_v46, %v2065_v8  ;;  %v7539_v63 = vsel %vm505_vm1, %v2243_v62, %v2244_v48  ;;  %8891 = vst [vmem:[#allocation52_spill] sm:$0xff] %v7549_v59 }
 0x267   : > { %v7543_v29 = vsel %vm505_vm1, %v2244_v48, %v2246_v10  ;;  %v2077_v20 = vrot.slane %v7524_v5, 1  ;;  %v2075_v32 = vrot.slane %v1950_v24, 1  ;;  %v7554_v42 = vsel %vm505_vm1, %v2239_v15, %v2241_v57  ;;  %v7566_v13 = vld [vmem:[#allocation2 + $0x140] sm:$0xff]  ;;  %v1956_v48 = vld [vmem:[#allocation2 + $0x148] sm:$0x3]  ;;  %v7576_v10 = vld [vmem:[#allocation2 + $0x138] sm:$0xff] }
 0x268   : > { %1912 = vst.msk [vmem:[#allocation2 + $0x171] sm:$0xff] %vm1284_vm3, %v1834_v3  ;;  %4616 = vrot.lane.b32.xlu1 %v7431_v33, %s5204_s24  ;;  %v7546_v3 = vsel %vm505_vm1, %v2238_v7, %v2239_v15  ;;  %v2072_v16 = vrot.slane %v7530_v37, 1  ;;  %v2254_v31 = vrot.slane %v7506_v26, 2  ;;  %v2256_v38 = vrot.slane %v1953_v61, 2 }
 0x269   : > { %v7559_v2 = vsel %vm328_vm0, %v2077_v20, %v2078_v23  ;;  %v7562_v58 = vsel %vm328_vm0, %v2078_v23, %v2080_v51  ;;  %v2253_v21 = vrot.slane %v7524_v5, 2  ;;  %v2249_v1 = vrot.slane %v7513_v39, 2 }
 0x26a   : > { %4631 = vrot.lane.b32.xlu0 %v7440_v45, %s5211_s12  ;;  %v2074_v50 = vsel %vm328_vm0, %v2072_v16, %v2073_v36  ;;  %v2251_v46 = vrot.slane %v1950_v24, 2  ;;  %v2088_v0 = vrot.slane %v7549_v59, 1  ;;  %v2076_v61 = vsel %vm328_vm0, %v2073_v36, %v2075_v32 }
 0x26b   : > { %v2248_v11 = vrot.slane %v7530_v37, 2  ;;  %v2264_v15 = vrot.slane %v7549_v59, 2  ;;  %v2257_v57 = vsel %vm505_vm1, %v2254_v31, %v2256_v38  ;;  %v2083_v7 = vrot.slane %v7566_v13, 1 }
 0x26c   : > { %4621 = vrot.lane.b32.xlu1 %v7440_v45, %s5205_s25  ;;  %v2085_v36 = vrot.slane %v1956_v48, 1  ;;  %v2259_v20 = vrot.slane %v7566_v13, 2  ;;  %v2252_v16 = vsel %vm505_vm1, %v2249_v1, %v2251_v46  ;;  %v2258_v49 = vrot.slane %v7576_v10, 2 }
 0x26d   : > { %v2250_v23 = vsel %vm505_vm1, %v2248_v11, %v2249_v1  ;;  %v7596_v11 = vld [vmem:[#allocation2 + $0x168] sm:$0xff]  ;;  %v2261_v59 = vrot.slane %v1956_v48, 2  ;;  %v7615_v48 = vpack.i.bf16 %v7496_v55, %v7493_v41  ;;  %v7638_v55 = vpack.i.bf16 %v7543_v29, %v7539_v63 }
 0x26e   : > { %4656 = vrot.lane.b32.xlu0 %v7421_v27, %s5206_s26  ;;  %v2218_v63 = vrot.slane %v7414_v17, 2  ;;  %v8892_v17 = vrot.slane %v7404_v4, 2  ;;  %v7694_v4 = vld [vmem:[#allocation2 + $0xa8] sm:$0xff] }
 0x26f   : > { %v7588_v32 = vld [vmem:[#allocation2 + $0x170] sm:$0xff]  ;;  %v2262_v41 = vsel %vm505_vm1, %v2259_v20, %v2261_v59  ;;  %v7662_v59 = vpack.i.bf16 %v2252_v16, %v2250_v23 }
 0x270   : > { %4636 = vrot.lane.b32.xlu1 %v7431_v33, %s5207_s27  ;;  %v1959_v33 = vld [vmem:[#allocation2 + $0x160] sm:$0x3]  ;;  %v2093_v46 = vrot.slane %v7588_v32, 1 }
 0x271   : > { %v2090_v8 = vrot.slane %v1959_v33, 1  ;;  %v2266_v62 = vrot.slane %v1959_v33, 2  ;;  %v1962_v33 = vld [vmem:[#allocation2 + $0x178] sm:$0x3] }
 0x272   : > { %4661 = vrot.lane.b32.xlu0 %v7421_v27, %s5209_s29  ;;  %v7568_v27 = vld [vmem:[#allocation2 + $0x150] sm:$0xff] }
 0x273   : > { %v2087_v24 = vrot.slane %v7568_v27, 1  ;;  %v2263_v51 = vrot.slane %v7568_v27, 2  ;;  %v2091_v38 = vsel %vm328_vm0, %v2088_v0, %v2090_v8  ;;  %v2267_v34 = vsel %vm505_vm1, %v2264_v15, %v2266_v62 }
 0x274   : > { %4641 = vrot.lane.b32.xlu1 %v7440_v45, %s5208_s28  ;;  %v2255_v45 = vsel %vm505_vm1, %v2253_v21, %v2254_v31  ;;  %v2082_v21 = vrot.slane %v7576_v10, 1  ;;  %v3319_v8 = vsel %vm1640_vm2, %v7388_v40, 0  ;;  %v2269_v62 = vrot.slane %v7588_v32, 2  ;;  %v5135_v40 = vld [vmem:[%s8565_s3] sm:$0xff]  }
 0x275   : > { %v2089_v31 = vsel %vm328_vm0, %v2087_v24, %v2088_v0  ;;  %v2265_v47 = vsel %vm505_vm1, %v2263_v51, %v2264_v15  ;;  %v2095_v0 = vrot.slane %v1962_v33, 1  ;;  %v2086_v24 = vsel %vm328_vm0, %v2083_v7, %v2085_v36  ;;  %3793 = vmatpush3.bf16.msra.mxu1 %v3319_v8 }
 0x276   : > { %4666 = vrot.lane.b32.xlu0 %v7461_v25, %s5204_s24  ;;  %v2084_v1 = vsel %vm328_vm0, %v2082_v21, %v2083_v7  ;;  %v2260_v51 = vsel %vm505_vm1, %v2258_v49, %v2259_v20  ;;  %v2092_v15 = vrot.slane %v7596_v11, 1  ;;  %v2271_v21 = vrot.slane %v1962_v33, 2  ;;  %3794 = vmatprep.subr.bf16.mxu1 %v5134_v44  ;;  %v1938_v20 = vld [vmem:[#allocation2 + $0xb8] sm:$0x3] }
 0x277   : > { %v7625_v49 = vpack.i.bf16 %v7509_v14, %v7502_v18  ;;  %v7629_v7 = vpack.i.bf16 %v7521_v35, %v7518_v12  ;;  %v7642_v36 = vpack.i.bf16 %v7554_v42, %v7546_v3  ;;  %v2096_v14 = vsel %vm328_vm0, %v2093_v46, %v2095_v0 }
 0x278   : > { %4646 = vrot.lane.b32.xlu1 %v7454_v53, %s5206_s26  ;;  %v2094_v18 = vsel %vm328_vm0, %v2092_v15, %v2093_v46  ;;  %v2268_v12 = vrot.slane %v7596_v11, 2  ;;  %v7651_v35 = vpack.i.bf16 %v7562_v58, %v7559_v2  ;;  %v2272_v3 = vsel %vm505_vm1, %v2269_v62, %v2271_v21  ;;  %v4492_v21 = vpop.permute.xlu0 %4491 }
 0x279   : > { %3795 = vmatpush3.bf16.msra.mxu1 %v5134_v44  ;;  %v7664_v44 = vpack.i.bf16 %v2086_v24, %v2084_v1  ;;  %v7666_v42 = vpack.i.bf16 %v2262_v41, %v2260_v51  ;;  %v7670_v2 = vpack.i.bf16 %v2091_v38, %v2089_v31  ;;  %v7672_v58 = vpack.i.bf16 %v2267_v34, %v2265_v47  ;;  %v7691_v47 = vld [vmem:[#allocation2 + $0xb0] sm:$0xff] }
 0x27a   : > { %4671 = vrot.lane.b32.xlu0 %v7472_v19, %s5205_s25  ;;  %v2270_v29 = vsel %vm505_vm1, %v2268_v12, %v2269_v62  ;;  %3796 = vmatprep.subr.bf16.mxu1 %v5135_v40  ;;  %v2053_v33 = vrot.slane %v7691_v47, 1  ;;  %v2055_v16 = vrot.slane %v1938_v20, 1  ;;  %v2052_v31 = vrot.slane %v7694_v4, 1 }
 0x27b   : > { %v7686_v23 = vpack.i.bf16 %v2272_v3, %v2270_v29  ;;  %v7707_v38 = vpack.i.bf16 %v7450_v22, %v7464_v52  ;;  %v2229_v46 = vrot.slane %v7691_v47, 2  ;;  %v2231_v0 = vrot.slane %v1938_v20, 2 }
 0x27c   : > { %4651 = vrot.lane.b32.xlu1 %v7454_v53, %s5209_s29  ;;  %v7634_v53 = vpack.i.bf16 %v7536_v54, %v7527_v6  ;;  %v7653_v6 = vpack.i.bf16 %v2076_v61, %v2074_v50  ;;  %v7655_v54 = vpack.i.bf16 %v2257_v57, %v2255_v45  ;;  %v8893_v50 = vrot.slane %v7435_v56, 2 }
 0x27d   : > { %v8894_v61 = vmov %v8892_v17  ;;  %3797 = vmatpush3.bf16.msra.mxu1 %v5135_v40  ;;  %v7682_v57 = vpack.i.bf16 %v2096_v14, %v2094_v18  ;;  %v4725_v56 = vpack.i.bf16 %v7691_v47, %v7694_v4  ;;  %v2056_v1 = vsel %vm328_vm0, %v2053_v33, %v2055_v16  ;;  %v8895_v14 = vld [vmem:[#allocation52_spill] sm:$0xff] }
 0x27e   : > { %4676 = vrot.lane.b32.xlu0 %v7461_v25, %s5207_s27  ;;  %v2222_v45 = vsel %vm505_vm1, %v8894_v61, %v8893_v50  ;;  %v2228_v8 = vrot.slane %v7694_v4, 2  ;;  %v2232_v52 = vsel %vm505_vm1, %v2229_v46, %v2231_v0  ;;  %v7731_v15 = vpack.i.bf16 %v7477_v30, %v7487_v9  ;;  %v4497_v30 = vpop.permute.xlu0 %4496 }
 0x27f   : > { %v7737_v62 = vpack.i.bf16 %v7467_v43, %v7481_v60  ;;  %v7751_v43 = vpack.i.bf16 %v7513_v39, %v7530_v37  ;;  %v7759_v9 = vpack.i.bf16 %v7506_v26, %v7524_v5  ;;  %v7779_v5 = vpack.i.bf16 %v7566_v13, %v7576_v10 }
 0x280   : > { %4686 = vrot.lane.b32.xlu1 %v7461_v25, %s5210_s30  ;;  %v2220_v25 = vsel %vm505_vm1, %v2218_v63, %v8892_v17  ;;  %v2230_v22 = vsel %vm505_vm1, %v2228_v8, %v2229_v46  ;;  %v7785_v12 = vpack.i.bf16 %v8895_v14, %v7568_v27  ;;  %v4493_v13 = vunpack.i.l.bf16 %v4492_v21 }
 0x281   : > { %v4695_v34 = vpack.i.bf16 %v2222_v45, %v2220_v25  ;;  %v7725_v51 = vpack.i.bf16 %v2232_v52, %v2230_v22  ;;  %v4494_v3 = vunpack.i.h.bf16 %v4492_v21  ;;  %v4498_v17 = vunpack.i.l.bf16 %v4497_v30  ;;  %v5168_v25 = vld [vmem:[#allocation2] sm:$0xff] }
 0x282   : > { %4681 = vrot.lane.b32.xlu0 %v7472_v19, %s5208_s28  ;;  %v2971_v50 = vsel %vm1284_vm3, %v5168_v25, %v4493_v13  ;;  %v4499_v61 = vunpack.i.h.bf16 %v4497_v30  ;;  %v7819_v0 = vpack.i.bf16 %v7588_v32, %v7596_v11 }
 0x283   : > { %v3003_v20 = vsel %vm1317_vm4, %v2971_v50, %v4498_v17 }
 0x284   : > { %4691 = vrot.lane.b32.xlu1 %v7490_v28, %s5204_s24 }
 0x286   : > { %4701 = vrot.lane.b32.xlu0 %v7490_v28, %s5210_s30 }
 0x288   : > { %4696 = vrot.lane.b32.xlu1 %v4695_v34, %s5205_s25 }
 0x28a   : > { %4706 = vrot.lane.b32.xlu0 %v4695_v34, %s5211_s12 }
 0x28c   : > { %4711 = vrot.lane.b32.xlu1 %v7490_v28, %s5207_s27  ;;  %v2054_v28 = vsel %vm328_vm0, %v2052_v31, %v2053_v33 }
 0x28d   : > { %v7717_v24 = vpack.i.bf16 %v2056_v1, %v2054_v28 }
 0x28e   : > { %4726 = vrot.lane.b32.xlu0 %v4725_v56, %s5206_s26 }
 0x290   : > { %4716 = vrot.lane.b32.xlu1 %v4695_v34, %s5208_s28  ;;  %v5169_v34 = vld [vmem:[#allocation2 + $0x8] sm:$0xff] }
 0x292   : > { %4731 = vrot.lane.b32.xlu0 %v4725_v56, %s5209_s29  ;;  %v2972_v56 = vsel %vm1284_vm3, %v5169_v34, %v4494_v3 }
 0x293   : > { %v3004_v31 = vsel %vm1317_vm4, %v2972_v56, %v4499_v61 }
 0x294   : > { %4721 = vrot.lane.b32.xlu1 %v7707_v38, %s5206_s26 }
 0x296   : > { %4736 = vrot.lane.b32.xlu0 %v7615_v48, %s5204_s24 }
 0x298   : > { %4746 = vrot.lane.b32.xlu1 %v7717_v24, %s5204_s24 }
 0x29a   : > { %4741 = vrot.lane.b32.xlu0 %v7625_v49, %s5205_s25 }
 0x29c   : > { %4751 = vrot.lane.b32.xlu1 %v7725_v51, %s5205_s25 }
 0x29e   : > { %4761 = vrot.lane.b32.xlu0 %v7731_v15, %s5206_s26 }
 0x2a0   : > { %4756 = vrot.lane.b32.xlu1 %v7737_v62, %s5206_s26 }
 0x2a2   : > { %4766 = vrot.lane.b32.xlu0 %v7629_v7, %s5204_s24 }
 0x2a4   : > { %4776 = vrot.lane.b32.xlu1 %v7634_v53, %s5204_s24 }
 0x2a6   : > { %4771 = vrot.lane.b32.xlu0 %v7638_v55, %s5205_s25 }
 0x2a8   : > { %4781 = vrot.lane.b32.xlu1 %v7642_v36, %s5205_s25 }
 0x2aa   : > { %v7753_v60 = vpop.permute.xlu1 %4501  ;;  %4791 = vrot.lane.b32.xlu0 %v7751_v43, %s5206_s26 }
 0x2ac   : > { %v4512_v40 = vpop.permute.xlu0 %4511  ;;  %4786 = vrot.lane.b32.xlu1 %v7759_v9, %s5206_s26 }
 0x2ad   : > { %v4514_v33 = vunpack.i.h.bf16 %v4512_v40  ;;  %v4513_v16 = vunpack.i.l.bf16 %v4512_v40 }
 0x2ae   : > { %v4507_v41 = vpop.permute.xlu1 %4506  ;;  %4796 = vrot.lane.b32.xlu0 %v7651_v35, %s5204_s24 }
 0x2af   : > { %v3036_v22 = vsel %vm1350_vm5, %v3004_v31, %v4514_v33  ;;  %v3035_v52 = vsel %vm1350_vm5, %v3003_v20, %v4513_v16  ;;  %v4509_v40 = vunpack.i.h.bf16 %v4507_v41  ;;  %v4508_v14 = vunpack.i.l.bf16 %v4507_v41 }
 0x2b0   : > { %v7765_v18 = vpop.permute.xlu0 %4516  ;;  %4806 = vrot.lane.b32.xlu1 %v7653_v6, %s5204_s24 }
 0x2b2   : > { %v7769_v39 = vpop.permute.xlu1 %4536  ;;  %4801 = vrot.lane.b32.xlu0 %v7655_v54, %s5205_s25 }
 0x2b3   : > { %v4539_v25 = vunpack.i.h.bf16 %v7769_v39  ;;  %v4538_v50 = vunpack.i.l.bf16 %v7769_v39 }
 0x2b4   : > { %v7773_v26 = vpop.permute.xlu0 %4521  ;;  %4811 = vrot.lane.b32.xlu1 %v7662_v59, %s5205_s25 }
 0x2b6   : > { %v4542_v37 = vpop.permute.xlu1 %4541  ;;  %4821 = vrot.lane.b32.xlu0 %v7779_v5, %s5206_s26 }
 0x2b7   : > { %v4544_v56 = vunpack.i.h.bf16 %v4542_v37 }
 0x2b8   : > { %v7787_v63 = vpop.permute.xlu0 %4526  ;;  %4816 = vrot.lane.b32.xlu1 %v7785_v12, %s5206_s26 }
 0x2ba   : > { %4826 = vrot.lane.b32.xlu0 %v7670_v2, %s5204_s24  ;;  %v7793_v29 = vpop.permute.xlu1 %4546 }
 0x2bc   : > { %v7795_v10 = vpop.permute.xlu0 %4531  ;;  %4841 = vrot.lane.b32.xlu1 %v7472_v19, %s5211_s12 }
 0x2be   : > { %4831 = vrot.lane.b32.xlu0 %v7672_v58, %s5205_s25  ;;  %v7801_v27 = vpop.permute.xlu1 %4551 }
 0x2c0   : > { %v7804_v45 = vpop.permute.xlu0 %4576  ;;  %4846 = vrot.lane.b32.xlu1 %v7664_v44, %s5204_s24 }
 0x2c2   : > { %4836 = vrot.lane.b32.xlu0 %v7717_v24, %s5210_s30  ;;  %v4557_v19 = vpop.permute.xlu1 %4556 }
 0x2c3   : > { %v4559_v28 = vunpack.i.h.bf16 %v4557_v19  ;;  %v4558_v1 = vunpack.i.l.bf16 %v4557_v19  ;;  %v4543_v19 = vunpack.i.l.bf16 %v4542_v37 }
 0x2c4   : > { %v7813_v46 = vpop.permute.xlu0 %4581  ;;  %4851 = vrot.lane.b32.xlu1 %v7666_v42, %s5205_s25 }
 0x2c5   : > { %v3068_v13 = vsel %vm1383_vm6, %v3036_v22, %v4559_v28  ;;  %v3067_v3 = vsel %vm1383_vm6, %v3035_v52, %v4558_v1  ;;  %v4549_v28 = vunpack.i.h.bf16 %v7793_v29  ;;  %v4548_v1 = vunpack.i.l.bf16 %v7793_v29 }
 0x2c6   : > { %4856 = vrot.lane.b32.xlu0 %v7819_v0, %s5206_s26  ;;  %v4562_v8 = vpop.permute.xlu1 %4561  ;;  %v4554_v22 = vunpack.i.h.bf16 %v7801_v27  ;;  %v4553_v52 = vunpack.i.l.bf16 %v7801_v27 }
 0x2c7   : > { %v4564_v21 = vunpack.i.h.bf16 %v4562_v8  ;;  %v4563_v30 = vunpack.i.l.bf16 %v4562_v8 }
 0x2c8   : > { %v7827_v17 = vpop.permute.xlu0 %4586  ;;  %4866 = vrot.lane.b32.xlu1 %v7682_v57, %s5204_s24 }
 0x2c9   : > { %v3099_v32 = vsel %vm1416_vm7, %v3067_v3, %v4563_v30  ;;  %v3100_v11 = vsel %vm1416_vm7, %v3068_v13, %v4564_v21  ;;  %v5170_v30 = vld [vmem:[#allocation2 + $0x20] sm:$0xff] }
 0x2ca   : > { %4861 = vrot.lane.b32.xlu0 %v7725_v51, %s5211_s12  ;;  %v7837_v41 = vpop.permute.xlu1 %4566  ;;  %v3131_v61 = vsel %vm1449_vm8, %v3099_v32, %v4508_v14  ;;  %v3132_v34 = vsel %vm1449_vm8, %v3100_v11, %v4509_v40  ;;  %v2974_v29 = vsel %vm1284_vm3, %v5170_v30, %v4549_v28  ;;  %v5171_v40 = vld [vmem:[#allocation2 + $0x18] sm:$0xff]  ;;  %v4504_v32 = vunpack.i.h.bf16 %v7753_v60 }
 0x2cb   : > { %v3163_v33 = vsel %vm1482_vm9, %v3131_v61, %v4538_v50  ;;  %v3164_v39 = vsel %vm1482_vm9, %v3132_v34, %v4539_v25  ;;  %v2973_v14 = vsel %vm1284_vm3, %v5171_v40, %v4548_v1  ;;  %v3006_v3 = vsel %vm1317_vm4, %v2974_v29, %v4554_v22 }
 0x2cc   : > { %v7841_v20 = vpop.permute.xlu0 %4591  ;;  %4871 = vrot.lane.b32.xlu1 %v7686_v23, %s5205_s25  ;;  %v3195_v16 = vsel %vm1515_vm10, %v3163_v33, %v4543_v19  ;;  %v3196_v31 = vsel %vm1515_vm10, %v3164_v39, %v4544_v56  ;;  %v3005_v27 = vsel %vm1317_vm4, %v2973_v14, %v4553_v52  ;;  %v4503_v11 = vunpack.i.l.bf16 %v7753_v60  ;;  %s3715_s25 = sshll.u32 %s8931_s19, 8 }
 0x2cd   : > { %v3227_v8 = vpack.c.bf16 %v3196_v31, %v3195_v16  ;;  %v3038_v50 = vsel %vm1350_vm5, %v3006_v3, %v4504_v32  ;;  %v4529_v34 = vunpack.i.h.bf16 %v7787_v63  ;;  %v4528_v56 = vunpack.i.l.bf16 %v7787_v63 }
 0x2ce   : > { %4881 = vrot.lane.b32.xlu0 %v7615_v48, %s5207_s27  ;;  %v7853_v37 = vpop.permute.xlu1 %4571  ;;  %v3037_v25 = vsel %vm1350_vm5, %v3005_v27, %v4503_v11  ;;  %v4584_v60 = vunpack.i.h.bf16 %v7813_v46  ;;  %v4533_v16 = vunpack.i.l.bf16 %v7795_v10  ;;  %v4519_v32 = vunpack.i.h.bf16 %v7765_v18 }
 0x2cf   : > { %3798 = vmatprep.mubr.msk.bf16.mxu1 %vm1591_vm11, %v3227_v8  ;;  %v3069_v33 = vsel %vm1383_vm6, %v3037_v25, %v4528_v56  ;;  %v3070_v39 = vsel %vm1383_vm6, %v3038_v50, %v4529_v34  ;;  %v4518_v11 = vunpack.i.l.bf16 %v7765_v18  ;;  %v4524_v25 = vunpack.i.h.bf16 %v7773_v26  ;;  %v5172_v18 = vld [vmem:[#allocation2 + $0x38] sm:$0xff] }
 0x2d0   : > { %v7858_v21 = vpop.permute.xlu0 %4596  ;;  %4876 = vrot.lane.b32.xlu1 %v7717_v24, %s5207_s27  ;;  %v4523_v50 = vunpack.i.l.bf16 %v7773_v26  ;;  %v4579_v56 = vunpack.i.h.bf16 %v7804_v45  ;;  %v2976_v26 = vsel %vm1284_vm3, %v5172_v18, %v4519_v32 }
 0x2d2   : > { %4891 = vrot.lane.b32.xlu0 %v7625_v49, %s5208_s28  ;;  %v7866_v13 = vpop.permute.xlu1 %4606 }
 0x2d4   : > { %v7872_v24 = vpop.permute.xlu0 %4601  ;;  %4886 = vrot.lane.b32.xlu1 %v7725_v51, %s5208_s28  ;;  %v4583_v51 = vunpack.i.l.bf16 %v7813_v46 }
 0x2d6   : > { %4901 = vrot.lane.b32.xlu0 %v7731_v15, %s5209_s29  ;;  %v7880_v61 = vpop.permute.xlu1 %4611  ;;  %v4534_v15 = vunpack.i.h.bf16 %v7795_v10 }
 0x2d8   : > { %v4627_v19 = vpop.permute.xlu0 %4626  ;;  %4896 = vrot.lane.b32.xlu1 %v7707_v38, %s5209_s29  ;;  %v3101_v38 = vsel %vm1416_vm7, %v3069_v33, %v4533_v16  ;;  %v3102_v1 = vsel %vm1416_vm7, %v3070_v39, %v4534_v15  ;;  %v5173_v33 = vld [vmem:[#allocation2 + $0x30] sm:$0xff]  ;;  %v3008_v16 = vsel %vm1317_vm4, %v2976_v26, %v4524_v25  ;;  %v4613_v25 = vunpack.i.l.bf16 %v7880_v61 }
 0x2d9   : > { %v4629_v31 = vunpack.i.h.bf16 %v4627_v19  ;;  %v4628_v28 = vunpack.i.l.bf16 %v4627_v19  ;;  %v3133_v8 = vsel %vm1449_vm8, %v3101_v38, %v4583_v51  ;;  %v3134_v22 = vsel %vm1449_vm8, %v3102_v1, %v4584_v60 }
 0x2da   : > { %4911 = vrot.lane.b32.xlu0 %v7634_v53, %s5210_s30  ;;  %v7894_v63 = vpop.permute.xlu1 %4616  ;;  %v4578_v19 = vunpack.i.l.bf16 %v7804_v45  ;;  %v2975_v39 = vsel %vm1284_vm3, %v5173_v33, %v4518_v11  ;;  %v4574_v1 = vunpack.i.h.bf16 %v7853_v37  ;;  %v8896_v33 = vld [vmem:[#allocation50_spill] sm:$0xff] }
 0x2db   : > { %v3165_v30 = vsel %vm1482_vm9, %v3133_v8, %v4628_v28  ;;  %v3166_v29 = vsel %vm1482_vm9, %v3134_v22, %v4629_v31  ;;  %v3007_v15 = vsel %vm1317_vm4, %v2975_v39, %v4523_v50  ;;  %v3040_v28 = vsel %vm1350_vm5, %v3008_v16, %v4579_v56  ;;  %v8897_v39 = vld [vmem:[#allocation51_spill] sm:$0xff] }
 0x2dc   : > { %v4632_v46 = vpop.permute.xlu0 %4631  ;;  %4906 = vrot.lane.b32.xlu1 %v7615_v48, %s5210_s30  ;;  %v3039_v31 = vsel %vm1350_vm5, %v3007_v15, %v4578_v19  ;;  %v4618_v50 = vunpack.i.l.bf16 %v7894_v63  ;;  %v5174_v16 = vld [vmem:[#allocation2 + $0x50] sm:$0xff] }
 0x2dd   : > { %v4634_v10 = vunpack.i.h.bf16 %v4632_v46  ;;  %v4633_v52 = vunpack.i.l.bf16 %v4632_v46  ;;  %v4573_v46 = vunpack.i.l.bf16 %v7853_v37 }
 0x2de   : > { %4921 = vrot.lane.b32.xlu0 %v7642_v36, %s5211_s12  ;;  %v7906_v40 = vpop.permute.xlu1 %4621 }
 0x2df   : > { %v3197_v14 = vsel %vm1515_vm10, %v3165_v30, %v4633_v52  ;;  %v3198_v27 = vsel %vm1515_vm10, %v3166_v29, %v4634_v10  ;;  %v4609_v52 = vunpack.i.h.bf16 %v7866_v13  ;;  %v4608_v30 = vunpack.i.l.bf16 %v7866_v13 }
 0x2e0   : > { %v7910_v48 = vpop.permute.xlu0 %4656  ;;  %4916 = vrot.lane.b32.xlu1 %v7625_v49, %s5211_s12  ;;  %v3228_v3 = vpack.c.bf16 %v3198_v27, %v3197_v14  ;;  %v4619_v13 = vunpack.i.h.bf16 %v7894_v63  ;;  %v4623_v56 = vunpack.i.l.bf16 %v7906_v40 }
 0x2e2   : > { %4931 = vrot.lane.b32.xlu0 %v7629_v7, %s5207_s27  ;;  %v4637_v34 = vpop.permute.xlu1 %4636  ;;  %3799 = vmatmul.mubr.msk.bf16.vlgmr.msra.gmra.mxu1 %vm1591_vm11, %v3228_v3 }
 0x2e3   : > { %v4639_v49 = vunpack.i.h.bf16 %v4637_v34  ;;  %v4638_v60 = vunpack.i.l.bf16 %v4637_v34  ;;  %v4624_v34 = vunpack.i.h.bf16 %v7906_v40 }
 0x2e4   : > { %v7923_v51 = vpop.permute.xlu0 %4661  ;;  %4926 = vrot.lane.b32.xlu1 %v7634_v53, %s5207_s27 }
 0x2e5   : > { %v3072_v8 = vsel %vm1383_vm6, %v3040_v28, %v4639_v49  ;;  %v3071_v22 = vsel %vm1383_vm6, %v3039_v31, %v4638_v60  ;;  %v5175_v31 = vld [vmem:[#allocation2 + $0x48] sm:$0xff] }
 0x2e6   : > { %4941 = vrot.lane.b32.xlu0 %v7638_v55, %s5208_s28  ;;  %v4642_v45 = vpop.permute.xlu1 %4641  ;;  %v2977_v28 = vsel %vm1284_vm3, %v5175_v31, %v4618_v50 }
 0x2e7   : > { %v4644_v38 = vunpack.i.h.bf16 %v4642_v45  ;;  %v4643_v53 = vunpack.i.l.bf16 %v4642_v45  ;;  %v2978_v45 = vsel %vm1284_vm3, %v5174_v16, %v4619_v13 }
 0x2e8   : > { %v4667_v10 = vpop.permute.xlu0 %4666  ;;  %4936 = vrot.lane.b32.xlu1 %v7642_v36, %s5208_s28  ;;  %v4614_v36 = vunpack.i.h.bf16 %v7880_v61 }
 0x2e9   : > { %v3103_v29 = vsel %vm1416_vm7, %v3071_v22, %v4643_v53  ;;  %v3104_v14 = vsel %vm1416_vm7, %v3072_v8, %v4644_v38  ;;  %v4669_v3 = vunpack.i.h.bf16 %v4667_v10  ;;  %v4668_v32 = vunpack.i.l.bf16 %v4667_v10 }
 0x2ea   : > { %v3135_v27 = vsel %vm1449_vm8, %v3103_v29, %v4573_v46  ;;  %v3136_v37 = vsel %vm1449_vm8, %v3104_v14, %v4574_v1  ;;  %4951 = vrot.lane.b32.xlu0 %v7751_v43, %s5209_s29  ;;  %v7949_v11 = vpop.permute.xlu1 %4646  ;;  %v3009_v1 = vsel %vm1317_vm4, %v2977_v28, %v4623_v56  ;;  %v3010_v46 = vsel %vm1317_vm4, %v2978_v45, %v4624_v34 }
 0x2eb   : > { %v3167_v43 = vsel %vm1482_vm9, %v3135_v27, %v4608_v30  ;;  %v3168_v49 = vsel %vm1482_vm9, %v3136_v37, %v4609_v52  ;;  %v2984_v63 = vsel %vm1284_vm3, %v8896_v33, %v4669_v3  ;;  %v2983_v40 = vsel %vm1284_vm3, %v8897_v39, %v4668_v32 }
 0x2ec   : > { %v4672_v19 = vpop.permute.xlu0 %4671  ;;  %4946 = vrot.lane.b32.xlu1 %v7737_v62, %s5209_s29  ;;  %v3199_v61 = vsel %vm1515_vm10, %v3167_v43, %v4613_v25  ;;  %v3200_v26 = vsel %vm1515_vm10, %v3168_v49, %v4614_v36  ;;  %v4569_v22 = vunpack.i.h.bf16 %v7837_v41  ;;  %v4568_v10 = vunpack.i.l.bf16 %v7837_v41 }
 0x2ed   : > { %v4674_v60 = vunpack.i.h.bf16 %v4672_v19  ;;  %v4673_v18 = vunpack.i.l.bf16 %v4672_v19  ;;  %v3229_v15 = vpack.c.bf16 %v3200_v26, %v3199_v61  ;;  %v4599_v14 = vunpack.i.h.bf16 %v7858_v21 }
 0x2ee   : > { %4961 = vrot.lane.b32.xlu0 %v7653_v6, %s5210_s30  ;;  %v7969_v62 = vpop.permute.xlu1 %4651  ;;  %v3041_v30 = vsel %vm1350_vm5, %v3009_v1, %v4568_v10  ;;  %v3042_v29 = vsel %vm1350_vm5, %v3010_v46, %v4569_v22  ;;  %v4598_v27 = vunpack.i.l.bf16 %v7858_v21  ;;  %v4663_v41 = vunpack.i.l.bf16 %v7923_v51 }
 0x2ef   : > { %v7974_v38 = vsel %vm1317_vm4, %v2983_v40, %v4673_v18  ;;  %v7977_v53 = vsel %vm1317_vm4, %v2984_v63, %v4674_v60  ;;  %3802 = vmatprep.mubr.msk.bf16.mxu1 %vm1591_vm11, %v3229_v15  ;;  %v3074_v32 = vsel %vm1383_vm6, %v3042_v29, %v4599_v14  ;;  %v4604_v25 = vunpack.i.h.bf16 %v7872_v24  ;;  %v5176_v63 = vld [vmem:[#allocation2 + $0x80] sm:$0xff]  ;;  %v5177_v40 = vld [vmem:[#allocation2 + $0x78] sm:$0xff] }
 0x2f0   : > { %v7982_v8 = vpop.permute.xlu0 %4676  ;;  %4956 = vrot.lane.b32.xlu1 %v7629_v7, %s5210_s30  ;;  %v4664_v7 = vunpack.i.h.bf16 %v7923_v51  ;;  %v3073_v3 = vsel %vm1383_vm6, %v3041_v30, %v4598_v27  ;;  %v4603_v21 = vunpack.i.l.bf16 %v7872_v24  ;;  %v4649_v60 = vunpack.i.h.bf16 %v7949_v11 }
 0x2f1   : > { %v3106_v51 = vsel %vm1416_vm7, %v3074_v32, %v4604_v25  ;;  %v4648_v18 = vunpack.i.l.bf16 %v7949_v11  ;;  %v4679_v26 = vunpack.i.h.bf16 %v7982_v8  ;;  %v4678_v33 = vunpack.i.l.bf16 %v7982_v8 }
 0x2f2   : > { %4971 = vrot.lane.b32.xlu0 %v7662_v59, %s5211_s12  ;;  %v7990_v52 = vpop.permute.xlu1 %4686  ;;  %v3138_v19 = vsel %vm1449_vm8, %v3106_v51, %v4664_v7  ;;  %v1964_v51 = vld [vmem:[#allocation2 + $0x188] sm:$0xff] }
 0x2f4   : > { %v4682_v37 = vpop.permute.xlu0 %4681  ;;  %4966 = vrot.lane.b32.xlu1 %v7638_v55, %s5211_s12  ;;  %v3105_v55 = vsel %vm1416_vm7, %v3073_v3, %v4603_v21 }
 0x2f5   : > { %v3137_v56 = vsel %vm1449_vm8, %v3105_v55, %v4663_v41  ;;  %v4683_v14 = vunpack.i.l.bf16 %v4682_v37 }
 0x2f6   : > { %4981 = vrot.lane.b32.xlu0 %v7651_v35, %s5207_s27  ;;  %v4692_v36 = vpop.permute.xlu1 %4691 }
 0x2f7   : > { %v4694_v13 = vunpack.i.h.bf16 %v4692_v36  ;;  %v4693_v50 = vunpack.i.l.bf16 %v4692_v36 }
 0x2f8   : > { %v4702_v34 = vpop.permute.xlu0 %4701  ;;  %4976 = vrot.lane.b32.xlu1 %v7653_v6, %s5207_s27 }
 0x2f9   : > { %v4704_v43 = vunpack.i.h.bf16 %v4702_v34  ;;  %v4703_v49 = vunpack.i.l.bf16 %v4702_v34  ;;  %v2982_v39 = vsel %vm1284_vm3, %v5176_v63, %v4694_v13  ;;  %v2981_v15 = vsel %vm1284_vm3, %v5177_v40, %v4693_v50 }
 0x2fa   : > { %4991 = vrot.lane.b32.xlu0 %v7655_v54, %s5208_s28  ;;  %v4697_v24 = vpop.permute.xlu1 %4696 }
 0x2fb   : > { %v4699_v61 = vunpack.i.h.bf16 %v4697_v24  ;;  %v4698_v6 = vunpack.i.l.bf16 %v4697_v24  ;;  %v3169_v1 = vsel %vm1482_vm9, %v3137_v56, %v4703_v49  ;;  %v3170_v46 = vsel %vm1482_vm9, %v3138_v19, %v4704_v43  ;;  %v1965_v56 = vld [vmem:[#allocation2 + $0x190] sm:$0x3] }
 0x2fc   : > { %v4707_v16 = vpop.permute.xlu0 %4706  ;;  %4986 = vrot.lane.b32.xlu1 %v7662_v59, %s5208_s28  ;;  %v4684_v59 = vunpack.i.h.bf16 %v4682_v37 }
 0x2fd   : > { %v3013_v45 = vsel %vm1317_vm4, %v2981_v15, %v4698_v6  ;;  %v3014_v11 = vsel %vm1317_vm4, %v2982_v39, %v4699_v61  ;;  %v4709_v31 = vunpack.i.h.bf16 %v4707_v16  ;;  %v4708_v28 = vunpack.i.l.bf16 %v4707_v16  ;;  %v5179_v61 = vld [vmem:[#allocation2 + $0xc0] sm:$0xff] }
 0x2fe   : > { %v3045_v8 = vsel %vm1350_vm5, %v3013_v45, %v4648_v18  ;;  %v3046_v22 = vsel %vm1350_vm5, %v3014_v11, %v4649_v60  ;;  %5001 = vrot.lane.b32.xlu0 %v7779_v5, %s5209_s29  ;;  %v8030_v10 = vpop.permute.xlu1 %4711  ;;  %v2469_v60 = vrot.slane %v1964_v51, 1  ;;  %v5178_v18 = vld [vmem:[#allocation2 + $0xc8] sm:$0xff] }
 0x2ff   : > { %v3201_v30 = vsel %vm1515_vm10, %v3169_v1, %v4708_v28  ;;  %v3202_v29 = vsel %vm1515_vm10, %v3170_v46, %v4709_v31  ;;  %v3077_v41 = vsel %vm1383_vm6, %v3045_v8, %v4678_v33  ;;  %v3078_v3 = vsel %vm1383_vm6, %v3046_v22, %v4679_v26  ;;  %v1963_v28 = vld [vmem:[#allocation2 + $0x180] sm:$0xff] }
 0x300   : > { %v3230_v27 = vpack.c.bf16 %v3202_v29, %v3201_v30  ;;  %v4727_v7 = vpop.permute.xlu0 %4726  ;;  %4996 = vrot.lane.b32.xlu1 %v7759_v9, %s5209_s29  ;;  %v8044_v37 = vsel %vm1416_vm7, %v3077_v41, %v4683_v14  ;;  %v8047_v25 = vsel %vm1416_vm7, %v3078_v3, %v4684_v59  ;;  %v2471_v33 = vrot.slane %v1965_v56, 1 }
 0x301   : > { %v4729_v32 = vunpack.i.h.bf16 %v4727_v7  ;;  %v4728_v36 = vunpack.i.l.bf16 %v4727_v7  ;;  %v2572_v30 = vrot.slane %v1965_v56, 2  ;;  %v8113_v56 = vld [vmem:[#allocation2 + $0x1a8] sm:$0x3] }
 0x302   : > { %5011 = vrot.lane.b32.xlu0 %v7664_v44, %s5210_s30  ;;  %v8040_v5 = vpop.permute.xlu1 %4716  ;;  %3803 = vmatmul.mubr.msk.bf16.gmra.mxu1 %vm1591_vm11, %v3230_v27  ;;  %v2468_v27 = vrot.slane %v1963_v28, 1  ;;  %v2472_v3 = vsel %vm328_vm0, %v2469_v60, %v2471_v33 }
 0x303   : > { %v8051_v9 = vsel %vm1350_vm5, %v7974_v38, %v4728_v36  ;;  %v8055_v21 = vsel %vm1350_vm5, %v7977_v53, %v4729_v32 }
 0x304   : > { %v8057_v13 = vpop.permute.xlu0 %4731  ;;  %5006 = vrot.lane.b32.xlu1 %v7651_v35, %s5210_s30  ;;  %v2470_v41 = vsel %vm328_vm0, %v2468_v27, %v2469_v60  ;;  %v4589_v27 = vunpack.i.h.bf16 %v7827_v17 }
 0x306   : > { %5021 = vrot.lane.b32.xlu0 %v7666_v42, %s5211_s12  ;;  %v4722_v50 = vpop.permute.xlu1 %4721 }
 0x307   : > { %v4724_v15 = vunpack.i.h.bf16 %v4722_v50  ;;  %v4723_v16 = vunpack.i.l.bf16 %v4722_v50 }
 0x308   : > { %v4737_v34 = vpop.permute.xlu0 %4736  ;;  %5016 = vrot.lane.b32.xlu1 %v7655_v54, %s5211_s12 }
 0x309   : > { %v4739_v55 = vunpack.i.h.bf16 %v4737_v34  ;;  %v4738_v38 = vunpack.i.l.bf16 %v4737_v34 }
 0x30a   : > { %5031 = vrot.lane.b32.xlu0 %v7670_v2, %s5207_s27  ;;  %v4747_v53 = vpop.permute.xlu1 %4746 }
 0x30b   : > { %v4749_v19 = vunpack.i.h.bf16 %v4747_v53  ;;  %v4748_v43 = vunpack.i.l.bf16 %v4747_v53  ;;  %v2988_v54 = vsel %vm1284_vm3, %v5178_v18, %v4739_v55  ;;  %v2987_v6 = vsel %vm1284_vm3, %v5179_v61, %v4738_v38  ;;  %v8107_v38 = vld [vmem:[#allocation2 + $0x1a0] sm:$0xff] }
 0x30c   : > { %v4742_v49 = vpop.permute.xlu0 %4741  ;;  %5026 = vrot.lane.b32.xlu1 %v7664_v44, %s5207_s27  ;;  %v8109_v53 = vpack.i.bf16 %v1964_v51, %v1963_v28 }
 0x30d   : > { %v4744_v35 = vunpack.i.h.bf16 %v4742_v49  ;;  %v4743_v24 = vunpack.i.l.bf16 %v4742_v49  ;;  %v2986_v45 = vsel %vm1284_vm3, %v7691_v47, %v4749_v19  ;;  %v2985_v11 = vsel %vm1284_vm3, %v7694_v4, %v4748_v43 }
 0x30e   : > { %5041 = vrot.lane.b32.xlu0 %v7672_v58, %s5208_s28  ;;  %v4752_v26 = vpop.permute.xlu1 %4751  ;;  %v2570_v47 = vrot.slane %v1964_v51, 2  ;;  %v5180_v51 = vld [vmem:[#allocation2 + $0xf8] sm:$0xff] }
 0x30f   : > { %v3019_v63 = vsel %vm1317_vm4, %v2987_v6, %v4743_v24  ;;  %v3020_v39 = vsel %vm1317_vm4, %v2988_v54, %v4744_v35  ;;  %v4754_v40 = vunpack.i.h.bf16 %v4752_v26  ;;  %v4753_v44 = vunpack.i.l.bf16 %v4752_v26  ;;  %v5181_v6 = vld [vmem:[#allocation2 + $0xf0] sm:$0xff] }
 0x310   : > { %v4762_v31 = vpop.permute.xlu0 %4761  ;;  %5036 = vrot.lane.b32.xlu1 %v7666_v42, %s5208_s28  ;;  %v2573_v55 = vsel %vm505_vm1, %v2570_v47, %v2572_v30  ;;  %v8117_v35 = vpack.i.bf16 %v2472_v3, %v2470_v41  ;;  %v2770_v54 = vrot.slane %v8107_v38, 1  ;;  %v4594_v41 = vunpack.i.h.bf16 %v7841_v20 }
 0x311   : > { %v3017_v1 = vsel %vm1317_vm4, %v2985_v11, %v4753_v44  ;;  %v3018_v46 = vsel %vm1317_vm4, %v2986_v45, %v4754_v40  ;;  %v4764_v8 = vunpack.i.h.bf16 %v4762_v31  ;;  %v4763_v22 = vunpack.i.l.bf16 %v4762_v31  ;;  %v5182_v11 = vld [vmem:[#allocation2 + $0xe0] sm:$0xff] }
 0x312   : > { %5051 = vrot.lane.b32.xlu0 %v7819_v0, %s5209_s29  ;;  %v8085_v59 = vpop.permute.xlu1 %4756  ;;  %v8088_v4 = vsel %vm1350_vm5, %v3017_v1, %v4723_v16  ;;  %v8091_v29 = vsel %vm1350_vm5, %v3018_v46, %v4724_v15  ;;  %v2569_v0 = vrot.slane %v1963_v28, 2  ;;  %v5183_v28 = vld [vmem:[#allocation2 + $0xd8] sm:$0xff]  ;;  %v4593_v3 = vunpack.i.l.bf16 %v7841_v20 }
 0x313   : > { %v8094_v42 = vsel %vm1350_vm5, %v3019_v63, %v4763_v22  ;;  %v8097_v14 = vsel %vm1350_vm5, %v3020_v39, %v4764_v8  ;;  %v2772_v63 = vrot.slane %v8113_v56, 1  ;;  %v4759_v16 = vunpack.i.h.bf16 %v8085_v59 }
 0x314   : > { %v4767_v7 = vpop.permute.xlu0 %4766  ;;  %5046 = vrot.lane.b32.xlu1 %v7785_v12, %s5209_s29  ;;  %v2571_v34 = vsel %vm505_vm1, %v2569_v0, %v2570_v47  ;;  %v8111_v12 = vld [vmem:[#allocation2 + $0x198] sm:$0xff]  ;;  %v4758_v45 = vunpack.i.l.bf16 %v8085_v59  ;;  %v4588_v59 = vunpack.i.l.bf16 %v7827_v17  ;;  %v4714_v20 = vunpack.i.h.bf16 %v8030_v10 }
 0x315   : > { %v4769_v32 = vunpack.i.h.bf16 %v4767_v7  ;;  %v4768_v36 = vunpack.i.l.bf16 %v4767_v7  ;;  %v8119_v18 = vpack.i.bf16 %v2573_v55, %v2571_v34  ;;  %v2871_v34 = vrot.slane %v8107_v38, 2 }
 0x316   : > { %5061 = vrot.lane.b32.xlu0 %v7682_v57, %s5210_s30  ;;  %v4777_v50 = vpop.permute.xlu1 %4776  ;;  %v5105_v55 = vpack.i.bf16 %v8107_v38, %v8111_v12 }
 0x317   : > { %v4779_v19 = vunpack.i.h.bf16 %v4777_v50  ;;  %v4778_v43 = vunpack.i.l.bf16 %v4777_v50  ;;  %v2992_v61 = vsel %vm1284_vm3, %v5180_v51, %v4769_v32  ;;  %v2991_v26 = vsel %vm1284_vm3, %v5181_v6, %v4768_v36 }
 0x318   : > { %v4772_v49 = vpop.permute.xlu0 %4771  ;;  %5056 = vrot.lane.b32.xlu1 %v7670_v2, %s5210_s30  ;;  %v2769_v2 = vrot.slane %v8111_v12, 1  ;;  %v4658_v36 = vunpack.i.l.bf16 %v7910_v48 }
 0x319   : > { %v4774_v24 = vunpack.i.h.bf16 %v4772_v49  ;;  %v4773_v60 = vunpack.i.l.bf16 %v4772_v49  ;;  %v2990_v31 = vsel %vm1284_vm3, %v5182_v11, %v4779_v19  ;;  %v2989_v1 = vsel %vm1284_vm3, %v5183_v28, %v4778_v43 }
 0x31a   : > { %5071 = vrot.lane.b32.xlu0 %v7686_v23, %s5211_s12  ;;  %v4782_v33 = vpop.permute.xlu1 %4781  ;;  %v4713_v19 = vunpack.i.l.bf16 %v8030_v10  ;;  %v2870_v43 = vrot.slane %v8111_v12, 2  ;;  %v8169_v49 = vsel %vm328_vm0, %v2769_v2, %v2770_v54  ;;  %v2873_v2 = vrot.slane %v8113_v56, 2 }
 0x31b   : > { %v3023_v39 = vsel %vm1317_vm4, %v2991_v26, %v4773_v60  ;;  %v3024_v40 = vsel %vm1317_vm4, %v2992_v61, %v4774_v24  ;;  %v4784_v44 = vunpack.i.h.bf16 %v4782_v33  ;;  %v4783_v15 = vunpack.i.l.bf16 %v4782_v33  ;;  %v5184_v24 = vld [vmem:[#allocation2 + $0x68] sm:$0xff]  ;;  %v5185_v60 = vld [vmem:[#allocation2 + $0x60] sm:$0xff] }
 0x31c   : > { %v4792_v46 = vpop.permute.xlu0 %4791  ;;  %5066 = vrot.lane.b32.xlu1 %v7672_v58, %s5211_s12  ;;  %v2979_v51 = vsel %vm1284_vm3, %v5185_v60, %v4588_v59  ;;  %v4718_v56 = vunpack.i.l.bf16 %v8040_v5 }
 0x31d   : > { %v3021_v8 = vsel %vm1317_vm4, %v2989_v1, %v4783_v15  ;;  %v3022_v22 = vsel %vm1317_vm4, %v2990_v31, %v4784_v44  ;;  %v4794_v47 = vunpack.i.h.bf16 %v4792_v46  ;;  %v4793_v30 = vunpack.i.l.bf16 %v4792_v46  ;;  %v5187_v46 = vld [vmem:[#allocation2 + $0x120] sm:$0xff] }
 0x31e   : > { %5081 = vrot.lane.b32.xlu0 %v7682_v57, %s5207_s27  ;;  %v8142_v7 = vpop.permute.xlu1 %4786  ;;  %v8145_v0 = vsel %vm1350_vm5, %v3021_v8, %v4758_v45  ;;  %v8148_v58 = vsel %vm1350_vm5, %v3022_v22, %v4759_v16  ;;  %v4659_v57 = vunpack.i.h.bf16 %v7910_v48  ;;  %v2980_v48 = vsel %vm1284_vm3, %v5184_v24, %v4589_v27 }
 0x31f   : > { %v8153_v32 = vsel %vm1350_vm5, %v3023_v39, %v4793_v30  ;;  %v8156_v17 = vsel %vm1350_vm5, %v3024_v40, %v4794_v47  ;;  %v3011_v33 = vsel %vm1317_vm4, %v2979_v51, %v4593_v3  ;;  %v3012_v10 = vsel %vm1317_vm4, %v2980_v48, %v4594_v41  ;;  %v5188_v3 = vld [vmem:[#allocation2 + $0x110] sm:$0xff] }
 0x320   : > { %v4797_v50 = vpop.permute.xlu0 %4796  ;;  %5076 = vrot.lane.b32.xlu1 %v8109_v53, %s5206_s26  ;;  %v8178_v39 = vsel %vm328_vm0, %v2770_v54, %v2772_v63  ;;  %v3043_v40 = vsel %vm1350_vm5, %v3011_v33, %v4658_v36  ;;  %v3044_v44 = vsel %vm1350_vm5, %v3012_v10, %v4659_v57  ;;  %v4719_v54 = vunpack.i.h.bf16 %v8040_v5  ;;  %v5186_v63 = vld [vmem:[#allocation2 + $0x128] sm:$0xff] }
 0x321   : > { %v4799_v61 = vunpack.i.h.bf16 %v4797_v50  ;;  %v4798_v6 = vunpack.i.l.bf16 %v4797_v50  ;;  %v3075_v11 = vsel %vm1383_vm6, %v3043_v40, %v4713_v19  ;;  %v4789_v41 = vunpack.i.h.bf16 %v8142_v7  ;;  %v5189_v36 = vld [vmem:[#allocation2 + $0x108] sm:$0xff] }
 0x322   : > { %5091 = vrot.lane.b32.xlu0 %v7686_v23, %s5208_s28  ;;  %v4807_v26 = vpop.permute.xlu1 %4806  ;;  %v3076_v23 = vsel %vm1383_vm6, %v3044_v44, %v4714_v20  ;;  %v4788_v5 = vunpack.i.l.bf16 %v8142_v7  ;;  %v3107_v60 = vsel %vm1416_vm7, %v3075_v11, %v4718_v56  ;;  %v4653_v33 = vunpack.i.l.bf16 %v7969_v62 }
 0x323   : > { %v4809_v15 = vunpack.i.h.bf16 %v4807_v26  ;;  %v4808_v16 = vunpack.i.l.bf16 %v4807_v26  ;;  %v2996_v1 = vsel %vm1284_vm3, %v5186_v63, %v4799_v61  ;;  %v2995_v8 = vsel %vm1284_vm3, %v5187_v46, %v4798_v6  ;;  %v5190_v63 = vld [vmem:[#allocation2 + $0x158] sm:$0xff] }
 0x324   : > { %v4802_v45 = vpop.permute.xlu0 %4801  ;;  %5086 = vrot.lane.b32.xlu1 %v8117_v35, %s5207_s27  ;;  %v3108_v7 = vsel %vm1416_vm7, %v3076_v23, %v4719_v54  ;;  %v4654_v26 = vunpack.i.h.bf16 %v7969_v62  ;;  %v2872_v62 = vsel %vm505_vm1, %v2870_v43, %v2871_v34  ;;  %v4689_v23 = vunpack.i.h.bf16 %v7990_v52  ;;  %s8427_s27 = scalar_lea.vmem %s8567_s5, %s3715_s25 }
 0x325   : > { %v4804_v31 = vunpack.i.h.bf16 %v4802_v45  ;;  %v4803_v28 = vunpack.i.l.bf16 %v4802_v45  ;;  %v2994_v57 = vsel %vm1284_vm3, %v5188_v3, %v4809_v15  ;;  %v2993_v50 = vsel %vm1284_vm3, %v5189_v36, %v4808_v16 }
 0x326   : > { %5101 = vrot.lane.b32.xlu0 %v8109_v53, %s5209_s29  ;;  %v4812_v22 = vpop.permute.xlu1 %4811  ;;  %v3139_v15 = vsel %vm1449_vm8, %v3107_v60, %v4653_v33  ;;  %v3140_v16 = vsel %vm1449_vm8, %v3108_v7, %v4654_v26  ;;  %v2874_v45 = vsel %vm505_vm1, %v2871_v34, %v2873_v2  ;;  %v4734_v3 = vunpack.i.h.bf16 %v8057_v13 }
 0x327   : > { %v3027_v47 = vsel %vm1317_vm4, %v2995_v8, %v4803_v28  ;;  %v3028_v30 = vsel %vm1317_vm4, %v2996_v1, %v4804_v31  ;;  %v4814_v27 = vunpack.i.h.bf16 %v4812_v22  ;;  %v4813_v59 = vunpack.i.l.bf16 %v4812_v22  ;;  %v5191_v1 = vld [vmem:[#allocation2 + $0x150] sm:$0xff] }
 0x328   : > { %v4822_v20 = vpop.permute.xlu0 %4821  ;;  %5096 = vrot.lane.b32.xlu1 %v8119_v18, %s5208_s28  ;;  %v3172_v43 = vsel %vm1482_vm9, %v3140_v16, %v4689_v23  ;;  %v5125_v38 = vpack.i.bf16 %v2874_v45, %v2872_v62 }
 0x329   : > { %v3025_v53 = vsel %vm1317_vm4, %v2993_v50, %v4813_v59  ;;  %v3026_v19 = vsel %vm1317_vm4, %v2994_v57, %v4814_v27  ;;  %v4824_v24 = vunpack.i.h.bf16 %v4822_v20  ;;  %v4823_v48 = vunpack.i.l.bf16 %v4822_v20 }
 0x32a   : > { %5111 = vrot.lane.b32.xlu0 %v8117_v35, %s5210_s30  ;;  %v8207_v51 = vpop.permute.xlu1 %4816  ;;  %v8210_v61 = vsel %vm1350_vm5, %v3025_v53, %v4788_v5  ;;  %v8213_v6 = vsel %vm1350_vm5, %v3026_v19, %v4789_v41  ;;  %v5115_v35 = vpack.i.bf16 %v8178_v39, %v8169_v49  ;;  %v4733_v57 = vunpack.i.l.bf16 %v8057_v13  ;;  %v5192_v19 = vld [vmem:[#allocation2 + $0x140] sm:$0xff] }
 0x32b   : > { %v8218_v10 = vsel %vm1350_vm5, %v3027_v47, %v4823_v48  ;;  %v8221_v40 = vsel %vm1350_vm5, %v3028_v30, %v4824_v24  ;;  %v4819_v20 = vunpack.i.h.bf16 %v8207_v51  ;;  %v4818_v53 = vunpack.i.l.bf16 %v8207_v51  ;;  %v5193_v48 = vld [vmem:[#allocation2 + $0x138] sm:$0xff] }
 0x32c   : > { %v4827_v44 = vpop.permute.xlu0 %4826  ;;  %5106 = vrot.lane.b32.xlu1 %v5105_v55, %s5209_s29  ;;  %v4688_v55 = vunpack.i.l.bf16 %v7990_v52 }
 0x32d   : > { %v4829_v11 = vunpack.i.h.bf16 %v4827_v44  ;;  %v4828_v49 = vunpack.i.l.bf16 %v4827_v44 }
 0x32e   : > { %5121 = vrot.lane.b32.xlu0 %v8119_v18, %s5211_s12  ;;  %v4842_v39 = vpop.permute.xlu1 %4841  ;;  %v3171_v12 = vsel %vm1482_vm9, %v3139_v15, %v4688_v55 }
 0x32f   : > { %v4844_v31 = vunpack.i.h.bf16 %v4842_v39  ;;  %v4843_v28 = vunpack.i.l.bf16 %v4842_v39  ;;  %v3000_v18 = vsel %vm1284_vm3, %v5190_v63, %v4829_v11  ;;  %v2999_v46 = vsel %vm1284_vm3, %v5191_v1, %v4828_v49  ;;  %v5194_v63 = vld [vmem:[#allocation2 + $0x170] sm:$0xff] }
 0x330   : > { %v4832_v54 = vpop.permute.xlu0 %4831  ;;  %5116 = vrot.lane.b32.xlu1 %v5115_v35, %s5210_s30  ;;  %v3141_v39 = vsel %vm1449_vm8, %v8044_v37, %v4733_v57  ;;  %v5195_v37 = vld [vmem:[#allocation2 + $0x168] sm:$0xff] }
 0x331   : > { %v3203_v34 = vsel %vm1515_vm10, %v3171_v12, %v4843_v28  ;;  %v3204_v52 = vsel %vm1515_vm10, %v3172_v43, %v4844_v31  ;;  %v4834_v2 = vunpack.i.h.bf16 %v4832_v54  ;;  %v4833_v56 = vunpack.i.l.bf16 %v4832_v54 }
 0x332   : > { %v3231_v8 = vpack.c.bf16 %v3204_v52, %v3203_v34  ;;  %v4847_v22 = vpop.permute.xlu1 %4846  ;;  %v3142_v31 = vsel %vm1449_vm8, %v8047_v25, %v4734_v3 }
 0x333   : > { %v3031_v47 = vsel %vm1317_vm4, %v2999_v46, %v4833_v56  ;;  %v3032_v30 = vsel %vm1317_vm4, %v3000_v18, %v4834_v2  ;;  %v4849_v27 = vunpack.i.h.bf16 %v4847_v22  ;;  %v4848_v59 = vunpack.i.l.bf16 %v4847_v22 }
 0x334   : > { %v4837_v41 = vpop.permute.xlu0 %4836  ;;  %5126 = vrot.lane.b32.xlu1 %v5125_v38, %s5211_s12  ;;  %3806 = vmatprep.mubr.msk.bf16.mxu1 %vm1591_vm11, %v3231_v8 }
 0x335   : > { %v2998_v24 = vsel %vm1284_vm3, %v5192_v19, %v4849_v27  ;;  %v2997_v60 = vsel %vm1284_vm3, %v5193_v48, %v4848_v59  ;;  %v4839_v13 = vunpack.i.h.bf16 %v4837_v41  ;;  %v4838_v15 = vunpack.i.l.bf16 %v4837_v41 }
 0x336   : > { %v4852_v5 = vpop.permute.xlu1 %4851 }
 0x337   : > { %v4854_v36 = vunpack.i.h.bf16 %v4852_v5  ;;  %v4853_v50 = vunpack.i.l.bf16 %v4852_v5  ;;  %v3173_v43 = vsel %vm1482_vm9, %v3141_v39, %v4838_v15  ;;  %v3174_v54 = vsel %vm1482_vm9, %v3142_v31, %v4839_v13 }
 0x338   : > { %v4857_v7 = vpop.permute.xlu0 %4856 }
 0x339   : > { %v3029_v26 = vsel %vm1317_vm4, %v2997_v60, %v4853_v50  ;;  %v3030_v33 = vsel %vm1317_vm4, %v2998_v24, %v4854_v36  ;;  %v4859_v44 = vunpack.i.h.bf16 %v4857_v7  ;;  %v4858_v35 = vunpack.i.l.bf16 %v4857_v7 }
 0x33a   : > { %v4867_v16 = vpop.permute.xlu1 %4866  ;;  %v8260_v62 = vsel %vm1350_vm5, %v3029_v26, %v4818_v53  ;;  %v8263_v51 = vsel %vm1350_vm5, %v3030_v33, %v4819_v20 }
 0x33b   : > { %v8266_v45 = vsel %vm1350_vm5, %v3031_v47, %v4858_v35  ;;  %v8269_v23 = vsel %vm1350_vm5, %v3032_v30, %v4859_v44  ;;  %v4869_v55 = vunpack.i.h.bf16 %v4867_v16  ;;  %v4868_v11 = vunpack.i.l.bf16 %v4867_v16 }
 0x33c   : > { %v4862_v49 = vpop.permute.xlu0 %4861 }
 0x33d   : > { %v4864_v28 = vunpack.i.h.bf16 %v4862_v49  ;;  %v4863_v12 = vunpack.i.l.bf16 %v4862_v49  ;;  %v3002_v18 = vsel %vm1284_vm3, %v5194_v63, %v4869_v55  ;;  %v3001_v1 = vsel %vm1284_vm3, %v5195_v37, %v4868_v11 }
 0x33e   : > { %v4872_v38 = vpop.permute.xlu1 %4871 }
 0x33f   : > { %v3205_v34 = vsel %vm1515_vm10, %v3173_v43, %v4863_v12  ;;  %v3206_v52 = vsel %vm1515_vm10, %v3174_v54, %v4864_v28  ;;  %v4874_v2 = vunpack.i.h.bf16 %v4872_v38  ;;  %v4873_v56 = vunpack.i.l.bf16 %v4872_v38 }
 0x340   : > { %v3232_v25 = vpack.c.bf16 %v3206_v52, %v3205_v34  ;;  %v4882_v46 = vpop.permute.xlu0 %4881 }
 0x341   : > { %v8282_v8 = vsel %vm1317_vm4, %v3001_v1, %v4873_v56  ;;  %v8285_v22 = vsel %vm1317_vm4, %v3002_v18, %v4874_v2  ;;  %v4884_v41 = vunpack.i.h.bf16 %v4882_v46  ;;  %v4883_v5 = vunpack.i.l.bf16 %v4882_v46 }
 0x342   : > { %v4877_v47 = vpop.permute.xlu1 %4876  ;;  %3807 = vmatmul.mubr.msk.bf16.gmra.mxu1 %vm1591_vm11, %v3232_v25 }
 0x343   : > { %v4879_v57 = vunpack.i.h.bf16 %v4877_v47  ;;  %v4878_v36 = vunpack.i.l.bf16 %v4877_v47  ;;  %v3081_v48 = vsel %vm1383_vm6, %v8088_v4, %v4883_v5  ;;  %v3082_v60 = vsel %vm1383_vm6, %v8091_v29, %v4884_v41 }
 0x344   : > { %v4892_v30 = vpop.permute.xlu0 %4891 }
 0x345   : > { %v4894_v50 = vunpack.i.h.bf16 %v4892_v30  ;;  %v4893_v20 = vunpack.i.l.bf16 %v4892_v30  ;;  %v3080_v16 = vsel %vm1383_vm6, %v8055_v21, %v4879_v57  ;;  %v3079_v55 = vsel %vm1383_vm6, %v8051_v9, %v4878_v36 }
 0x346   : > { %v4887_v27 = vpop.permute.xlu1 %4886 }
 0x347   : > { %v4889_v53 = vunpack.i.h.bf16 %v4887_v27  ;;  %v4888_v19 = vunpack.i.l.bf16 %v4887_v27  ;;  %v3113_v11 = vsel %vm1416_vm7, %v3081_v48, %v4893_v20  ;;  %v3114_v4 = vsel %vm1416_vm7, %v3082_v60, %v4894_v50 }
 0x348   : > { %v4902_v59 = vpop.permute.xlu0 %4901 }
 0x349   : > { %v4904_v7 = vunpack.i.h.bf16 %v4902_v59  ;;  %v4903_v26 = vunpack.i.l.bf16 %v4902_v59  ;;  %v3111_v49 = vsel %vm1416_vm7, %v3079_v55, %v4888_v19  ;;  %v3112_v29 = vsel %vm1416_vm7, %v3080_v16, %v4889_v53 }
 0x34a   : > { %v4897_v3 = vpop.permute.xlu1 %4896 }
 0x34b   : > { %v4899_v33 = vunpack.i.h.bf16 %v4897_v3  ;;  %v4898_v44 = vunpack.i.l.bf16 %v4897_v3  ;;  %v3145_v12 = vsel %vm1449_vm8, %v3113_v11, %v4903_v26  ;;  %v3146_v43 = vsel %vm1449_vm8, %v3114_v4, %v4904_v7 }
 0x34c   : > { %v4912_v24 = vpop.permute.xlu0 %4911 }
 0x34d   : > { %v4914_v35 = vunpack.i.h.bf16 %v4912_v24  ;;  %v4913_v13 = vunpack.i.l.bf16 %v4912_v24  ;;  %v3143_v38 = vsel %vm1449_vm8, %v3111_v49, %v4898_v44  ;;  %v3144_v9 = vsel %vm1449_vm8, %v3112_v29, %v4899_v33 }
 0x34e   : > { %v4907_v15 = vpop.permute.xlu1 %4906 }
 0x34f   : > { %v4909_v39 = vunpack.i.h.bf16 %v4907_v15  ;;  %v4908_v31 = vunpack.i.l.bf16 %v4907_v15  ;;  %v3177_v34 = vsel %vm1482_vm9, %v3145_v12, %v4913_v13  ;;  %v3178_v52 = vsel %vm1482_vm9, %v3146_v43, %v4914_v35 }
 0x350   : > { %v4922_v28 = vpop.permute.xlu0 %4921 }
 0x351   : > { %v4924_v54 = vunpack.i.h.bf16 %v4922_v28  ;;  %v4923_v21 = vunpack.i.l.bf16 %v4922_v28  ;;  %v3175_v1 = vsel %vm1482_vm9, %v3143_v38, %v4908_v31  ;;  %v3176_v25 = vsel %vm1482_vm9, %v3144_v9, %v4909_v39 }
 0x352   : > { %v4917_v2 = vpop.permute.xlu1 %4916 }
 0x353   : > { %v3209_v56 = vsel %vm1515_vm10, %v3177_v34, %v4923_v21  ;;  %v3210_v63 = vsel %vm1515_vm10, %v3178_v52, %v4924_v54  ;;  %v4919_v18 = vunpack.i.h.bf16 %v4917_v2  ;;  %v4918_v37 = vunpack.i.l.bf16 %v4917_v2 }
 0x354   : > { %v3234_v46 = vpack.c.bf16 %v3210_v63, %v3209_v56  ;;  %v4932_v47 = vpop.permute.xlu0 %4931 }
 0x355   : > { %v3207_v30 = vsel %vm1515_vm10, %v3175_v1, %v4918_v37  ;;  %v3208_v27 = vsel %vm1515_vm10, %v3176_v25, %v4919_v18  ;;  %v4934_v36 = vunpack.i.h.bf16 %v4932_v47  ;;  %v4933_v50 = vunpack.i.l.bf16 %v4932_v47 }
 0x356   : > { %v3233_v59 = vpack.c.bf16 %v3208_v27, %v3207_v30  ;;  %v4927_v41 = vpop.permute.xlu1 %4926 }
 0x357   : > { %v4929_v53 = vunpack.i.h.bf16 %v4927_v41  ;;  %v4928_v19 = vunpack.i.l.bf16 %v4927_v41  ;;  %v3085_v33 = vsel %vm1383_vm6, %v8145_v0, %v4933_v50  ;;  %v3086_v44 = vsel %vm1383_vm6, %v8148_v58, %v4934_v36 }
 0x358   : > { %v4942_v5 = vpop.permute.xlu0 %4941  ;;  %3810 = vmatprep.mubr.msk.bf16.mxu1 %vm1591_vm11, %v3233_v59 }
 0x359   : > { %3811 = vmatmul.mubr.msk.bf16.gmra.mxu1 %vm1591_vm11, %v3234_v46  ;;  %v4944_v24 = vunpack.i.h.bf16 %v4942_v5  ;;  %v4943_v48 = vunpack.i.l.bf16 %v4942_v5  ;;  %v3084_v49 = vsel %vm1383_vm6, %v8097_v14, %v4929_v53  ;;  %v3083_v29 = vsel %vm1383_vm6, %v8094_v42, %v4928_v19 }
 0x35a   : > { %v4937_v3 = vpop.permute.xlu1 %4936 }
 0x35b   : > { %v4939_v60 = vunpack.i.h.bf16 %v4937_v3  ;;  %v4938_v7 = vunpack.i.l.bf16 %v4937_v3  ;;  %v3117_v39 = vsel %vm1416_vm7, %v3085_v33, %v4943_v48  ;;  %v3118_v0 = vsel %vm1416_vm7, %v3086_v44, %v4944_v24 }
 0x35c   : > { %v4952_v57 = vpop.permute.xlu0 %4951 }
 0x35d   : > { %v4954_v35 = vunpack.i.h.bf16 %v4952_v57  ;;  %v4953_v13 = vunpack.i.l.bf16 %v4952_v57  ;;  %v3115_v31 = vsel %vm1416_vm7, %v3083_v29, %v4938_v7  ;;  %v3116_v58 = vsel %vm1416_vm7, %v3084_v49, %v4939_v60 }
 0x35e   : > { %v4947_v20 = vpop.permute.xlu1 %4946 }
 0x35f   : > { %v4949_v15 = vunpack.i.h.bf16 %v4947_v20  ;;  %v4948_v16 = vunpack.i.l.bf16 %v4947_v20  ;;  %v3149_v54 = vsel %vm1449_vm8, %v3117_v39, %v4953_v13  ;;  %v3150_v21 = vsel %vm1449_vm8, %v3118_v0, %v4954_v35 }
 0x360   : > { %v4962_v26 = vpop.permute.xlu0 %4961 }
 0x361   : > { %v4964_v55 = vunpack.i.h.bf16 %v4962_v26  ;;  %v4963_v11 = vunpack.i.l.bf16 %v4962_v26  ;;  %v3147_v9 = vsel %vm1449_vm8, %v3115_v31, %v4948_v16  ;;  %v3148_v42 = vsel %vm1449_vm8, %v3116_v58, %v4949_v15 }
 0x362   : > { %v4957_v4 = vpop.permute.xlu1 %4956 }
 0x363   : > { %v4959_v28 = vunpack.i.h.bf16 %v4957_v4  ;;  %v4958_v12 = vunpack.i.l.bf16 %v4957_v4  ;;  %v3181_v34 = vsel %vm1482_vm9, %v3149_v54, %v4963_v11  ;;  %v3182_v52 = vsel %vm1482_vm9, %v3150_v21, %v4964_v55 }
 0x364   : > { %v4972_v43 = vpop.permute.xlu0 %4971 }
 0x365   : > { %v4974_v38 = vunpack.i.h.bf16 %v4972_v43  ;;  %v4973_v14 = vunpack.i.l.bf16 %v4972_v43  ;;  %v3179_v1 = vsel %vm1482_vm9, %v3147_v9, %v4958_v12  ;;  %v3180_v25 = vsel %vm1482_vm9, %v3148_v42, %v4959_v28 }
 0x366   : > { %v4967_v2 = vpop.permute.xlu1 %4966 }
 0x367   : > { %v3213_v56 = vsel %vm1515_vm10, %v3181_v34, %v4973_v14  ;;  %v3214_v63 = vsel %vm1515_vm10, %v3182_v52, %v4974_v38  ;;  %v4969_v18 = vunpack.i.h.bf16 %v4967_v2  ;;  %v4968_v37 = vunpack.i.l.bf16 %v4967_v2 }
 0x368   : > { %v3236_v46 = vpack.c.bf16 %v3214_v63, %v3213_v56  ;;  %v4982_v47 = vpop.permute.xlu0 %4981 }
 0x369   : > { %v3211_v30 = vsel %vm1515_vm10, %v3179_v1, %v4968_v37  ;;  %v3212_v27 = vsel %vm1515_vm10, %v3180_v25, %v4969_v18  ;;  %v4984_v36 = vunpack.i.h.bf16 %v4982_v47  ;;  %v4983_v50 = vunpack.i.l.bf16 %v4982_v47 }
 0x36a   : > { %v3235_v59 = vpack.c.bf16 %v3212_v27, %v3211_v30  ;;  %v4977_v41 = vpop.permute.xlu1 %4976 }
 0x36b   : > { %v4979_v53 = vunpack.i.h.bf16 %v4977_v41  ;;  %v4978_v19 = vunpack.i.l.bf16 %v4977_v41  ;;  %v3089_v33 = vsel %vm1383_vm6, %v8210_v61, %v4983_v50  ;;  %v3090_v44 = vsel %vm1383_vm6, %v8213_v6, %v4984_v36 }
 0x36c   : > { %v4992_v5 = vpop.permute.xlu0 %4991  ;;  %3814 = vmatprep.mubr.msk.bf16.mxu1 %vm1591_vm11, %v3235_v59 }
 0x36d   : > { %3815 = vmatmul.mubr.msk.bf16.gmra.mxu1 %vm1591_vm11, %v3236_v46  ;;  %v4994_v24 = vunpack.i.h.bf16 %v4992_v5  ;;  %v4993_v48 = vunpack.i.l.bf16 %v4992_v5  ;;  %v3088_v49 = vsel %vm1383_vm6, %v8156_v17, %v4979_v53  ;;  %v3087_v29 = vsel %vm1383_vm6, %v8153_v32, %v4978_v19 }
 0x36e   : > { %v4987_v3 = vpop.permute.xlu1 %4986 }
 0x36f   : > { %v4989_v60 = vunpack.i.h.bf16 %v4987_v3  ;;  %v4988_v7 = vunpack.i.l.bf16 %v4987_v3  ;;  %v3121_v39 = vsel %vm1416_vm7, %v3089_v33, %v4993_v48  ;;  %v3122_v61 = vsel %vm1416_vm7, %v3090_v44, %v4994_v24 }
 0x370   : > { %v5002_v57 = vpop.permute.xlu0 %5001 }
 0x371   : > { %v5004_v35 = vunpack.i.h.bf16 %v5002_v57  ;;  %v5003_v13 = vunpack.i.l.bf16 %v5002_v57  ;;  %v3119_v0 = vsel %vm1416_vm7, %v3087_v29, %v4988_v7  ;;  %v3120_v6 = vsel %vm1416_vm7, %v3088_v49, %v4989_v60 }
 0x372   : > { %v4997_v20 = vpop.permute.xlu1 %4996 }
 0x373   : > { %v4999_v15 = vunpack.i.h.bf16 %v4997_v20  ;;  %v4998_v16 = vunpack.i.l.bf16 %v4997_v20  ;;  %v3153_v12 = vsel %vm1449_vm8, %v3121_v39, %v5003_v13  ;;  %v3154_v43 = vsel %vm1449_vm8, %v3122_v61, %v5004_v35 }
 0x374   : > { %v5012_v26 = vpop.permute.xlu0 %5011 }
 0x375   : > { %v5014_v55 = vunpack.i.h.bf16 %v5012_v26  ;;  %v5013_v11 = vunpack.i.l.bf16 %v5012_v26  ;;  %v3151_v21 = vsel %vm1449_vm8, %v3119_v0, %v4998_v16  ;;  %v3152_v32 = vsel %vm1449_vm8, %v3120_v6, %v4999_v15 }
 0x376   : > { %v5007_v4 = vpop.permute.xlu1 %5006 }
 0x377   : > { %v5009_v31 = vunpack.i.h.bf16 %v5007_v4  ;;  %v5008_v58 = vunpack.i.l.bf16 %v5007_v4  ;;  %v3185_v38 = vsel %vm1482_vm9, %v3153_v12, %v5013_v11  ;;  %v3186_v14 = vsel %vm1482_vm9, %v3154_v43, %v5014_v55 }
 0x378   : > { %v5022_v28 = vpop.permute.xlu0 %5021 }
 0x379   : > { %v5024_v54 = vunpack.i.h.bf16 %v5022_v28  ;;  %v5023_v17 = vunpack.i.l.bf16 %v5022_v28  ;;  %v3183_v56 = vsel %vm1482_vm9, %v3151_v21, %v5008_v58  ;;  %v3184_v63 = vsel %vm1482_vm9, %v3152_v32, %v5009_v31 }
 0x37a   : > { %v5017_v9 = vpop.permute.xlu1 %5016 }
 0x37b   : > { %v3217_v42 = vsel %vm1515_vm10, %v3185_v38, %v5023_v17  ;;  %v3218_v34 = vsel %vm1515_vm10, %v3186_v14, %v5024_v54  ;;  %v5019_v52 = vunpack.i.h.bf16 %v5017_v9  ;;  %v5018_v2 = vunpack.i.l.bf16 %v5017_v9 }
 0x37c   : > { %v3238_v18 = vpack.c.bf16 %v3218_v34, %v3217_v42  ;;  %v5032_v37 = vpop.permute.xlu0 %5031 }
 0x37d   : > { %v3215_v1 = vsel %vm1515_vm10, %v3183_v56, %v5018_v2  ;;  %v3216_v25 = vsel %vm1515_vm10, %v3184_v63, %v5019_v52  ;;  %v5034_v41 = vunpack.i.h.bf16 %v5032_v37  ;;  %v5033_v5 = vunpack.i.l.bf16 %v5032_v37 }
 0x37e   : > { %v3237_v46 = vpack.c.bf16 %v3216_v25, %v3215_v1  ;;  %v5027_v47 = vpop.permute.xlu1 %5026 }
 0x37f   : > { %v5029_v57 = vunpack.i.h.bf16 %v5027_v47  ;;  %v5028_v36 = vunpack.i.l.bf16 %v5027_v47  ;;  %v3093_v48 = vsel %vm1383_vm6, %v8260_v62, %v5033_v5  ;;  %v3094_v60 = vsel %vm1383_vm6, %v8263_v51, %v5034_v41 }
 0x380   : > { %v5042_v30 = vpop.permute.xlu0 %5041  ;;  %3818 = vmatprep.mubr.msk.bf16.mxu1 %vm1591_vm11, %v3237_v46 }
 0x381   : > { %3819 = vmatmul.mubr.msk.bf16.gmra.mxu1 %vm1591_vm11, %v3238_v18  ;;  %v5044_v50 = vunpack.i.h.bf16 %v5042_v30  ;;  %v5043_v20 = vunpack.i.l.bf16 %v5042_v30  ;;  %v3092_v16 = vsel %vm1383_vm6, %v8221_v40, %v5029_v57  ;;  %v3091_v55 = vsel %vm1383_vm6, %v8218_v10, %v5028_v36 }
 0x382   : > { %v5037_v27 = vpop.permute.xlu1 %5036 }
 0x383   : > { %v5039_v53 = vunpack.i.h.bf16 %v5037_v27  ;;  %v5038_v19 = vunpack.i.l.bf16 %v5037_v27  ;;  %v3125_v11 = vsel %vm1416_vm7, %v3093_v48, %v5043_v20  ;;  %v3126_v62 = vsel %vm1416_vm7, %v3094_v60, %v5044_v50 }
 0x384   : > { %v5052_v59 = vpop.permute.xlu0 %5051 }
 0x385   : > { %v5054_v7 = vunpack.i.h.bf16 %v5052_v59  ;;  %v5053_v26 = vunpack.i.l.bf16 %v5052_v59  ;;  %v3123_v4 = vsel %vm1416_vm7, %v3091_v55, %v5038_v19  ;;  %v3124_v51 = vsel %vm1416_vm7, %v3092_v16, %v5039_v53 }
 0x386   : > { %v5047_v3 = vpop.permute.xlu1 %5046 }
 0x387   : > { %v5049_v33 = vunpack.i.h.bf16 %v5047_v3  ;;  %v5048_v44 = vunpack.i.l.bf16 %v5047_v3  ;;  %v3157_v61 = vsel %vm1449_vm8, %v3125_v11, %v5053_v26  ;;  %v3158_v0 = vsel %vm1449_vm8, %v3126_v62, %v5054_v7 }
 0x388   : > { %v5062_v24 = vpop.permute.xlu0 %5061 }
 0x389   : > { %v5064_v35 = vunpack.i.h.bf16 %v5062_v24  ;;  %v5063_v13 = vunpack.i.l.bf16 %v5062_v24  ;;  %v3155_v31 = vsel %vm1449_vm8, %v3123_v4, %v5048_v44  ;;  %v3156_v10 = vsel %vm1449_vm8, %v3124_v51, %v5049_v33 }
 0x38a   : > { %v5057_v15 = vpop.permute.xlu1 %5056 }
 0x38b   : > { %v5059_v49 = vunpack.i.h.bf16 %v5057_v15  ;;  %v5058_v29 = vunpack.i.l.bf16 %v5057_v15  ;;  %v3189_v58 = vsel %vm1482_vm9, %v3157_v61, %v5063_v13  ;;  %v3190_v28 = vsel %vm1482_vm9, %v3158_v0, %v5064_v35  ;;  %v8407_v15 = vld [vmem:[%s8566_s4] ss:$0 sm:$0xff] }
 0x38c   : > { %v5072_v39 = vpop.permute.xlu0 %5071 }
 0x38d   : > { %v5074_v6 = vunpack.i.h.bf16 %v5072_v39  ;;  %v5073_v40 = vunpack.i.l.bf16 %v5072_v39  ;;  %v3187_v32 = vsel %vm1482_vm9, %v3155_v31, %v5058_v29  ;;  %v3188_v38 = vsel %vm1482_vm9, %v3156_v10, %v5059_v49 }
 0x38e   : > { %v5067_v12 = vpop.permute.xlu1 %5066 }
 0x38f   : > { %v3221_v43 = vsel %vm1515_vm10, %v3189_v58, %v5073_v40  ;;  %v3222_v54 = vsel %vm1515_vm10, %v3190_v28, %v5074_v6  ;;  %v5069_v17 = vunpack.i.h.bf16 %v5067_v12  ;;  %v5068_v21 = vunpack.i.l.bf16 %v5067_v12 }
 0x390   : > { %v3240_v14 = vpack.c.bf16 %v3222_v54, %v3221_v43  ;;  %v5082_v9 = vpop.permute.xlu0 %5081  ;;  %v8898_v43 = vld [vmem:[#allocation3_spill] sm:$0xff] }
 0x391   : > { %v3219_v42 = vsel %vm1515_vm10, %v3187_v32, %v5068_v21  ;;  %v3220_v34 = vsel %vm1515_vm10, %v3188_v38, %v5069_v17  ;;  %v5084_v37 = vunpack.i.h.bf16 %v5082_v9  ;;  %v5083_v1 = vunpack.i.l.bf16 %v5082_v9  ;;  %v8899_v32 = vld [vmem:[#allocation9_spill] sm:$0xff] }
 0x392   : > { %v3239_v52 = vpack.c.bf16 %v3220_v34, %v3219_v42  ;;  %v5077_v2 = vpop.permute.xlu1 %5076 }
 0x393   : > { %v5079_v30 = vunpack.i.h.bf16 %v5077_v2  ;;  %v5078_v27 = vunpack.i.l.bf16 %v5077_v2  ;;  %v3095_v3 = vsel %vm1383_vm6, %v8266_v45, %v5083_v1  ;;  %v3096_v57 = vsel %vm1383_vm6, %v8269_v23, %v5084_v37  ;;  %v8900_v1 = vld [vmem:[#allocation4_spill] sm:$0xff] }
 0x394   : > { %v5092_v56 = vpop.permute.xlu0 %5091  ;;  %3822 = vmatprep.mubr.msk.bf16.mxu1 %vm1591_vm11, %v3239_v52 }
 0x395   : > { %3823 = vmatmul.mubr.msk.bf16.gmra.mxu1 %vm1591_vm11, %v3240_v14  ;;  %v5094_v46 = vunpack.i.h.bf16 %v5092_v56  ;;  %v5093_v47 = vunpack.i.l.bf16 %v5092_v56  ;;  %v3065_v60 = vsel %vm1350_vm5, %v8282_v8, %v5078_v27  ;;  %v3066_v7 = vsel %vm1350_vm5, %v8285_v22, %v5079_v30  ;;  %v8901_v27 = vld [vmem:[#allocation10_spill] sm:$0xff] }
 0x396   : > { %v5087_v63 = vpop.permute.xlu1 %5086 }
 0x397   : > { %v3127_v53 = vsel %vm1416_vm7, %v3095_v3, %v5093_v47  ;;  %v3128_v19 = vsel %vm1416_vm7, %v3096_v57, %v5094_v46  ;;  %v5089_v24 = vunpack.i.h.bf16 %v5087_v63  ;;  %v5088_v48 = vunpack.i.l.bf16 %v5087_v63 }
 0x398   : > { %v5102_v18 = vpop.permute.xlu0 %5101 }
 0x399   : > { %v5104_v59 = vunpack.i.h.bf16 %v5102_v18  ;;  %v5103_v41 = vunpack.i.l.bf16 %v5102_v18  ;;  %v3097_v4 = vsel %vm1383_vm6, %v3065_v60, %v5088_v48  ;;  %v3098_v51 = vsel %vm1383_vm6, %v3066_v7, %v5089_v24  ;;  %v8903_v24 = vld [vmem:[#allocation6_spill] sm:$0xff] }
 0x39a   : > { %v5097_v25 = vpop.permute.xlu1 %5096 }
 0x39b   : > { %v3159_v45 = vsel %vm1449_vm8, %v3127_v53, %v5103_v41  ;;  %v3160_v26 = vsel %vm1449_vm8, %v3128_v19, %v5104_v59  ;;  %v5099_v33 = vunpack.i.h.bf16 %v5097_v25  ;;  %v5098_v44 = vunpack.i.l.bf16 %v5097_v25 }
 0x39c   : > { %v5112_v5 = vpop.permute.xlu0 %5111 }
 0x39d   : > { %v5114_v36 = vunpack.i.h.bf16 %v5112_v5  ;;  %v5113_v50 = vunpack.i.l.bf16 %v5112_v5  ;;  %v3129_v31 = vsel %vm1416_vm7, %v3097_v4, %v5098_v44  ;;  %v3130_v10 = vsel %vm1416_vm7, %v3098_v51, %v5099_v33 }
 0x39e   : > { %v5107_v20 = vpop.permute.xlu1 %5106 }
 0x39f   : > { %v3191_v8 = vsel %vm1482_vm9, %v3159_v45, %v5113_v50  ;;  %v3192_v16 = vsel %vm1482_vm9, %v3160_v26, %v5114_v36  ;;  %v5109_v22 = vunpack.i.h.bf16 %v5107_v20  ;;  %v5108_v55 = vunpack.i.l.bf16 %v5107_v20  ;;  %v8902_v36 = vld [vmem:[#allocation14_spill] sm:$0xff]  ;;  %v8904_v26 = vld [vmem:[#allocation16_spill] sm:$0xff] }
 0x3a0   : > { %v5122_v23 = vpop.permute.xlu0 %5121 }
 0x3a1   : > { %v5124_v35 = vunpack.i.h.bf16 %v5122_v23  ;;  %v5123_v13 = vunpack.i.l.bf16 %v5122_v23  ;;  %v3161_v28 = vsel %vm1449_vm8, %v3129_v31, %v5108_v55  ;;  %v3162_v12 = vsel %vm1449_vm8, %v3130_v10, %v5109_v22 }
 0x3a2   : > { %v5117_v11 = vpop.permute.xlu1 %5116  ;;  %v3800_v62 = vpop.f32.mrf.mxu1 }
 0x3a3   : > { %v3223_v49 = vsel %vm1515_vm10, %v3191_v8, %v5123_v13  ;;  %v3224_v29 = vsel %vm1515_vm10, %v3192_v16, %v5124_v35  ;;  %v5119_v61 = vunpack.i.h.bf16 %v5117_v11  ;;  %v5118_v0 = vunpack.i.l.bf16 %v5117_v11  ;;  %v8905_v35 = vld [vmem:[#allocation7_spill] sm:$0xff]  ;;  %v8906_v11 = vld [vmem:[#allocation21_spill] sm:$0xff] }
 0x3a4   : > { %v3241_v39 = vpack.c.bf16 %v3224_v29, %v3223_v49  ;;  %v3364_v6 = vadd.f32 %v3800_v62, %v8407_v15  ;;  %v3355_v40 = vpop.f32.mrf.mxu1  ;;  %v8907_v29 = vld [vmem:[#allocation12_spill] sm:$0xff] }
 0x3a5   : > { %v3356_v58 = vadd.f32 %v8407_v15, %v3355_v40  ;;  %v3193_v34 = vsel %vm1482_vm9, %v3161_v28, %v5118_v0  ;;  %v3194_v52 = vsel %vm1482_vm9, %v3162_v12, %v5119_v61  ;;  %v8908_v40 = vld [vmem:[#allocation22_spill] sm:$0xff]  ;;  %v8909_v28 = vld [vmem:[#allocation13_spill] sm:$0xff] }
 0x3a6   : > { %v3516_v54 = vadd.f32 %v3364_v6, %v8898_v43  ;;  %v5127_v17 = vpop.permute.xlu1 %5126  ;;  %v3801_v21 = vpop.f32.mrf.mxu1  ;;  %3826 = vmatprep.mubr.msk.bf16.mxu1 %vm1591_vm11, %v3241_v39 }
 0x3a7   : > { %v3514_v38 = vadd.f32 %v3356_v58, %v8899_v32  ;;  %v5129_v14 = vunpack.i.h.bf16 %v5127_v17  ;;  %v5128_v9 = vunpack.i.l.bf16 %v5127_v17  ;;  %v3367_v42 = vadd.f32 %v3801_v21, %v8407_v15  ;;  %v8910_v32 = vld [vmem:[#allocation26_spill] sm:$0xff] }
 0x3a8   : > { %v3548_v2 = vmax.f32 %v3516_v54, 0.0  ;;  %v3358_v56 = vpop.f32.mrf.mxu1 }
 0x3a9   : > { %v3546_v63 = vmax.f32 %v3514_v38, 0.0  ;;  %v3225_v18 = vsel %vm1515_vm10, %v3193_v34, %v5128_v9  ;;  %v3226_v37 = vsel %vm1515_vm10, %v3194_v52, %v5129_v14  ;;  %v3517_v25 = vadd.f32 %v3367_v42, %v8900_v1  ;;  %v8911_v34 = vld [vmem:[#allocation17_spill] sm:$0xff] }
 0x3aa   : > { %3580 = vst.msk [vmem:[%s8427_s27 + $0x10] sm:$0xff] %vm1284_vm3, %v3548_v2  ;;  %v3242_v46 = vpack.c.bf16 %v3226_v37, %v3225_v18  ;;  %v3359_v47 = vadd.f32 %v8407_v15, %v3358_v56  ;;  %v8912_v18 = vld [vmem:[#allocation27_spill] sm:$0xff] }
 0x3ab   : > { %3578 = vst.msk [vmem:[%s8427_s27] sm:$0xff] %vm1284_vm3, %v3546_v63  ;;  %v3549_v30 = vmax.f32 %v3517_v25, 0.0 }
 0x3ac   : > { %v3515_v59 = vadd.f32 %v3359_v47, %v8901_v27  ;;  %3827 = vmatmul.mubr.msk.bf16.gmra.mxu1 %vm1591_vm11, %v3242_v46  ;;  %v8913_v46 = vld [vmem:[#allocation19_spill] sm:$0xff] }
 0x3ad   : > { %3581 = vst.msk [vmem:[%s8427_s27 + $0x18] sm:$0xff] %vm1284_vm3, %v3549_v30 }
 0x3ae   : > { %v3547_v41 = vmax.f32 %v3515_v59, 0.0 }
 0x3b0   : > { %3579 = vst.msk [vmem:[%s8427_s27 + $0x8] sm:$0xff] %vm1284_vm3, %v3547_v41 }
 0x3c2   : > { %v3804_v5 = vpop.f32.mrf.mxu1 }
 0x3c3   : > { %v3380_v3 = vadd.f32 %v3804_v5, %v8407_v15  ;;  %v8914_v5 = vld [vmem:[#allocation34_spill] sm:$0xff] }
 0x3c4   : > { %v3371_v57 = vpop.f32.mrf.mxu1 }
 0x3c5   : > { %v3520_v50 = vadd.f32 %v3380_v3, %v8902_v36  ;;  %v3372_v20 = vadd.f32 %v8407_v15, %v3371_v57 }
 0x3c6   : > { %v3805_v53 = vpop.f32.mrf.mxu1 }
 0x3c7   : > { %v3552_v19 = vmax.f32 %v3520_v50, 0.0  ;;  %v3518_v48 = vadd.f32 %v3372_v20, %v8903_v24  ;;  %v3383_v60 = vadd.f32 %v3805_v53, %v8407_v15  ;;  %v8915_v20 = vld [vmem:[#allocation23_spill] sm:$0xff] }
 0x3c8   : > { %v3374_v7 = vpop.f32.mrf.mxu1 }
 0x3c9   : > { %3584 = vst.msk [vmem:[%s8427_s27 + $0x30] sm:$0xff] %vm1284_vm3, %v3552_v19  ;;  %v3550_v45 = vmax.f32 %v3518_v48, 0.0  ;;  %v3521_v23 = vadd.f32 %v3383_v60, %v8904_v26  ;;  %v3375_v33 = vadd.f32 %v8407_v15, %v3374_v7  ;;  %v8916_v60 = vld [vmem:[#allocation35_spill] sm:$0xff] }
 0x3cb   : > { %3582 = vst.msk [vmem:[%s8427_s27 + $0x20] sm:$0xff] %vm1284_vm3, %v3550_v45  ;;  %v3553_v44 = vmax.f32 %v3521_v23, 0.0  ;;  %v3519_v13 = vadd.f32 %v3375_v33, %v8905_v35  ;;  %v8917_v23 = vld [vmem:[#allocation24_spill] sm:$0xff] }
 0x3cd   : > { %3585 = vst.msk [vmem:[%s8427_s27 + $0x38] sm:$0xff] %vm1284_vm3, %v3553_v44  ;;  %v3551_v8 = vmax.f32 %v3519_v13, 0.0 }
 0x3cf   : > { %3583 = vst.msk [vmem:[%s8427_s27 + $0x28] sm:$0xff] %vm1284_vm3, %v3551_v8 }
 0x402   : > { %v3808_v16 = vpop.f32.mrf.mxu1 }
 0x403   : > { %v3396_v22 = vadd.f32 %v3808_v16, %v8407_v15  ;;  %v8918_v16 = vld [vmem:[#allocation40_spill] sm:$0xff] }
 0x404   : > { %v3387_v55 = vpop.f32.mrf.mxu1 }
 0x405   : > { %v3524_v62 = vadd.f32 %v3396_v22, %v8906_v11  ;;  %v3388_v4 = vadd.f32 %v8407_v15, %v3387_v55 }
 0x406   : > { %v3809_v51 = vpop.f32.mrf.mxu1 }
 0x407   : > { %v3556_v49 = vmax.f32 %v3524_v62, 0.0  ;;  %v3522_v39 = vadd.f32 %v3388_v4, %v8907_v29  ;;  %v3399_v61 = vadd.f32 %v3809_v51, %v8407_v15  ;;  %v8919_v4 = vld [vmem:[#allocation29_spill] sm:$0xff] }
 0x408   : > { %v3390_v0 = vpop.f32.mrf.mxu1 }
 0x409   : > { %3588 = vst.msk [vmem:[%s8427_s27 + $0x50] sm:$0xff] %vm1284_vm3, %v3556_v49  ;;  %v3554_v6 = vmax.f32 %v3522_v39, 0.0  ;;  %v3525_v31 = vadd.f32 %v3399_v61, %v8908_v40  ;;  %v3391_v10 = vadd.f32 %v8407_v15, %v3390_v0  ;;  %v8920_v61 = vld [vmem:[#allocation41_spill] sm:$0xff] }
 0x40b   : > { %3586 = vst.msk [vmem:[%s8427_s27 + $0x40] sm:$0xff] %vm1284_vm3, %v3554_v6  ;;  %v3557_v58 = vmax.f32 %v3525_v31, 0.0  ;;  %v3523_v12 = vadd.f32 %v3391_v10, %v8909_v28  ;;  %v8921_v31 = vld [vmem:[#allocation32_spill] sm:$0xff] }
 0x40d   : > { %3589 = vst.msk [vmem:[%s8427_s27 + $0x58] sm:$0xff] %vm1284_vm3, %v3557_v58  ;;  %v3555_v43 = vmax.f32 %v3523_v12, 0.0 }
 0x40f   : > { %3587 = vst.msk [vmem:[%s8427_s27 + $0x48] sm:$0xff] %vm1284_vm3, %v3555_v43 }
 0x419   : > { %v3812_v54 = vpop.f32.mrf.mxu1 }
 0x41a   : > { %v3412_v17 = vadd.f32 %v3812_v54, %v8407_v15  ;;  %v8922_v54 = vld [vmem:[#allocation44_spill] sm:$0xff] }
 0x41b   : > { %v3403_v21 = vpop.f32.mrf.mxu1 }
 0x41c   : > { %v3528_v38 = vadd.f32 %v3412_v17, %v8910_v32  ;;  %v3404_v14 = vadd.f32 %v8407_v15, %v3403_v21 }
 0x41d   : > { %v3813_v9 = vpop.f32.mrf.mxu1 }
 0x41e   : > { %v3560_v42 = vmax.f32 %v3528_v38, 0.0  ;;  %v3526_v52 = vadd.f32 %v3404_v14, %v8911_v34  ;;  %v3415_v2 = vadd.f32 %v3813_v9, %v8407_v15  ;;  %v8923_v14 = vld [vmem:[#allocation37_spill] sm:$0xff] }
 0x41f   : > { %v3406_v56 = vpop.f32.mrf.mxu1 }
 0x420   : > { %3592 = vst.msk [vmem:[%s8427_s27 + $0x70] sm:$0xff] %vm1284_vm3, %v3560_v42  ;;  %v3558_v63 = vmax.f32 %v3526_v52, 0.0  ;;  %v3529_v37 = vadd.f32 %v3415_v2, %v8912_v18  ;;  %v3407_v1 = vadd.f32 %v8407_v15, %v3406_v56  ;;  %v8924_v2 = vld [vmem:[#allocation45_spill] sm:$0xff] }
 0x422   : > { %3590 = vst.msk [vmem:[%s8427_s27 + $0x60] sm:$0xff] %vm1284_vm3, %v3558_v63  ;;  %v3561_v25 = vmax.f32 %v3529_v37, 0.0  ;;  %v3527_v47 = vadd.f32 %v3407_v1, %v8913_v46  ;;  %v8925_v37 = vld [vmem:[#allocation38_spill] sm:$0xff] }
 0x424   : > { %3593 = vst.msk [vmem:[%s8427_s27 + $0x78] sm:$0xff] %vm1284_vm3, %v3561_v25  ;;  %v3559_v30 = vmax.f32 %v3527_v47, 0.0 }
 0x426   : > { %3591 = vst.msk [vmem:[%s8427_s27 + $0x68] sm:$0xff] %vm1284_vm3, %v3559_v30 }
 0x42d   : > { %v3816_v27 = vpop.f32.mrf.mxu1 }
 0x42e   : > { %v3428_v59 = vadd.f32 %v3816_v27, %v8407_v15  ;;  %v8926_v27 = vld [vmem:[#allocation30_spill] sm:$0xff] }
 0x42f   : > { %v3419_v41 = vpop.f32.mrf.mxu1 }
 0x430   : > { %v3532_v3 = vadd.f32 %v3428_v59, %v8914_v5  ;;  %v3420_v57 = vadd.f32 %v8407_v15, %v3419_v41 }
 0x431   : > { %v3817_v36 = vpop.f32.mrf.mxu1 }
 0x432   : > { %v3564_v50 = vmax.f32 %v3532_v3, 0.0  ;;  %v3530_v53 = vadd.f32 %v3420_v57, %v8915_v20  ;;  %v3431_v19 = vadd.f32 %v3817_v36, %v8407_v15  ;;  %v8927_v57 = vld [vmem:[#allocation42_spill] sm:$0xff] }
 0x433   : > { %v3422_v24 = vpop.f32.mrf.mxu1 }
 0x434   : > { %3596 = vst.msk [vmem:[%s8427_s27 + $0x90] sm:$0xff] %vm1284_vm3, %v3564_v50  ;;  %v3562_v48 = vmax.f32 %v3530_v53, 0.0  ;;  %v3533_v7 = vadd.f32 %v3431_v19, %v8916_v60  ;;  %v3423_v45 = vadd.f32 %v8407_v15, %v3422_v24  ;;  %v8928_v19 = vld [vmem:[#allocation31_spill] sm:$0xff] }
 0x436   : > { %3594 = vst.msk [vmem:[%s8427_s27 + $0x80] sm:$0xff] %vm1284_vm3, %v3562_v48  ;;  %v3565_v26 = vmax.f32 %v3533_v7, 0.0  ;;  %v3531_v33 = vadd.f32 %v3423_v45, %v8917_v23  ;;  %v8929_v7 = vld [vmem:[#allocation43_spill] sm:$0xff] }
 0x438   : > { %3597 = vst.msk [vmem:[%s8427_s27 + $0x98] sm:$0xff] %vm1284_vm3, %v3565_v26  ;;  %v3563_v44 = vmax.f32 %v3531_v33, 0.0 }
 0x43a   : > { %3595 = vst.msk [vmem:[%s8427_s27 + $0x88] sm:$0xff] %vm1284_vm3, %v3563_v44 }
 0x441   : > { %v3820_v35 = vpop.f32.mrf.mxu1 }
 0x442   : > { %v3444_v13 = vadd.f32 %v3820_v35, %v8407_v15 }
 0x443   : > { %v3435_v8 = vpop.f32.mrf.mxu1 }
 0x444   : > { %v3536_v22 = vadd.f32 %v3444_v13, %v8918_v16  ;;  %v3436_v55 = vadd.f32 %v8407_v15, %v3435_v8 }
 0x445   : > { %v3821_v11 = vpop.f32.mrf.mxu1 }
 0x446   : > { %v3568_v62 = vmax.f32 %v3536_v22, 0.0  ;;  %v3534_v51 = vadd.f32 %v3436_v55, %v8919_v4  ;;  %v3447_v49 = vadd.f32 %v3821_v11, %v8407_v15 }
 0x447   : > { %v3438_v29 = vpop.f32.mrf.mxu1 }
 0x448   : > { %3600 = vst.msk [vmem:[%s8427_s27 + $0xb0] sm:$0xff] %vm1284_vm3, %v3568_v62  ;;  %v3566_v39 = vmax.f32 %v3534_v51, 0.0  ;;  %v3537_v0 = vadd.f32 %v3447_v49, %v8920_v61  ;;  %v3439_v6 = vadd.f32 %v8407_v15, %v3438_v29 }
 0x44a   : > { %3598 = vst.msk [vmem:[%s8427_s27 + $0xa0] sm:$0xff] %vm1284_vm3, %v3566_v39  ;;  %v3569_v40 = vmax.f32 %v3537_v0, 0.0  ;;  %v3535_v10 = vadd.f32 %v3439_v6, %v8921_v31 }
 0x44c   : > { %3601 = vst.msk [vmem:[%s8427_s27 + $0xb8] sm:$0xff] %vm1284_vm3, %v3569_v40  ;;  %v3567_v58 = vmax.f32 %v3535_v10, 0.0 }
 0x44e   : > { %3599 = vst.msk [vmem:[%s8427_s27 + $0xa8] sm:$0xff] %vm1284_vm3, %v3567_v58 }
 0x455   : > { %v3824_v28 = vpop.f32.mrf.mxu1 }
 0x456   : > { %v3460_v12 = vadd.f32 %v3824_v28, %v8407_v15 }
 0x457   : > { %v3451_v43 = vpop.f32.mrf.mxu1 }
 0x458   : > { %v3540_v17 = vadd.f32 %v3460_v12, %v8922_v54  ;;  %v3452_v21 = vadd.f32 %v8407_v15, %v3451_v43 }
 0x459   : > { %v3825_v32 = vpop.f32.mrf.mxu1 }
 0x45a   : > { %v3572_v38 = vmax.f32 %v3540_v17, 0.0  ;;  %v3538_v9 = vadd.f32 %v3452_v21, %v8923_v14  ;;  %v3463_v42 = vadd.f32 %v3825_v32, %v8407_v15 }
 0x45b   : > { %v3454_v34 = vpop.f32.mrf.mxu1 }
 0x45c   : > { %3604 = vst.msk [vmem:[%s8427_s27 + $0xd0] sm:$0xff] %vm1284_vm3, %v3572_v38  ;;  %v3570_v52 = vmax.f32 %v3538_v9, 0.0  ;;  %v3541_v56 = vadd.f32 %v3463_v42, %v8924_v2  ;;  %v3455_v63 = vadd.f32 %v8407_v15, %v3454_v34 }
 0x45e   : > { %3602 = vst.msk [vmem:[%s8427_s27 + $0xc0] sm:$0xff] %vm1284_vm3, %v3570_v52  ;;  %v3573_v18 = vmax.f32 %v3541_v56, 0.0  ;;  %v3539_v1 = vadd.f32 %v3455_v63, %v8925_v37 }
 0x460   : > { %3605 = vst.msk [vmem:[%s8427_s27 + $0xd8] sm:$0xff] %vm1284_vm3, %v3573_v18  ;;  %v3571_v25 = vmax.f32 %v3539_v1, 0.0 }
 0x462   : > { %3603 = vst.msk [vmem:[%s8427_s27 + $0xc8] sm:$0xff] %vm1284_vm3, %v3571_v25 }
 0x46c   : > { %v3828_v46 = vpop.f32.mrf.mxu1 }
 0x46d   : > { %v3476_v47 = vadd.f32 %v3828_v46, %v8407_v15 }
 0x46e   : > { %v3467_v30 = vpop.f32.mrf.mxu1 }
 0x46f   : > { %v3544_v59 = vadd.f32 %v3476_v47, %v8926_v27  ;;  %v3468_v41 = vadd.f32 %v8407_v15, %v3467_v30 }
 0x470   : > { %v3829_v5 = vpop.f32.mrf.mxu1 }
 0x471   : > { %v3576_v3 = vmax.f32 %v3544_v59, 0.0  ;;  %v3542_v36 = vadd.f32 %v3468_v41, %v8927_v57  ;;  %v3479_v50 = vadd.f32 %v3829_v5, %v8407_v15 }
 0x472   : > { %v3470_v20 = vpop.f32.mrf.mxu1 }
 0x473   : > { %3608 = vst.msk [vmem:[%s8427_s27 + $0xf0] sm:$0xff] %vm1284_vm3, %v3576_v3  ;;  %v3574_v53 = vmax.f32 %v3542_v36, 0.0  ;;  %v3545_v24 = vadd.f32 %v3479_v50, %v8928_v19  ;;  %v3471_v48 = vadd.f32 %v8407_v15, %v3470_v20 }
 0x475   : > { %3606 = vst.msk [vmem:[%s8427_s27 + $0xe0] sm:$0xff] %vm1284_vm3, %v3574_v53  ;;  %v3577_v60 = vmax.f32 %v3545_v24, 0.0  ;;  %v3543_v45 = vadd.f32 %v3471_v48, %v8929_v7 }
 0x477   : > { %3609 = vst.msk [vmem:[%s8427_s27 + $0xf8] sm:$0xff] %vm1284_vm3, %v3577_v60  ;;  %v3575_v26 = vmax.f32 %v3543_v45, 0.0 }
 0x479   : > { %3607 = vst.msk [vmem:[%s8427_s27 + $0xe8] sm:$0xff] %vm1284_vm3, %v3575_v26 }
 0x47a PF: > { %s15_s18 = sadd.s32 1, %s5202_s18  }
 0x47b   : > { %p12_p4 = scmp.ge.s32.totalorder %s15_s18, 4  }
 0x47d   :  { %14 = sbr.rel (!%p12_p4) target bundleno = 1 (0x1), region = 72 }

</bundles_post_ra>
